<compile_context>
chip_gen: v5e
topology: v5e:2x2
jax: 0.10.0
libtpu: 0.0.40
codegen_flags: <defaults>
</compile_context>

<pallas_src>
import jax
import jax.numpy as jnp
from jax import lax
from jax.experimental import pallas as pl
from jax.experimental.pallas import tpu as pltpu


def _dwconv3x3_kernel(x_ref, w_ref, o_ref):
    # x_ref: (H+2, W+2, C)  padded input image for one batch element
    # w_ref: (3, 3, C)      depthwise taps
    # o_ref: (H, W, C)      full output image for this batch element
    H, W, C = o_ref.shape

    # Hoist the 9 tap broadcasts (C,) -> (W, C) out of the MAC loops.
    w = w_ref[...].astype(jnp.float32)                                  # (3, 3, C)
    wb = [[jnp.broadcast_to(w[dh, dw, :], (W, C)) for dw in range(3)]
          for dh in range(3)]

    # One output row at a time keeps the live accumulator at ~ceil(W/8)*ceil(C/128) vregs.
    for r in range(H):
        # Seed the accumulator with the (dh=0, dw=0) tap product: no zero splat, no
        # extra add.  The dw shift happens in the load (sublane-offset vld from the
        # ref), not as a slice of an already-loaded value (which would burn VALU
        # sublane shuffles on the binding slot).
        acc = x_ref[r, pl.ds(0, W), :].astype(jnp.float32) * wb[0][0]
        for dh in range(3):
            for dw in range(3):
                if dh == 0 and dw == 0:
                    continue  # already used to seed the accumulator
                acc = acc + (x_ref[r + dh, pl.ds(dw, W), :].astype(jnp.float32)
                             * wb[dh][dw])
        o_ref[r, :, :] = acc.astype(o_ref.dtype)


def depthwise_conv3x3_nhwc(x_nhwc, w_hwc):
    """x_nhwc: (N, H, W, C); w_hwc: (3, 3, C). Returns (N, H, W, C)."""
    N, H, W, C = x_nhwc.shape
    assert w_hwc.shape == (3, 3, C)

    # SAME padding for 3x3 / stride 1 (single XLA pad).
    # TODO(synk): fold the pad into the kernel via masked edge loads.
    x_pad = jnp.pad(x_nhwc, ((0, 0), (1, 1), (1, 1), (0, 0)))

    return pl.pallas_call(
        _dwconv3x3_kernel,
        out_shape=jax.ShapeDtypeStruct((N, H, W, C), x_nhwc.dtype),
        grid_spec=pltpu.PrefetchScalarGridSpec(
            num_scalar_prefetch=0,
            grid=(N,),
            in_specs=[
                # whole padded image for this batch element
                pl.BlockSpec((None, H + 2, W + 2, C), lambda n: (n, 0, 0, 0)),
                # depthwise weights, constant over the grid
                pl.BlockSpec((3, 3, C), lambda n: (0, 0, 0)),
            ],
            out_specs=pl.BlockSpec((None, H, W, C), lambda n: (n, 0, 0, 0)),
        ),
        compiler_params=pltpu.CompilerParams(
            dimension_semantics=("parallel",)),
    )(x_pad, w_hwc)


def depthwise_conv3x3_nchw(x_nchw, weight_oihw):
    """PyTorch-convention adapter: x (N, C, H, W), weight (C, 1, 3, 3), groups=C."""
    N, C, H, W = x_nchw.shape
    assert weight_oihw.shape == (C, 1, 3, 3)
    x_nhwc = jnp.transpose(x_nchw, (0, 2, 3, 1))
    w_hwc = jnp.transpose(weight_oihw[:, 0, :, :], (1, 2, 0))            # (3, 3, C)
    out_nhwc = depthwise_conv3x3_nhwc(x_nhwc, w_hwc)
    return jnp.transpose(out_nhwc, (0, 3, 1, 2))


def _reference(x_nchw, weight_oihw):
    return lax.conv_general_dilated(
        x_nchw, weight_oihw,
        window_strides=(1, 1), padding=((1, 1), (1, 1)),
        dimension_numbers=("NCHW", "OIHW", "NCHW"),
        feature_group_count=x_nchw.shape[1],
    )


if __name__ == "__main__":
    key = jax.random.PRNGKey(0)
    kx, kw = jax.random.split(key)
    # Channels fixed at 144 by groups=144; spatial reduced 56 -> 16; small batch.
    N, C, H, W = 2, 144, 16, 16
    x = jax.random.normal(kx, (N, C, H, W), dtype=jnp.float32)
    weight = jax.random.normal(kw, (C, 1, 3, 3), dtype=jnp.float32) * 0.1

    conv = jax.jit(depthwise_conv3x3_nchw)
    out = jax.block_until_ready(conv(x, weight))

    ref = jax.block_until_ready(_reference(x, weight))
    assert out.shape == (N, C, H, W)
    assert jnp.allclose(out, ref, atol=1e-4, rtol=1e-4), "mismatch vs reference conv"
    print("KERNEL_OK")
</pallas_src>

<mosaic_0001>
module attributes {stable_mosaic.version = 11 : i64} {
  func.func @_dwconv3x3_kernel(%arg0: i32, %arg1: memref<1x18x18x144xf32, #tpu.memory_space<vmem>>, %arg2: memref<3x3x144xf32, #tpu.memory_space<vmem>>, %arg3: memref<1x16x16x144xf32, #tpu.memory_space<vmem>>) attributes {dimension_semantics = [#tpu.dimension_semantics<parallel>], iteration_bounds = array<i64: 2>, scalar_prefetch = 0 : i64, scratch_operands = 0 : i64, tpu.core_type = #tpu.core_type<tc>, window_params = [{transform_indices = @transform_0, window_bounds = array<i64: 1, 18, 18, 144>}, {pipeline_mode = #tpu.pipeline_mode<synchronous>, transform_indices = @transform_1, window_bounds = array<i64: 3, 3, 144>}, {transform_indices = @transform_2, window_bounds = array<i64: 1, 16, 16, 144>}]} {
    %c0 = arith.constant 0 : index
    %c0_0 = arith.constant 0 : index
    %c0_1 = arith.constant 0 : index
    %0 = vector.load %arg2[%c0, %c0_0, %c0_1] : memref<3x3x144xf32, #tpu.memory_space<vmem>>, vector<3x3x144xf32>
    %1 = vector.extract_strided_slice %0 {offsets = [0, 0, 0], sizes = [1, 1, 144], strides = [1, 1, 1]} : vector<3x3x144xf32> to vector<1x1x144xf32>
    %2 = vector.shape_cast %1 : vector<1x1x144xf32> to vector<144xf32>
    %3 = vector.shape_cast %2 : vector<144xf32> to vector<1x144xf32>
    %4 = vector.broadcast %3 : vector<1x144xf32> to vector<16x144xf32>
    %5 = vector.extract_strided_slice %0 {offsets = [0, 1, 0], sizes = [1, 1, 144], strides = [1, 1, 1]} : vector<3x3x144xf32> to vector<1x1x144xf32>
    %6 = vector.shape_cast %5 : vector<1x1x144xf32> to vector<144xf32>
    %7 = vector.shape_cast %6 : vector<144xf32> to vector<1x144xf32>
    %8 = vector.broadcast %7 : vector<1x144xf32> to vector<16x144xf32>
    %9 = vector.extract_strided_slice %0 {offsets = [0, 2, 0], sizes = [1, 1, 144], strides = [1, 1, 1]} : vector<3x3x144xf32> to vector<1x1x144xf32>
    %10 = vector.shape_cast %9 : vector<1x1x144xf32> to vector<144xf32>
    %11 = vector.shape_cast %10 : vector<144xf32> to vector<1x144xf32>
    %12 = vector.broadcast %11 : vector<1x144xf32> to vector<16x144xf32>
    %13 = vector.extract_strided_slice %0 {offsets = [1, 0, 0], sizes = [1, 1, 144], strides = [1, 1, 1]} : vector<3x3x144xf32> to vector<1x1x144xf32>
    %14 = vector.shape_cast %13 : vector<1x1x144xf32> to vector<144xf32>
    %15 = vector.shape_cast %14 : vector<144xf32> to vector<1x144xf32>
    %16 = vector.broadcast %15 : vector<1x144xf32> to vector<16x144xf32>
    %17 = vector.extract_strided_slice %0 {offsets = [1, 1, 0], sizes = [1, 1, 144], strides = [1, 1, 1]} : vector<3x3x144xf32> to vector<1x1x144xf32>
    %18 = vector.shape_cast %17 : vector<1x1x144xf32> to vector<144xf32>
    %19 = vector.shape_cast %18 : vector<144xf32> to vector<1x144xf32>
    %20 = vector.broadcast %19 : vector<1x144xf32> to vector<16x144xf32>
    %21 = vector.extract_strided_slice %0 {offsets = [1, 2, 0], sizes = [1, 1, 144], strides = [1, 1, 1]} : vector<3x3x144xf32> to vector<1x1x144xf32>
    %22 = vector.shape_cast %21 : vector<1x1x144xf32> to vector<144xf32>
    %23 = vector.shape_cast %22 : vector<144xf32> to vector<1x144xf32>
    %24 = vector.broadcast %23 : vector<1x144xf32> to vector<16x144xf32>
    %25 = vector.extract_strided_slice %0 {offsets = [2, 0, 0], sizes = [1, 1, 144], strides = [1, 1, 1]} : vector<3x3x144xf32> to vector<1x1x144xf32>
    %26 = vector.shape_cast %25 : vector<1x1x144xf32> to vector<144xf32>
    %27 = vector.shape_cast %26 : vector<144xf32> to vector<1x144xf32>
    %28 = vector.broadcast %27 : vector<1x144xf32> to vector<16x144xf32>
    %29 = vector.extract_strided_slice %0 {offsets = [2, 1, 0], sizes = [1, 1, 144], strides = [1, 1, 1]} : vector<3x3x144xf32> to vector<1x1x144xf32>
    %30 = vector.shape_cast %29 : vector<1x1x144xf32> to vector<144xf32>
    %31 = vector.shape_cast %30 : vector<144xf32> to vector<1x144xf32>
    %32 = vector.broadcast %31 : vector<1x144xf32> to vector<16x144xf32>
    %33 = vector.extract_strided_slice %0 {offsets = [2, 2, 0], sizes = [1, 1, 144], strides = [1, 1, 1]} : vector<3x3x144xf32> to vector<1x1x144xf32>
    %34 = vector.shape_cast %33 : vector<1x1x144xf32> to vector<144xf32>
    %35 = vector.shape_cast %34 : vector<144xf32> to vector<1x144xf32>
    %36 = vector.broadcast %35 : vector<1x144xf32> to vector<16x144xf32>
    %c0_2 = arith.constant 0 : index
    %c0_3 = arith.constant 0 : index
    %c0_4 = arith.constant 0 : index
    %c0_5 = arith.constant 0 : index
    %37 = vector.load %arg1[%c0_2, %c0_3, %c0_4, %c0_5] : memref<1x18x18x144xf32, #tpu.memory_space<vmem>>, vector<1x1x16x144xf32>
    %38 = vector.shape_cast %37 : vector<1x1x16x144xf32> to vector<16x144xf32>
    %39 = arith.mulf %38, %4 : vector<16x144xf32>
    %c0_6 = arith.constant 0 : index
    %c0_7 = arith.constant 0 : index
    %c1 = arith.constant 1 : index
    %c0_8 = arith.constant 0 : index
    %40 = vector.load %arg1[%c0_6, %c0_7, %c1, %c0_8] : memref<1x18x18x144xf32, #tpu.memory_space<vmem>>, vector<1x1x16x144xf32>
    %41 = vector.shape_cast %40 : vector<1x1x16x144xf32> to vector<16x144xf32>
    %42 = arith.mulf %41, %8 : vector<16x144xf32>
    %43 = arith.addf %39, %42 : vector<16x144xf32>
    %c0_9 = arith.constant 0 : index
    %c0_10 = arith.constant 0 : index
    %c2 = arith.constant 2 : index
    %c0_11 = arith.constant 0 : index
    %44 = vector.load %arg1[%c0_9, %c0_10, %c2, %c0_11] : memref<1x18x18x144xf32, #tpu.memory_space<vmem>>, vector<1x1x16x144xf32>
    %45 = vector.shape_cast %44 : vector<1x1x16x144xf32> to vector<16x144xf32>
    %46 = arith.mulf %45, %12 : vector<16x144xf32>
    %47 = arith.addf %43, %46 : vector<16x144xf32>
    %c0_12 = arith.constant 0 : index
    %c1_13 = arith.constant 1 : index
    %c0_14 = arith.constant 0 : index
    %c0_15 = arith.constant 0 : index
    %48 = vector.load %arg1[%c0_12, %c1_13, %c0_14, %c0_15] : memref<1x18x18x144xf32, #tpu.memory_space<vmem>>, vector<1x1x16x144xf32>
    %49 = vector.shape_cast %48 : vector<1x1x16x144xf32> to vector<16x144xf32>
    %50 = arith.mulf %49, %16 : vector<16x144xf32>
    %51 = arith.addf %47, %50 : vector<16x144xf32>
    %c0_16 = arith.constant 0 : index
    %c1_17 = arith.constant 1 : index
    %c1_18 = arith.constant 1 : index
    %c0_19 = arith.constant 0 : index
    %52 = vector.load %arg1[%c0_16, %c1_17, %c1_18, %c0_19] : memref<1x18x18x144xf32, #tpu.memory_space<vmem>>, vector<1x1x16x144xf32>
    %53 = vector.shape_cast %52 : vector<1x1x16x144xf32> to vector<16x144xf32>
    %54 = arith.mulf %53, %20 : vector<16x144xf32>
    %55 = arith.addf %51, %54 : vector<16x144xf32>
    %c0_20 = arith.constant 0 : index
    %c1_21 = arith.constant 1 : index
    %c2_22 = arith.constant 2 : index
    %c0_23 = arith.constant 0 : index
    %56 = vector.load %arg1[%c0_20, %c1_21, %c2_22, %c0_23] : memref<1x18x18x144xf32, #tpu.memory_space<vmem>>, vector<1x1x16x144xf32>
    %57 = vector.shape_cast %56 : vector<1x1x16x144xf32> to vector<16x144xf32>
    %58 = arith.mulf %57, %24 : vector<16x144xf32>
    %59 = arith.addf %55, %58 : vector<16x144xf32>
    %c0_24 = arith.constant 0 : index
    %c2_25 = arith.constant 2 : index
    %c0_26 = arith.constant 0 : index
    %c0_27 = arith.constant 0 : index
    %60 = vector.load %arg1[%c0_24, %c2_25, %c0_26, %c0_27] : memref<1x18x18x144xf32, #tpu.memory_space<vmem>>, vector<1x1x16x144xf32>
    %61 = vector.shape_cast %60 : vector<1x1x16x144xf32> to vector<16x144xf32>
    %62 = arith.mulf %61, %28 : vector<16x144xf32>
    %63 = arith.addf %59, %62 : vector<16x144xf32>
    %c0_28 = arith.constant 0 : index
    %c2_29 = arith.constant 2 : index
    %c1_30 = arith.constant 1 : index
    %c0_31 = arith.constant 0 : index
    %64 = vector.load %arg1[%c0_28, %c2_29, %c1_30, %c0_31] : memref<1x18x18x144xf32, #tpu.memory_space<vmem>>, vector<1x1x16x144xf32>
    %65 = vector.shape_cast %64 : vector<1x1x16x144xf32> to vector<16x144xf32>
    %66 = arith.mulf %65, %32 : vector<16x144xf32>
    %67 = arith.addf %63, %66 : vector<16x144xf32>
    %c0_32 = arith.constant 0 : index
    %c2_33 = arith.constant 2 : index
    %c2_34 = arith.constant 2 : index
    %c0_35 = arith.constant 0 : index
    %68 = vector.load %arg1[%c0_32, %c2_33, %c2_34, %c0_35] : memref<1x18x18x144xf32, #tpu.memory_space<vmem>>, vector<1x1x16x144xf32>
    %69 = vector.shape_cast %68 : vector<1x1x16x144xf32> to vector<16x144xf32>
    %70 = arith.mulf %69, %36 : vector<16x144xf32>
    %71 = arith.addf %67, %70 : vector<16x144xf32>
    %c0_36 = arith.constant 0 : index
    %c0_37 = arith.constant 0 : index
    %c0_38 = arith.constant 0 : index
    %c0_39 = arith.constant 0 : index
    %72 = vector.load %arg3[%c0_36, %c0_37, %c0_38, %c0_39] : memref<1x16x16x144xf32, #tpu.memory_space<vmem>>, vector<1x1x16x144xf32>
    %73 = vector.shape_cast %72 : vector<1x1x16x144xf32> to vector<16x144xf32>
    %74 = vector.shape_cast %71 : vector<16x144xf32> to vector<1x1x16x144xf32>
    tpu.vector_store %arg3[%c0_36, %c0_37, %c0_38, %c0_39], %74 {strides = array<i32>} : memref<1x16x16x144xf32, #tpu.memory_space<vmem>>, vector<1x1x16x144xf32>,
    %c0_40 = arith.constant 0 : index
    %c1_41 = arith.constant 1 : index
    %c0_42 = arith.constant 0 : index
    %c0_43 = arith.constant 0 : index
    %75 = vector.load %arg1[%c0_40, %c1_41, %c0_42, %c0_43] : memref<1x18x18x144xf32, #tpu.memory_space<vmem>>, vector<1x1x16x144xf32>
    %76 = vector.shape_cast %75 : vector<1x1x16x144xf32> to vector<16x144xf32>
    %77 = arith.mulf %76, %4 : vector<16x144xf32>
    %c0_44 = arith.constant 0 : index
    %c1_45 = arith.constant 1 : index
    %c1_46 = arith.constant 1 : index
    %c0_47 = arith.constant 0 : index
    %78 = vector.load %arg1[%c0_44, %c1_45, %c1_46, %c0_47] : memref<1x18x18x144xf32, #tpu.memory_space<vmem>>, vector<1x1x16x144xf32>
    %79 = vector.shape_cast %78 : vector<1x1x16x144xf32> to vector<16x144xf32>
    %80 = arith.mulf %79, %8 : vector<16x144xf32>
    %81 = arith.addf %77, %80 : vector<16x144xf32>
    %c0_48 = arith.constant 0 : index
    %c1_49 = arith.constant 1 : index
    %c2_50 = arith.constant 2 : index
    %c0_51 = arith.constant 0 : index
    %82 = vector.load %arg1[%c0_48, %c1_49, %c2_50, %c0_51] : memref<1x18x18x144xf32, #tpu.memory_space<vmem>>, vector<1x1x16x144xf32>
    %83 = vector.shape_cast %82 : vector<1x1x16x144xf32> to vector<16x144xf32>
    %84 = arith.mulf %83, %12 : vector<16x144xf32>
    %85 = arith.addf %81, %84 : vector<16x144xf32>
    %c0_52 = arith.constant 0 : index
    %c2_53 = arith.constant 2 : index
    %c0_54 = arith.constant 0 : index
    %c0_55 = arith.constant 0 : index
    %86 = vector.load %arg1[%c0_52, %c2_53, %c0_54, %c0_55] : memref<1x18x18x144xf32, #tpu.memory_space<vmem>>, vector<1x1x16x144xf32>
    %87 = vector.shape_cast %86 : vector<1x1x16x144xf32> to vector<16x144xf32>
    %88 = arith.mulf %87, %16 : vector<16x144xf32>
    %89 = arith.addf %85, %88 : vector<16x144xf32>
    %c0_56 = arith.constant 0 : index
    %c2_57 = arith.constant 2 : index
    %c1_58 = arith.constant 1 : index
    %c0_59 = arith.constant 0 : index
    %90 = vector.load %arg1[%c0_56, %c2_57, %c1_58, %c0_59] : memref<1x18x18x144xf32, #tpu.memory_space<vmem>>, vector<1x1x16x144xf32>
    %91 = vector.shape_cast %90 : vector<1x1x16x144xf32> to vector<16x144xf32>
    %92 = arith.mulf %91, %20 : vector<16x144xf32>
    %93 = arith.addf %89, %92 : vector<16x144xf32>
    %c0_60 = arith.constant 0 : index
    %c2_61 = arith.constant 2 : index
    %c2_62 = arith.constant 2 : index
    %c0_63 = arith.constant 0 : index
    %94 = vector.load %arg1[%c0_60, %c2_61, %c2_62, %c0_63] : memref<1x18x18x144xf32, #tpu.memory_space<vmem>>, vector<1x1x16x144xf32>
    %95 = vector.shape_cast %94 : vector<1x1x16x144xf32> to vector<16x144xf32>
    %96 = arith.mulf %95, %24 : vector<16x144xf32>
    %97 = arith.addf %93, %96 : vector<16x144xf32>
    %c0_64 = arith.constant 0 : index
    %c3 = arith.constant 3 : index
    %c0_65 = arith.constant 0 : index
    %c0_66 = arith.constant 0 : index
    %98 = vector.load %arg1[%c0_64, %c3, %c0_65, %c0_66] : memref<1x18x18x144xf32, #tpu.memory_space<vmem>>, vector<1x1x16x144xf32>
    %99 = vector.shape_cast %98 : vector<1x1x16x144xf32> to vector<16x144xf32>
    %100 = arith.mulf %99, %28 : vector<16x144xf32>
    %101 = arith.addf %97, %100 : vector<16x144xf32>
    %c0_67 = arith.constant 0 : index
    %c3_68 = arith.constant 3 : index
    %c1_69 = arith.constant 1 : index
    %c0_70 = arith.constant 0 : index
    %102 = vector.load %arg1[%c0_67, %c3_68, %c1_69, %c0_70] : memref<1x18x18x144xf32, #tpu.memory_space<vmem>>, vector<1x1x16x144xf32>
    %103 = vector.shape_cast %102 : vector<1x1x16x144xf32> to vector<16x144xf32>
    %104 = arith.mulf %103, %32 : vector<16x144xf32>
    %105 = arith.addf %101, %104 : vector<16x144xf32>
    %c0_71 = arith.constant 0 : index
    %c3_72 = arith.constant 3 : index
    %c2_73 = arith.constant 2 : index
    %c0_74 = arith.constant 0 : index
    %106 = vector.load %arg1[%c0_71, %c3_72, %c2_73, %c0_74] : memref<1x18x18x144xf32, #tpu.memory_space<vmem>>, vector<1x1x16x144xf32>
    %107 = vector.shape_cast %106 : vector<1x1x16x144xf32> to vector<16x144xf32>
    %108 = arith.mulf %107, %36 : vector<16x144xf32>
    %109 = arith.addf %105, %108 : vector<16x144xf32>
    %c0_75 = arith.constant 0 : index
    %c1_76 = arith.constant 1 : index
    %c0_77 = arith.constant 0 : index
    %c0_78 = arith.constant 0 : index
    %110 = vector.load %arg3[%c0_75, %c1_76, %c0_77, %c0_78] : memref<1x16x16x144xf32, #tpu.memory_space<vmem>>, vector<1x1x16x144xf32>
    %111 = vector.shape_cast %110 : vector<1x1x16x144xf32> to vector<16x144xf32>
    %112 = vector.shape_cast %109 : vector<16x144xf32> to vector<1x1x16x144xf32>
    tpu.vector_store %arg3[%c0_75, %c1_76, %c0_77, %c0_78], %112 {strides = array<i32>} : memref<1x16x16x144xf32, #tpu.memory_space<vmem>>, vector<1x1x16x144xf32>,
    %c0_79 = arith.constant 0 : index
    %c2_80 = arith.constant 2 : index
    %c0_81 = arith.constant 0 : index
    %c0_82 = arith.constant 0 : index
    %113 = vector.load %arg1[%c0_79, %c2_80, %c0_81, %c0_82] : memref<1x18x18x144xf32, #tpu.memory_space<vmem>>, vector<1x1x16x144xf32>
    %114 = vector.shape_cast %113 : vector<1x1x16x144xf32> to vector<16x144xf32>
    %115 = arith.mulf %114, %4 : vector<16x144xf32>
    %c0_83 = arith.constant 0 : index
    %c2_84 = arith.constant 2 : index
    %c1_85 = arith.constant 1 : index
    %c0_86 = arith.constant 0 : index
    %116 = vector.load %arg1[%c0_83, %c2_84, %c1_85, %c0_86] : memref<1x18x18x144xf32, #tpu.memory_space<vmem>>, vector<1x1x16x144xf32>
    %117 = vector.shape_cast %116 : vector<1x1x16x144xf32> to vector<16x144xf32>
    %118 = arith.mulf %117, %8 : vector<16x144xf32>
    %119 = arith.addf %115, %118 : vector<16x144xf32>
    %c0_87 = arith.constant 0 : index
    %c2_88 = arith.constant 2 : index
    %c2_89 = arith.constant 2 : index
    %c0_90 = arith.constant 0 : index
    %120 = vector.load %arg1[%c0_87, %c2_88, %c2_89, %c0_90] : memref<1x18x18x144xf32, #tpu.memory_space<vmem>>, vector<1x1x16x144xf32>
    %121 = vector.shape_cast %120 : vector<1x1x16x144xf32> to vector<16x144xf32>
    %122 = arith.mulf %121, %12 : vector<16x144xf32>
    %123 = arith.addf %119, %122 : vector<16x144xf32>
    %c0_91 = arith.constant 0 : index
    %c3_92 = arith.constant 3 : index
    %c0_93 = arith.constant 0 : index
    %c0_94 = arith.constant 0 : index
    %124 = vector.load %arg1[%c0_91, %c3_92, %c0_93, %c0_94] : memref<1x18x18x144xf32, #tpu.memory_space<vmem>>, vector<1x1x16x144xf32>
    %125 = vector.shape_cast %124 : vector<1x1x16x144xf32> to vector<16x144xf32>
    %126 = arith.mulf %125, %16 : vector<16x144xf32>
    %127 = arith.addf %123, %126 : vector<16x144xf32>
    %c0_95 = arith.constant 0 : index
    %c3_96 = arith.constant 3 : index
    %c1_97 = arith.constant 1 : index
    %c0_98 = arith.constant 0 : index
    %128 = vector.load %arg1[%c0_95, %c3_96, %c1_97, %c0_98] : memref<1x18x18x144xf32, #tpu.memory_space<vmem>>, vector<1x1x16x144xf32>
    %129 = vector.shape_cast %128 : vector<1x1x16x144xf32> to vector<16x144xf32>
    %130 = arith.mulf %129, %20 : vector<16x144xf32>
    %131 = arith.addf %127, %130 : vector<16x144xf32>
    %c0_99 = arith.constant 0 : index
    %c3_100 = arith.constant 3 : index
    %c2_101 = arith.constant 2 : index
    %c0_102 = arith.constant 0 : index
    %132 = vector.load %arg1[%c0_99, %c3_100, %c2_101, %c0_102] : memref<1x18x18x144xf32, #tpu.memory_space<vmem>>, vector<1x1x16x144xf32>
    %133 = vector.shape_cast %132 : vector<1x1x16x144xf32> to vector<16x144xf32>
    %134 = arith.mulf %133, %24 : vector<16x144xf32>
    %135 = arith.addf %131, %134 : vector<16x144xf32>
    %c0_103 = arith.constant 0 : index
    %c4 = arith.constant 4 : index
    %c0_104 = arith.constant 0 : index
    %c0_105 = arith.constant 0 : index
    %136 = vector.load %arg1[%c0_103, %c4, %c0_104, %c0_105] : memref<1x18x18x144xf32, #tpu.memory_space<vmem>>, vector<1x1x16x144xf32>
    %137 = vector.shape_cast %136 : vector<1x1x16x144xf32> to vector<16x144xf32>
    %138 = arith.mulf %137, %28 : vector<16x144xf32>
    %139 = arith.addf %135, %138 : vector<16x144xf32>
    %c0_106 = arith.constant 0 : index
    %c4_107 = arith.constant 4 : index
    %c1_108 = arith.constant 1 : index
    %c0_109 = arith.constant 0 : index
    %140 = vector.load %arg1[%c0_106, %c4_107, %c1_108, %c0_109] : memref<1x18x18x144xf32, #tpu.memory_space<vmem>>, vector<1x1x16x144xf32>
    %141 = vector.shape_cast %140 : vector<1x1x16x144xf32> to vector<16x144xf32>
    %142 = arith.mulf %141, %32 : vector<16x144xf32>
    %143 = arith.addf %139, %142 : vector<16x144xf32>
    %c0_110 = arith.constant 0 : index
    %c4_111 = arith.constant 4 : index
    %c2_112 = arith.constant 2 : index
    %c0_113 = arith.constant 0 : index
    %144 = vector.load %arg1[%c0_110, %c4_111, %c2_112, %c0_113] : memref<1x18x18x144xf32, #tpu.memory_space<vmem>>, vector<1x1x16x144xf32>
    %145 = vector.shape_cast %144 : vector<1x1x16x144xf32> to vector<16x144xf32>
    %146 = arith.mulf %145, %36 : vector<16x144xf32>
    %147 = arith.addf %143, %146 : vector<16x144xf32>
    %c0_114 = arith.constant 0 : index
    %c2_115 = arith.constant 2 : index
    %c0_116 = arith.constant 0 : index
    %c0_117 = arith.constant 0 : index
    %148 = vector.load %arg3[%c0_114, %c2_115, %c0_116, %c0_117] : memref<1x16x16x144xf32, #tpu.memory_space<vmem>>, vector<1x1x16x144xf32>
    %149 = vector.shape_cast %148 : vector<1x1x16x144xf32> to vector<16x144xf32>
    %150 = vector.shape_cast %147 : vector<16x144xf32> to vector<1x1x16x144xf32>
    tpu.vector_store %arg3[%c0_114, %c2_115, %c0_116, %c0_117], %150 {strides = array<i32>} : memref<1x16x16x144xf32, #tpu.memory_space<vmem>>, vector<1x1x16x144xf32>,
    %c0_118 = arith.constant 0 : index
    %c3_119 = arith.constant 3 : index
    %c0_120 = arith.constant 0 : index
    %c0_121 = arith.constant 0 : index
    %151 = vector.load %arg1[%c0_118, %c3_119, %c0_120, %c0_121] : memref<1x18x18x144xf32, #tpu.memory_space<vmem>>, vector<1x1x16x144xf32>
    %152 = vector.shape_cast %151 : vector<1x1x16x144xf32> to vector<16x144xf32>
    %153 = arith.mulf %152, %4 : vector<16x144xf32>
    %c0_122 = arith.constant 0 : index
    %c3_123 = arith.constant 3 : index
    %c1_124 = arith.constant 1 : index
    %c0_125 = arith.constant 0 : index
    %154 = vector.load %arg1[%c0_122, %c3_123, %c1_124, %c0_125] : memref<1x18x18x144xf32, #tpu.memory_space<vmem>>, vector<1x1x16x144xf32>
    %155 = vector.shape_cast %154 : vector<1x1x16x144xf32> to vector<16x144xf32>
    %156 = arith.mulf %155, %8 : vector<16x144xf32>
    %157 = arith.addf %153, %156 : vector<16x144xf32>
    %c0_126 = arith.constant 0 : index
    %c3_127 = arith.constant 3 : index
    %c2_128 = arith.constant 2 : index
    %c0_129 = arith.constant 0 : index
    %158 = vector.load %arg1[%c0_126, %c3_127, %c2_128, %c0_129] : memref<1x18x18x144xf32, #tpu.memory_space<vmem>>, vector<1x1x16x144xf32>
    %159 = vector.shape_cast %158 : vector<1x1x16x144xf32> to vector<16x144xf32>
    %160 = arith.mulf %159, %12 : vector<16x144xf32>
    %161 = arith.addf %157, %160 : vector<16x144xf32>
    %c0_130 = arith.constant 0 : index
    %c4_131 = arith.constant 4 : index
    %c0_132 = arith.constant 0 : index
    %c0_133 = arith.constant 0 : index
    %162 = vector.load %arg1[%c0_130, %c4_131, %c0_132, %c0_133] : memref<1x18x18x144xf32, #tpu.memory_space<vmem>>, vector<1x1x16x144xf32>
    %163 = vector.shape_cast %162 : vector<1x1x16x144xf32> to vector<16x144xf32>
    %164 = arith.mulf %163, %16 : vector<16x144xf32>
    %165 = arith.addf %161, %164 : vector<16x144xf32>
    %c0_134 = arith.constant 0 : index
    %c4_135 = arith.constant 4 : index
    %c1_136 = arith.constant 1 : index
    %c0_137 = arith.constant 0 : index
    %166 = vector.load %arg1[%c0_134, %c4_135, %c1_136, %c0_137] : memref<1x18x18x144xf32, #tpu.memory_space<vmem>>, vector<1x1x16x144xf32>
    %167 = vector.shape_cast %166 : vector<1x1x16x144xf32> to vector<16x144xf32>
    %168 = arith.mulf %167, %20 : vector<16x144xf32>
    %169 = arith.addf %165, %168 : vector<16x144xf32>
    %c0_138 = arith.constant 0 : index
    %c4_139 = arith.constant 4 : index
    %c2_140 = arith.constant 2 : index
    %c0_141 = arith.constant 0 : index
    %170 = vector.load %arg1[%c0_138, %c4_139, %c2_140, %c0_141] : memref<1x18x18x144xf32, #tpu.memory_space<vmem>>, vector<1x1x16x144xf32>
    %171 = vector.shape_cast %170 : vector<1x1x16x144xf32> to vector<16x144xf32>
    %172 = arith.mulf %171, %24 : vector<16x144xf32>
    %173 = arith.addf %169, %172 : vector<16x144xf32>
    %c0_142 = arith.constant 0 : index
    %c5 = arith.constant 5 : index
    %c0_143 = arith.constant 0 : index
    %c0_144 = arith.constant 0 : index
    %174 = vector.load %arg1[%c0_142, %c5, %c0_143, %c0_144] : memref<1x18x18x144xf32, #tpu.memory_space<vmem>>, vector<1x1x16x144xf32>
    %175 = vector.shape_cast %174 : vector<1x1x16x144xf32> to vector<16x144xf32>
    %176 = arith.mulf %175, %28 : vector<16x144xf32>
    %177 = arith.addf %173, %176 : vector<16x144xf32>
    %c0_145 = arith.constant 0 : index
    %c5_146 = arith.constant 5 : index
    %c1_147 = arith.constant 1 : index
    %c0_148 = arith.constant 0 : index
    %178 = vector.load %arg1[%c0_145, %c5_146, %c1_147, %c0_148] : memref<1x18x18x144xf32, #tpu.memory_space<vmem>>, vector<1x1x16x144xf32>
    %179 = vector.shape_cast %178 : vector<1x1x16x144xf32> to vector<16x144xf32>
    %180 = arith.mulf %179, %32 : vector<16x144xf32>
    %181 = arith.addf %177, %180 : vector<16x144xf32>
    %c0_149 = arith.constant 0 : index
    %c5_150 = arith.constant 5 : index
    %c2_151 = arith.constant 2 : index
    %c0_152 = arith.constant 0 : index
    %182 = vector.load %arg1[%c0_149, %c5_150, %c2_151, %c0_152] : memref<1x18x18x144xf32, #tpu.memory_space<vmem>>, vector<1x1x16x144xf32>
    %183 = vector.shape_cast %182 : vector<1x1x16x144xf32> to vector<16x144xf32>
    %184 = arith.mulf %183, %36 : vector<16x144xf32>
    %185 = arith.addf %181, %184 : vector<16x144xf32>
    %c0_153 = arith.constant 0 : index
    %c3_154 = arith.constant 3 : index
    %c0_155 = arith.constant 0 : index
    %c0_156 = arith.constant 0 : index
    %186 = vector.load %arg3[%c0_153, %c3_154, %c0_155, %c0_156] : memref<1x16x16x144xf32, #tpu.memory_space<vmem>>, vector<1x1x16x144xf32>
    %187 = vector.shape_cast %186 : vector<1x1x16x144xf32> to vector<16x144xf32>
    %188 = vector.shape_cast %185 : vector<16x144xf32> to vector<1x1x16x144xf32>
    tpu.vector_store %arg3[%c0_153, %c3_154, %c0_155, %c0_156], %188 {strides = array<i32>} : memref<1x16x16x144xf32, #tpu.memory_space<vmem>>, vector<1x1x16x144xf32>,
    %c0_157 = arith.constant 0 : index
    %c4_158 = arith.constant 4 : index
    %c0_159 = arith.constant 0 : index
    %c0_160 = arith.constant 0 : index
    %189 = vector.load %arg1[%c0_157, %c4_158, %c0_159, %c0_160] : memref<1x18x18x144xf32, #tpu.memory_space<vmem>>, vector<1x1x16x144xf32>
    %190 = vector.shape_cast %189 : vector<1x1x16x144xf32> to vector<16x144xf32>
    %191 = arith.mulf %190, %4 : vector<16x144xf32>
    %c0_161 = arith.constant 0 : index
    %c4_162 = arith.constant 4 : index
    %c1_163 = arith.constant 1 : index
    %c0_164 = arith.constant 0 : index
    %192 = vector.load %arg1[%c0_161, %c4_162, %c1_163, %c0_164] : memref<1x18x18x144xf32, #tpu.memory_space<vmem>>, vector<1x1x16x144xf32>
    %193 = vector.shape_cast %192 : vector<1x1x16x144xf32> to vector<16x144xf32>
    %194 = arith.mulf %193, %8 : vector<16x144xf32>
    %195 = arith.addf %191, %194 : vector<16x144xf32>
    %c0_165 = arith.constant 0 : index
    %c4_166 = arith.constant 4 : index
    %c2_167 = arith.constant 2 : index
    %c0_168 = arith.constant 0 : index
    %196 = vector.load %arg1[%c0_165, %c4_166, %c2_167, %c0_168] : memref<1x18x18x144xf32, #tpu.memory_space<vmem>>, vector<1x1x16x144xf32>
    %197 = vector.shape_cast %196 : vector<1x1x16x144xf32> to vector<16x144xf32>
    %198 = arith.mulf %197, %12 : vector<16x144xf32>
    %199 = arith.addf %195, %198 : vector<16x144xf32>
    %c0_169 = arith.constant 0 : index
    %c5_170 = arith.constant 5 : index
    %c0_171 = arith.constant 0 : index
    %c0_172 = arith.constant 0 : index
    %200 = vector.load %arg1[%c0_169, %c5_170, %c0_171, %c0_172] : memref<1x18x18x144xf32, #tpu.memory_space<vmem>>, vector<1x1x16x144xf32>
    %201 = vector.shape_cast %200 : vector<1x1x16x144xf32> to vector<16x144xf32>
    %202 = arith.mulf %201, %16 : vector<16x144xf32>
    %203 = arith.addf %199, %202 : vector<16x144xf32>
    %c0_173 = arith.constant 0 : index
    %c5_174 = arith.constant 5 : index
    %c1_175 = arith.constant 1 : index
    %c0_176 = arith.constant 0 : index
    %204 = vector.load %arg1[%c0_173, %c5_174, %c1_175, %c0_176] : memref<1x18x18x144xf32, #tpu.memory_space<vmem>>, vector<1x1x16x144xf32>
    %205 = vector.shape_cast %204 : vector<1x1x16x144xf32> to vector<16x144xf32>
    %206 = arith.mulf %205, %20 : vector<16x144xf32>
    %207 = arith.addf %203, %206 : vector<16x144xf32>
    %c0_177 = arith.constant 0 : index
    %c5_178 = arith.constant 5 : index
    %c2_179 = arith.constant 2 : index
    %c0_180 = arith.constant 0 : index
    %208 = vector.load %arg1[%c0_177, %c5_178, %c2_179, %c0_180] : memref<1x18x18x144xf32, #tpu.memory_space<vmem>>, vector<1x1x16x144xf32>
    %209 = vector.shape_cast %208 : vector<1x1x16x144xf32> to vector<16x144xf32>
    %210 = arith.mulf %209, %24 : vector<16x144xf32>
    %211 = arith.addf %207, %210 : vector<16x144xf32>
    %c0_181 = arith.constant 0 : index
    %c6 = arith.constant 6 : index
    %c0_182 = arith.constant 0 : index
    %c0_183 = arith.constant 0 : index
    %212 = vector.load %arg1[%c0_181, %c6, %c0_182, %c0_183] : memref<1x18x18x144xf32, #tpu.memory_space<vmem>>, vector<1x1x16x144xf32>
    %213 = vector.shape_cast %212 : vector<1x1x16x144xf32> to vector<16x144xf32>
    %214 = arith.mulf %213, %28 : vector<16x144xf32>
    %215 = arith.addf %211, %214 : vector<16x144xf32>
    %c0_184 = arith.constant 0 : index
    %c6_185 = arith.constant 6 : index
    %c1_186 = arith.constant 1 : index
    %c0_187 = arith.constant 0 : index
    %216 = vector.load %arg1[%c0_184, %c6_185, %c1_186, %c0_187] : memref<1x18x18x144xf32, #tpu.memory_space<vmem>>, vector<1x1x16x144xf32>
    %217 = vector.shape_cast %216 : vector<1x1x16x144xf32> to vector<16x144xf32>
    %218 = arith.mulf %217, %32 : vector<16x144xf32>
    %219 = arith.addf %215, %218 : vector<16x144xf32>
    %c0_188 = arith.constant 0 : index
    %c6_189 = arith.constant 6 : index
    %c2_190 = arith.constant 2 : index
    %c0_191 = arith.constant 0 : index
    %220 = vector.load %arg1[%c0_188, %c6_189, %c2_190, %c0_191] : memref<1x18x18x144xf32, #tpu.memory_space<vmem>>, vector<1x1x16x144xf32>
    %221 = vector.shape_cast %220 : vector<1x1x16x144xf32> to vector<16x144xf32>
    %222 = arith.mulf %221, %36 : vector<16x144xf32>
    %223 = arith.addf %219, %222 : vector<16x144xf32>
    %c0_192 = arith.constant 0 : index
    %c4_193 = arith.constant 4 : index
    %c0_194 = arith.constant 0 : index
    %c0_195 = arith.constant 0 : index
    %224 = vector.load %arg3[%c0_192, %c4_193, %c0_194, %c0_195] : memref<1x16x16x144xf32, #tpu.memory_space<vmem>>, vector<1x1x16x144xf32>
    %225 = vector.shape_cast %224 : vector<1x1x16x144xf32> to vector<16x144xf32>
    %226 = vector.shape_cast %223 : vector<16x144xf32> to vector<1x1x16x144xf32>
    tpu.vector_store %arg3[%c0_192, %c4_193, %c0_194, %c0_195], %226 {strides = array<i32>} : memref<1x16x16x144xf32, #tpu.memory_space<vmem>>, vector<1x1x16x144xf32>,
    %c0_196 = arith.constant 0 : index
    %c5_197 = arith.constant 5 : index
    %c0_198 = arith.constant 0 : index
    %c0_199 = arith.constant 0 : index
    %227 = vector.load %arg1[%c0_196, %c5_197, %c0_198, %c0_199] : memref<1x18x18x144xf32, #tpu.memory_space<vmem>>, vector<1x1x16x144xf32>
    %228 = vector.shape_cast %227 : vector<1x1x16x144xf32> to vector<16x144xf32>
    %229 = arith.mulf %228, %4 : vector<16x144xf32>
    %c0_200 = arith.constant 0 : index
    %c5_201 = arith.constant 5 : index
    %c1_202 = arith.constant 1 : index
    %c0_203 = arith.constant 0 : index
    %230 = vector.load %arg1[%c0_200, %c5_201, %c1_202, %c0_203] : memref<1x18x18x144xf32, #tpu.memory_space<vmem>>, vector<1x1x16x144xf32>
    %231 = vector.shape_cast %230 : vector<1x1x16x144xf32> to vector<16x144xf32>
    %232 = arith.mulf %231, %8 : vector<16x144xf32>
    %233 = arith.addf %229, %232 : vector<16x144xf32>
    %c0_204 = arith.constant 0 : index
    %c5_205 = arith.constant 5 : index
    %c2_206 = arith.constant 2 : index
    %c0_207 = arith.constant 0 : index
    %234 = vector.load %arg1[%c0_204, %c5_205, %c2_206, %c0_207] : memref<1x18x18x144xf32, #tpu.memory_space<vmem>>, vector<1x1x16x144xf32>
    %235 = vector.shape_cast %234 : vector<1x1x16x144xf32> to vector<16x144xf32>
    %236 = arith.mulf %235, %12 : vector<16x144xf32>
    %237 = arith.addf %233, %236 : vector<16x144xf32>
    %c0_208 = arith.constant 0 : index
    %c6_209 = arith.constant 6 : index
    %c0_210 = arith.constant 0 : index
    %c0_211 = arith.constant 0 : index
    %238 = vector.load %arg1[%c0_208, %c6_209, %c0_210, %c0_211] : memref<1x18x18x144xf32, #tpu.memory_space<vmem>>, vector<1x1x16x144xf32>
    %239 = vector.shape_cast %238 : vector<1x1x16x144xf32> to vector<16x144xf32>
    %240 = arith.mulf %239, %16 : vector<16x144xf32>
    %241 = arith.addf %237, %240 : vector<16x144xf32>
    %c0_212 = arith.constant 0 : index
    %c6_213 = arith.constant 6 : index
    %c1_214 = arith.constant 1 : index
    %c0_215 = arith.constant 0 : index
    %242 = vector.load %arg1[%c0_212, %c6_213, %c1_214, %c0_215] : memref<1x18x18x144xf32, #tpu.memory_space<vmem>>, vector<1x1x16x144xf32>
    %243 = vector.shape_cast %242 : vector<1x1x16x144xf32> to vector<16x144xf32>
    %244 = arith.mulf %243, %20 : vector<16x144xf32>
    %245 = arith.addf %241, %244 : vector<16x144xf32>
    %c0_216 = arith.constant 0 : index
    %c6_217 = arith.constant 6 : index
    %c2_218 = arith.constant 2 : index
    %c0_219 = arith.constant 0 : index
    %246 = vector.load %arg1[%c0_216, %c6_217, %c2_218, %c0_219] : memref<1x18x18x144xf32, #tpu.memory_space<vmem>>, vector<1x1x16x144xf32>
    %247 = vector.shape_cast %246 : vector<1x1x16x144xf32> to vector<16x144xf32>
    %248 = arith.mulf %247, %24 : vector<16x144xf32>
    %249 = arith.addf %245, %248 : vector<16x144xf32>
    %c0_220 = arith.constant 0 : index
    %c7 = arith.constant 7 : index
    %c0_221 = arith.constant 0 : index
    %c0_222 = arith.constant 0 : index
    %250 = vector.load %arg1[%c0_220, %c7, %c0_221, %c0_222] : memref<1x18x18x144xf32, #tpu.memory_space<vmem>>, vector<1x1x16x144xf32>
    %251 = vector.shape_cast %250 : vector<1x1x16x144xf32> to vector<16x144xf32>
    %252 = arith.mulf %251, %28 : vector<16x144xf32>
    %253 = arith.addf %249, %252 : vector<16x144xf32>
    %c0_223 = arith.constant 0 : index
    %c7_224 = arith.constant 7 : index
    %c1_225 = arith.constant 1 : index
    %c0_226 = arith.constant 0 : index
    %254 = vector.load %arg1[%c0_223, %c7_224, %c1_225, %c0_226] : memref<1x18x18x144xf32, #tpu.memory_space<vmem>>, vector<1x1x16x144xf32>
    %255 = vector.shape_cast %254 : vector<1x1x16x144xf32> to vector<16x144xf32>
    %256 = arith.mulf %255, %32 : vector<16x144xf32>
    %257 = arith.addf %253, %256 : vector<16x144xf32>
    %c0_227 = arith.constant 0 : index
    %c7_228 = arith.constant 7 : index
    %c2_229 = arith.constant 2 : index
    %c0_230 = arith.constant 0 : index
    %258 = vector.load %arg1[%c0_227, %c7_228, %c2_229, %c0_230] : memref<1x18x18x144xf32, #tpu.memory_space<vmem>>, vector<1x1x16x144xf32>
    %259 = vector.shape_cast %258 : vector<1x1x16x144xf32> to vector<16x144xf32>
    %260 = arith.mulf %259, %36 : vector<16x144xf32>
    %261 = arith.addf %257, %260 : vector<16x144xf32>
    %c0_231 = arith.constant 0 : index
    %c5_232 = arith.constant 5 : index
    %c0_233 = arith.constant 0 : index
    %c0_234 = arith.constant 0 : index
    %262 = vector.load %arg3[%c0_231, %c5_232, %c0_233, %c0_234] : memref<1x16x16x144xf32, #tpu.memory_space<vmem>>, vector<1x1x16x144xf32>
    %263 = vector.shape_cast %262 : vector<1x1x16x144xf32> to vector<16x144xf32>
    %264 = vector.shape_cast %261 : vector<16x144xf32> to vector<1x1x16x144xf32>
    tpu.vector_store %arg3[%c0_231, %c5_232, %c0_233, %c0_234], %264 {strides = array<i32>} : memref<1x16x16x144xf32, #tpu.memory_space<vmem>>, vector<1x1x16x144xf32>,
    %c0_235 = arith.constant 0 : index
    %c6_236 = arith.constant 6 : index
    %c0_237 = arith.constant 0 : index
    %c0_238 = arith.constant 0 : index
    %265 = vector.load %arg1[%c0_235, %c6_236, %c0_237, %c0_238] : memref<1x18x18x144xf32, #tpu.memory_space<vmem>>, vector<1x1x16x144xf32>
    %266 = vector.shape_cast %265 : vector<1x1x16x144xf32> to vector<16x144xf32>
    %267 = arith.mulf %266, %4 : vector<16x144xf32>
    %c0_239 = arith.constant 0 : index
    %c6_240 = arith.constant 6 : index
    %c1_241 = arith.constant 1 : index
    %c0_242 = arith.constant 0 : index
    %268 = vector.load %arg1[%c0_239, %c6_240, %c1_241, %c0_242] : memref<1x18x18x144xf32, #tpu.memory_space<vmem>>, vector<1x1x16x144xf32>
    %269 = vector.shape_cast %268 : vector<1x1x16x144xf32> to vector<16x144xf32>
    %270 = arith.mulf %269, %8 : vector<16x144xf32>
    %271 = arith.addf %267, %270 : vector<16x144xf32>
    %c0_243 = arith.constant 0 : index
    %c6_244 = arith.constant 6 : index
    %c2_245 = arith.constant 2 : index
    %c0_246 = arith.constant 0 : index
    %272 = vector.load %arg1[%c0_243, %c6_244, %c2_245, %c0_246] : memref<1x18x18x144xf32, #tpu.memory_space<vmem>>, vector<1x1x16x144xf32>
    %273 = vector.shape_cast %272 : vector<1x1x16x144xf32> to vector<16x144xf32>
    %274 = arith.mulf %273, %12 : vector<16x144xf32>
    %275 = arith.addf %271, %274 : vector<16x144xf32>
    %c0_247 = arith.constant 0 : index
    %c7_248 = arith.constant 7 : index
    %c0_249 = arith.constant 0 : index
    %c0_250 = arith.constant 0 : index
    %276 = vector.load %arg1[%c0_247, %c7_248, %c0_249, %c0_250] : memref<1x18x18x144xf32, #tpu.memory_space<vmem>>, vector<1x1x16x144xf32>
    %277 = vector.shape_cast %276 : vector<1x1x16x144xf32> to vector<16x144xf32>
    %278 = arith.mulf %277, %16 : vector<16x144xf32>
    %279 = arith.addf %275, %278 : vector<16x144xf32>
    %c0_251 = arith.constant 0 : index
    %c7_252 = arith.constant 7 : index
    %c1_253 = arith.constant 1 : index
    %c0_254 = arith.constant 0 : index
    %280 = vector.load %arg1[%c0_251, %c7_252, %c1_253, %c0_254] : memref<1x18x18x144xf32, #tpu.memory_space<vmem>>, vector<1x1x16x144xf32>
    %281 = vector.shape_cast %280 : vector<1x1x16x144xf32> to vector<16x144xf32>
    %282 = arith.mulf %281, %20 : vector<16x144xf32>
    %283 = arith.addf %279, %282 : vector<16x144xf32>
    %c0_255 = arith.constant 0 : index
    %c7_256 = arith.constant 7 : index
    %c2_257 = arith.constant 2 : index
    %c0_258 = arith.constant 0 : index
    %284 = vector.load %arg1[%c0_255, %c7_256, %c2_257, %c0_258] : memref<1x18x18x144xf32, #tpu.memory_space<vmem>>, vector<1x1x16x144xf32>
    %285 = vector.shape_cast %284 : vector<1x1x16x144xf32> to vector<16x144xf32>
    %286 = arith.mulf %285, %24 : vector<16x144xf32>
    %287 = arith.addf %283, %286 : vector<16x144xf32>
    %c0_259 = arith.constant 0 : index
    %c8 = arith.constant 8 : index
    %c0_260 = arith.constant 0 : index
    %c0_261 = arith.constant 0 : index
    %288 = vector.load %arg1[%c0_259, %c8, %c0_260, %c0_261] : memref<1x18x18x144xf32, #tpu.memory_space<vmem>>, vector<1x1x16x144xf32>
    %289 = vector.shape_cast %288 : vector<1x1x16x144xf32> to vector<16x144xf32>
    %290 = arith.mulf %289, %28 : vector<16x144xf32>
    %291 = arith.addf %287, %290 : vector<16x144xf32>
    %c0_262 = arith.constant 0 : index
    %c8_263 = arith.constant 8 : index
    %c1_264 = arith.constant 1 : index
    %c0_265 = arith.constant 0 : index
    %292 = vector.load %arg1[%c0_262, %c8_263, %c1_264, %c0_265] : memref<1x18x18x144xf32, #tpu.memory_space<vmem>>, vector<1x1x16x144xf32>
    %293 = vector.shape_cast %292 : vector<1x1x16x144xf32> to vector<16x144xf32>
    %294 = arith.mulf %293, %32 : vector<16x144xf32>
    %295 = arith.addf %291, %294 : vector<16x144xf32>
    %c0_266 = arith.constant 0 : index
    %c8_267 = arith.constant 8 : index
    %c2_268 = arith.constant 2 : index
    %c0_269 = arith.constant 0 : index
    %296 = vector.load %arg1[%c0_266, %c8_267, %c2_268, %c0_269] : memref<1x18x18x144xf32, #tpu.memory_space<vmem>>, vector<1x1x16x144xf32>
    %297 = vector.shape_cast %296 : vector<1x1x16x144xf32> to vector<16x144xf32>
    %298 = arith.mulf %297, %36 : vector<16x144xf32>
    %299 = arith.addf %295, %298 : vector<16x144xf32>
    %c0_270 = arith.constant 0 : index
    %c6_271 = arith.constant 6 : index
    %c0_272 = arith.constant 0 : index
    %c0_273 = arith.constant 0 : index
    %300 = vector.load %arg3[%c0_270, %c6_271, %c0_272, %c0_273] : memref<1x16x16x144xf32, #tpu.memory_space<vmem>>, vector<1x1x16x144xf32>
    %301 = vector.shape_cast %300 : vector<1x1x16x144xf32> to vector<16x144xf32>
    %302 = vector.shape_cast %299 : vector<16x144xf32> to vector<1x1x16x144xf32>
    tpu.vector_store %arg3[%c0_270, %c6_271, %c0_272, %c0_273], %302 {strides = array<i32>} : memref<1x16x16x144xf32, #tpu.memory_space<vmem>>, vector<1x1x16x144xf32>,
    %c0_274 = arith.constant 0 : index
    %c7_275 = arith.constant 7 : index
    %c0_276 = arith.constant 0 : index
    %c0_277 = arith.constant 0 : index
    %303 = vector.load %arg1[%c0_274, %c7_275, %c0_276, %c0_277] : memref<1x18x18x144xf32, #tpu.memory_space<vmem>>, vector<1x1x16x144xf32>
    %304 = vector.shape_cast %303 : vector<1x1x16x144xf32> to vector<16x144xf32>
    %305 = arith.mulf %304, %4 : vector<16x144xf32>
    %c0_278 = arith.constant 0 : index
    %c7_279 = arith.constant 7 : index
    %c1_280 = arith.constant 1 : index
    %c0_281 = arith.constant 0 : index
    %306 = vector.load %arg1[%c0_278, %c7_279, %c1_280, %c0_281] : memref<1x18x18x144xf32, #tpu.memory_space<vmem>>, vector<1x1x16x144xf32>
    %307 = vector.shape_cast %306 : vector<1x1x16x144xf32> to vector<16x144xf32>
    %308 = arith.mulf %307, %8 : vector<16x144xf32>
    %309 = arith.addf %305, %308 : vector<16x144xf32>
    %c0_282 = arith.constant 0 : index
    %c7_283 = arith.constant 7 : index
    %c2_284 = arith.constant 2 : index
    %c0_285 = arith.constant 0 : index
    %310 = vector.load %arg1[%c0_282, %c7_283, %c2_284, %c0_285] : memref<1x18x18x144xf32, #tpu.memory_space<vmem>>, vector<1x1x16x144xf32>
    %311 = vector.shape_cast %310 : vector<1x1x16x144xf32> to vector<16x144xf32>
    %312 = arith.mulf %311, %12 : vector<16x144xf32>
    %313 = arith.addf %309, %312 : vector<16x144xf32>
    %c0_286 = arith.constant 0 : index
    %c8_287 = arith.constant 8 : index
    %c0_288 = arith.constant 0 : index
    %c0_289 = arith.constant 0 : index
    %314 = vector.load %arg1[%c0_286, %c8_287, %c0_288, %c0_289] : memref<1x18x18x144xf32, #tpu.memory_space<vmem>>, vector<1x1x16x144xf32>
    %315 = vector.shape_cast %314 : vector<1x1x16x144xf32> to vector<16x144xf32>
    %316 = arith.mulf %315, %16 : vector<16x144xf32>
    %317 = arith.addf %313, %316 : vector<16x144xf32>
    %c0_290 = arith.constant 0 : index
    %c8_291 = arith.constant 8 : index
    %c1_292 = arith.constant 1 : index
    %c0_293 = arith.constant 0 : index
    %318 = vector.load %arg1[%c0_290, %c8_291, %c1_292, %c0_293] : memref<1x18x18x144xf32, #tpu.memory_space<vmem>>, vector<1x1x16x144xf32>
    %319 = vector.shape_cast %318 : vector<1x1x16x144xf32> to vector<16x144xf32>
    %320 = arith.mulf %319, %20 : vector<16x144xf32>
    %321 = arith.addf %317, %320 : vector<16x144xf32>
    %c0_294 = arith.constant 0 : index
    %c8_295 = arith.constant 8 : index
    %c2_296 = arith.constant 2 : index
    %c0_297 = arith.constant 0 : index
    %322 = vector.load %arg1[%c0_294, %c8_295, %c2_296, %c0_297] : memref<1x18x18x144xf32, #tpu.memory_space<vmem>>, vector<1x1x16x144xf32>
    %323 = vector.shape_cast %322 : vector<1x1x16x144xf32> to vector<16x144xf32>
    %324 = arith.mulf %323, %24 : vector<16x144xf32>
    %325 = arith.addf %321, %324 : vector<16x144xf32>
    %c0_298 = arith.constant 0 : index
    %c9 = arith.constant 9 : index
    %c0_299 = arith.constant 0 : index
    %c0_300 = arith.constant 0 : index
    %326 = vector.load %arg1[%c0_298, %c9, %c0_299, %c0_300] : memref<1x18x18x144xf32, #tpu.memory_space<vmem>>, vector<1x1x16x144xf32>
    %327 = vector.shape_cast %326 : vector<1x1x16x144xf32> to vector<16x144xf32>
    %328 = arith.mulf %327, %28 : vector<16x144xf32>
    %329 = arith.addf %325, %328 : vector<16x144xf32>
    %c0_301 = arith.constant 0 : index
    %c9_302 = arith.constant 9 : index
    %c1_303 = arith.constant 1 : index
    %c0_304 = arith.constant 0 : index
    %330 = vector.load %arg1[%c0_301, %c9_302, %c1_303, %c0_304] : memref<1x18x18x144xf32, #tpu.memory_space<vmem>>, vector<1x1x16x144xf32>
    %331 = vector.shape_cast %330 : vector<1x1x16x144xf32> to vector<16x144xf32>
    %332 = arith.mulf %331, %32 : vector<16x144xf32>
    %333 = arith.addf %329, %332 : vector<16x144xf32>
    %c0_305 = arith.constant 0 : index
    %c9_306 = arith.constant 9 : index
    %c2_307 = arith.constant 2 : index
    %c0_308 = arith.constant 0 : index
    %334 = vector.load %arg1[%c0_305, %c9_306, %c2_307, %c0_308] : memref<1x18x18x144xf32, #tpu.memory_space<vmem>>, vector<1x1x16x144xf32>
    %335 = vector.shape_cast %334 : vector<1x1x16x144xf32> to vector<16x144xf32>
    %336 = arith.mulf %335, %36 : vector<16x144xf32>
    %337 = arith.addf %333, %336 : vector<16x144xf32>
    %c0_309 = arith.constant 0 : index
    %c7_310 = arith.constant 7 : index
    %c0_311 = arith.constant 0 : index
    %c0_312 = arith.constant 0 : index
    %338 = vector.load %arg3[%c0_309, %c7_310, %c0_311, %c0_312] : memref<1x16x16x144xf32, #tpu.memory_space<vmem>>, vector<1x1x16x144xf32>
    %339 = vector.shape_cast %338 : vector<1x1x16x144xf32> to vector<16x144xf32>
    %340 = vector.shape_cast %337 : vector<16x144xf32> to vector<1x1x16x144xf32>
    tpu.vector_store %arg3[%c0_309, %c7_310, %c0_311, %c0_312], %340 {strides = array<i32>} : memref<1x16x16x144xf32, #tpu.memory_space<vmem>>, vector<1x1x16x144xf32>,
    %c0_313 = arith.constant 0 : index
    %c8_314 = arith.constant 8 : index
    %c0_315 = arith.constant 0 : index
    %c0_316 = arith.constant 0 : index
    %341 = vector.load %arg1[%c0_313, %c8_314, %c0_315, %c0_316] : memref<1x18x18x144xf32, #tpu.memory_space<vmem>>, vector<1x1x16x144xf32>
    %342 = vector.shape_cast %341 : vector<1x1x16x144xf32> to vector<16x144xf32>
    %343 = arith.mulf %342, %4 : vector<16x144xf32>
    %c0_317 = arith.constant 0 : index
    %c8_318 = arith.constant 8 : index
    %c1_319 = arith.constant 1 : index
    %c0_320 = arith.constant 0 : index
    %344 = vector.load %arg1[%c0_317, %c8_318, %c1_319, %c0_320] : memref<1x18x18x144xf32, #tpu.memory_space<vmem>>, vector<1x1x16x144xf32>
    %345 = vector.shape_cast %344 : vector<1x1x16x144xf32> to vector<16x144xf32>
    %346 = arith.mulf %345, %8 : vector<16x144xf32>
    %347 = arith.addf %343, %346 : vector<16x144xf32>
    %c0_321 = arith.constant 0 : index
    %c8_322 = arith.constant 8 : index
    %c2_323 = arith.constant 2 : index
    %c0_324 = arith.constant 0 : index
    %348 = vector.load %arg1[%c0_321, %c8_322, %c2_323, %c0_324] : memref<1x18x18x144xf32, #tpu.memory_space<vmem>>, vector<1x1x16x144xf32>
    %349 = vector.shape_cast %348 : vector<1x1x16x144xf32> to vector<16x144xf32>
    %350 = arith.mulf %349, %12 : vector<16x144xf32>
    %351 = arith.addf %347, %350 : vector<16x144xf32>
    %c0_325 = arith.constant 0 : index
    %c9_326 = arith.constant 9 : index
    %c0_327 = arith.constant 0 : index
    %c0_328 = arith.constant 0 : index
    %352 = vector.load %arg1[%c0_325, %c9_326, %c0_327, %c0_328] : memref<1x18x18x144xf32, #tpu.memory_space<vmem>>, vector<1x1x16x144xf32>
    %353 = vector.shape_cast %352 : vector<1x1x16x144xf32> to vector<16x144xf32>
    %354 = arith.mulf %353, %16 : vector<16x144xf32>
    %355 = arith.addf %351, %354 : vector<16x144xf32>
    %c0_329 = arith.constant 0 : index
    %c9_330 = arith.constant 9 : index
    %c1_331 = arith.constant 1 : index
    %c0_332 = arith.constant 0 : index
    %356 = vector.load %arg1[%c0_329, %c9_330, %c1_331, %c0_332] : memref<1x18x18x144xf32, #tpu.memory_space<vmem>>, vector<1x1x16x144xf32>
    %357 = vector.shape_cast %356 : vector<1x1x16x144xf32> to vector<16x144xf32>
    %358 = arith.mulf %357, %20 : vector<16x144xf32>
    %359 = arith.addf %355, %358 : vector<16x144xf32>
    %c0_333 = arith.constant 0 : index
    %c9_334 = arith.constant 9 : index
    %c2_335 = arith.constant 2 : index
    %c0_336 = arith.constant 0 : index
    %360 = vector.load %arg1[%c0_333, %c9_334, %c2_335, %c0_336] : memref<1x18x18x144xf32, #tpu.memory_space<vmem>>, vector<1x1x16x144xf32>
    %361 = vector.shape_cast %360 : vector<1x1x16x144xf32> to vector<16x144xf32>
    %362 = arith.mulf %361, %24 : vector<16x144xf32>
    %363 = arith.addf %359, %362 : vector<16x144xf32>
    %c0_337 = arith.constant 0 : index
    %c10 = arith.constant 10 : index
    %c0_338 = arith.constant 0 : index
    %c0_339 = arith.constant 0 : index
    %364 = vector.load %arg1[%c0_337, %c10, %c0_338, %c0_339] : memref<1x18x18x144xf32, #tpu.memory_space<vmem>>, vector<1x1x16x144xf32>
    %365 = vector.shape_cast %364 : vector<1x1x16x144xf32> to vector<16x144xf32>
    %366 = arith.mulf %365, %28 : vector<16x144xf32>
    %367 = arith.addf %363, %366 : vector<16x144xf32>
    %c0_340 = arith.constant 0 : index
    %c10_341 = arith.constant 10 : index
    %c1_342 = arith.constant 1 : index
    %c0_343 = arith.constant 0 : index
    %368 = vector.load %arg1[%c0_340, %c10_341, %c1_342, %c0_343] : memref<1x18x18x144xf32, #tpu.memory_space<vmem>>, vector<1x1x16x144xf32>
    %369 = vector.shape_cast %368 : vector<1x1x16x144xf32> to vector<16x144xf32>
    %370 = arith.mulf %369, %32 : vector<16x144xf32>
    %371 = arith.addf %367, %370 : vector<16x144xf32>
    %c0_344 = arith.constant 0 : index
    %c10_345 = arith.constant 10 : index
    %c2_346 = arith.constant 2 : index
    %c0_347 = arith.constant 0 : index
    %372 = vector.load %arg1[%c0_344, %c10_345, %c2_346, %c0_347] : memref<1x18x18x144xf32, #tpu.memory_space<vmem>>, vector<1x1x16x144xf32>
    %373 = vector.shape_cast %372 : vector<1x1x16x144xf32> to vector<16x144xf32>
    %374 = arith.mulf %373, %36 : vector<16x144xf32>
    %375 = arith.addf %371, %374 : vector<16x144xf32>
    %c0_348 = arith.constant 0 : index
    %c8_349 = arith.constant 8 : index
    %c0_350 = arith.constant 0 : index
    %c0_351 = arith.constant 0 : index
    %376 = vector.load %arg3[%c0_348, %c8_349, %c0_350, %c0_351] : memref<1x16x16x144xf32, #tpu.memory_space<vmem>>, vector<1x1x16x144xf32>
    %377 = vector.shape_cast %376 : vector<1x1x16x144xf32> to vector<16x144xf32>
    %378 = vector.shape_cast %375 : vector<16x144xf32> to vector<1x1x16x144xf32>
    tpu.vector_store %arg3[%c0_348, %c8_349, %c0_350, %c0_351], %378 {strides = array<i32>} : memref<1x16x16x144xf32, #tpu.memory_space<vmem>>, vector<1x1x16x144xf32>,
    %c0_352 = arith.constant 0 : index
    %c9_353 = arith.constant 9 : index
    %c0_354 = arith.constant 0 : index
    %c0_355 = arith.constant 0 : index
    %379 = vector.load %arg1[%c0_352, %c9_353, %c0_354, %c0_355] : memref<1x18x18x144xf32, #tpu.memory_space<vmem>>, vector<1x1x16x144xf32>
    %380 = vector.shape_cast %379 : vector<1x1x16x144xf32> to vector<16x144xf32>
    %381 = arith.mulf %380, %4 : vector<16x144xf32>
    %c0_356 = arith.constant 0 : index
    %c9_357 = arith.constant 9 : index
    %c1_358 = arith.constant 1 : index
    %c0_359 = arith.constant 0 : index
    %382 = vector.load %arg1[%c0_356, %c9_357, %c1_358, %c0_359] : memref<1x18x18x144xf32, #tpu.memory_space<vmem>>, vector<1x1x16x144xf32>
    %383 = vector.shape_cast %382 : vector<1x1x16x144xf32> to vector<16x144xf32>
    %384 = arith.mulf %383, %8 : vector<16x144xf32>
    %385 = arith.addf %381, %384 : vector<16x144xf32>
    %c0_360 = arith.constant 0 : index
    %c9_361 = arith.constant 9 : index
    %c2_362 = arith.constant 2 : index
    %c0_363 = arith.constant 0 : index
    %386 = vector.load %arg1[%c0_360, %c9_361, %c2_362, %c0_363] : memref<1x18x18x144xf32, #tpu.memory_space<vmem>>, vector<1x1x16x144xf32>
    %387 = vector.shape_cast %386 : vector<1x1x16x144xf32> to vector<16x144xf32>
    %388 = arith.mulf %387, %12 : vector<16x144xf32>
    %389 = arith.addf %385, %388 : vector<16x144xf32>
    %c0_364 = arith.constant 0 : index
    %c10_365 = arith.constant 10 : index
    %c0_366 = arith.constant 0 : index
    %c0_367 = arith.constant 0 : index
    %390 = vector.load %arg1[%c0_364, %c10_365, %c0_366, %c0_367] : memref<1x18x18x144xf32, #tpu.memory_space<vmem>>, vector<1x1x16x144xf32>
    %391 = vector.shape_cast %390 : vector<1x1x16x144xf32> to vector<16x144xf32>
    %392 = arith.mulf %391, %16 : vector<16x144xf32>
    %393 = arith.addf %389, %392 : vector<16x144xf32>
    %c0_368 = arith.constant 0 : index
    %c10_369 = arith.constant 10 : index
    %c1_370 = arith.constant 1 : index
    %c0_371 = arith.constant 0 : index
    %394 = vector.load %arg1[%c0_368, %c10_369, %c1_370, %c0_371] : memref<1x18x18x144xf32, #tpu.memory_space<vmem>>, vector<1x1x16x144xf32>
    %395 = vector.shape_cast %394 : vector<1x1x16x144xf32> to vector<16x144xf32>
    %396 = arith.mulf %395, %20 : vector<16x144xf32>
    %397 = arith.addf %393, %396 : vector<16x144xf32>
    %c0_372 = arith.constant 0 : index
    %c10_373 = arith.constant 10 : index
    %c2_374 = arith.constant 2 : index
    %c0_375 = arith.constant 0 : index
    %398 = vector.load %arg1[%c0_372, %c10_373, %c2_374, %c0_375] : memref<1x18x18x144xf32, #tpu.memory_space<vmem>>, vector<1x1x16x144xf32>
    %399 = vector.shape_cast %398 : vector<1x1x16x144xf32> to vector<16x144xf32>
    %400 = arith.mulf %399, %24 : vector<16x144xf32>
    %401 = arith.addf %397, %400 : vector<16x144xf32>
    %c0_376 = arith.constant 0 : index
    %c11 = arith.constant 11 : index
    %c0_377 = arith.constant 0 : index
    %c0_378 = arith.constant 0 : index
    %402 = vector.load %arg1[%c0_376, %c11, %c0_377, %c0_378] : memref<1x18x18x144xf32, #tpu.memory_space<vmem>>, vector<1x1x16x144xf32>
    %403 = vector.shape_cast %402 : vector<1x1x16x144xf32> to vector<16x144xf32>
    %404 = arith.mulf %403, %28 : vector<16x144xf32>
    %405 = arith.addf %401, %404 : vector<16x144xf32>
    %c0_379 = arith.constant 0 : index
    %c11_380 = arith.constant 11 : index
    %c1_381 = arith.constant 1 : index
    %c0_382 = arith.constant 0 : index
    %406 = vector.load %arg1[%c0_379, %c11_380, %c1_381, %c0_382] : memref<1x18x18x144xf32, #tpu.memory_space<vmem>>, vector<1x1x16x144xf32>
    %407 = vector.shape_cast %406 : vector<1x1x16x144xf32> to vector<16x144xf32>
    %408 = arith.mulf %407, %32 : vector<16x144xf32>
    %409 = arith.addf %405, %408 : vector<16x144xf32>
    %c0_383 = arith.constant 0 : index
    %c11_384 = arith.constant 11 : index
    %c2_385 = arith.constant 2 : index
    %c0_386 = arith.constant 0 : index
    %410 = vector.load %arg1[%c0_383, %c11_384, %c2_385, %c0_386] : memref<1x18x18x144xf32, #tpu.memory_space<vmem>>, vector<1x1x16x144xf32>
    %411 = vector.shape_cast %410 : vector<1x1x16x144xf32> to vector<16x144xf32>
    %412 = arith.mulf %411, %36 : vector<16x144xf32>
    %413 = arith.addf %409, %412 : vector<16x144xf32>
    %c0_387 = arith.constant 0 : index
    %c9_388 = arith.constant 9 : index
    %c0_389 = arith.constant 0 : index
    %c0_390 = arith.constant 0 : index
    %414 = vector.load %arg3[%c0_387, %c9_388, %c0_389, %c0_390] : memref<1x16x16x144xf32, #tpu.memory_space<vmem>>, vector<1x1x16x144xf32>
    %415 = vector.shape_cast %414 : vector<1x1x16x144xf32> to vector<16x144xf32>
    %416 = vector.shape_cast %413 : vector<16x144xf32> to vector<1x1x16x144xf32>
    tpu.vector_store %arg3[%c0_387, %c9_388, %c0_389, %c0_390], %416 {strides = array<i32>} : memref<1x16x16x144xf32, #tpu.memory_space<vmem>>, vector<1x1x16x144xf32>,
    %c0_391 = arith.constant 0 : index
    %c10_392 = arith.constant 10 : index
    %c0_393 = arith.constant 0 : index
    %c0_394 = arith.constant 0 : index
    %417 = vector.load %arg1[%c0_391, %c10_392, %c0_393, %c0_394] : memref<1x18x18x144xf32, #tpu.memory_space<vmem>>, vector<1x1x16x144xf32>
    %418 = vector.shape_cast %417 : vector<1x1x16x144xf32> to vector<16x144xf32>
    %419 = arith.mulf %418, %4 : vector<16x144xf32>
    %c0_395 = arith.constant 0 : index
    %c10_396 = arith.constant 10 : index
    %c1_397 = arith.constant 1 : index
    %c0_398 = arith.constant 0 : index
    %420 = vector.load %arg1[%c0_395, %c10_396, %c1_397, %c0_398] : memref<1x18x18x144xf32, #tpu.memory_space<vmem>>, vector<1x1x16x144xf32>
    %421 = vector.shape_cast %420 : vector<1x1x16x144xf32> to vector<16x144xf32>
    %422 = arith.mulf %421, %8 : vector<16x144xf32>
    %423 = arith.addf %419, %422 : vector<16x144xf32>
    %c0_399 = arith.constant 0 : index
    %c10_400 = arith.constant 10 : index
    %c2_401 = arith.constant 2 : index
    %c0_402 = arith.constant 0 : index
    %424 = vector.load %arg1[%c0_399, %c10_400, %c2_401, %c0_402] : memref<1x18x18x144xf32, #tpu.memory_space<vmem>>, vector<1x1x16x144xf32>
    %425 = vector.shape_cast %424 : vector<1x1x16x144xf32> to vector<16x144xf32>
    %426 = arith.mulf %425, %12 : vector<16x144xf32>
    %427 = arith.addf %423, %426 : vector<16x144xf32>
    %c0_403 = arith.constant 0 : index
    %c11_404 = arith.constant 11 : index
    %c0_405 = arith.constant 0 : index
    %c0_406 = arith.constant 0 : index
    %428 = vector.load %arg1[%c0_403, %c11_404, %c0_405, %c0_406] : memref<1x18x18x144xf32, #tpu.memory_space<vmem>>, vector<1x1x16x144xf32>
    %429 = vector.shape_cast %428 : vector<1x1x16x144xf32> to vector<16x144xf32>
    %430 = arith.mulf %429, %16 : vector<16x144xf32>
    %431 = arith.addf %427, %430 : vector<16x144xf32>
    %c0_407 = arith.constant 0 : index
    %c11_408 = arith.constant 11 : index
    %c1_409 = arith.constant 1 : index
    %c0_410 = arith.constant 0 : index
    %432 = vector.load %arg1[%c0_407, %c11_408, %c1_409, %c0_410] : memref<1x18x18x144xf32, #tpu.memory_space<vmem>>, vector<1x1x16x144xf32>
    %433 = vector.shape_cast %432 : vector<1x1x16x144xf32> to vector<16x144xf32>
    %434 = arith.mulf %433, %20 : vector<16x144xf32>
    %435 = arith.addf %431, %434 : vector<16x144xf32>
    %c0_411 = arith.constant 0 : index
    %c11_412 = arith.constant 11 : index
    %c2_413 = arith.constant 2 : index
    %c0_414 = arith.constant 0 : index
    %436 = vector.load %arg1[%c0_411, %c11_412, %c2_413, %c0_414] : memref<1x18x18x144xf32, #tpu.memory_space<vmem>>, vector<1x1x16x144xf32>
    %437 = vector.shape_cast %436 : vector<1x1x16x144xf32> to vector<16x144xf32>
    %438 = arith.mulf %437, %24 : vector<16x144xf32>
    %439 = arith.addf %435, %438 : vector<16x144xf32>
    %c0_415 = arith.constant 0 : index
    %c12 = arith.constant 12 : index
    %c0_416 = arith.constant 0 : index
    %c0_417 = arith.constant 0 : index
    %440 = vector.load %arg1[%c0_415, %c12, %c0_416, %c0_417] : memref<1x18x18x144xf32, #tpu.memory_space<vmem>>, vector<1x1x16x144xf32>
    %441 = vector.shape_cast %440 : vector<1x1x16x144xf32> to vector<16x144xf32>
    %442 = arith.mulf %441, %28 : vector<16x144xf32>
    %443 = arith.addf %439, %442 : vector<16x144xf32>
    %c0_418 = arith.constant 0 : index
    %c12_419 = arith.constant 12 : index
    %c1_420 = arith.constant 1 : index
    %c0_421 = arith.constant 0 : index
    %444 = vector.load %arg1[%c0_418, %c12_419, %c1_420, %c0_421] : memref<1x18x18x144xf32, #tpu.memory_space<vmem>>, vector<1x1x16x144xf32>
    %445 = vector.shape_cast %444 : vector<1x1x16x144xf32> to vector<16x144xf32>
    %446 = arith.mulf %445, %32 : vector<16x144xf32>
    %447 = arith.addf %443, %446 : vector<16x144xf32>
    %c0_422 = arith.constant 0 : index
    %c12_423 = arith.constant 12 : index
    %c2_424 = arith.constant 2 : index
    %c0_425 = arith.constant 0 : index
    %448 = vector.load %arg1[%c0_422, %c12_423, %c2_424, %c0_425] : memref<1x18x18x144xf32, #tpu.memory_space<vmem>>, vector<1x1x16x144xf32>
    %449 = vector.shape_cast %448 : vector<1x1x16x144xf32> to vector<16x144xf32>
    %450 = arith.mulf %449, %36 : vector<16x144xf32>
    %451 = arith.addf %447, %450 : vector<16x144xf32>
    %c0_426 = arith.constant 0 : index
    %c10_427 = arith.constant 10 : index
    %c0_428 = arith.constant 0 : index
    %c0_429 = arith.constant 0 : index
    %452 = vector.load %arg3[%c0_426, %c10_427, %c0_428, %c0_429] : memref<1x16x16x144xf32, #tpu.memory_space<vmem>>, vector<1x1x16x144xf32>
    %453 = vector.shape_cast %452 : vector<1x1x16x144xf32> to vector<16x144xf32>
    %454 = vector.shape_cast %451 : vector<16x144xf32> to vector<1x1x16x144xf32>
    tpu.vector_store %arg3[%c0_426, %c10_427, %c0_428, %c0_429], %454 {strides = array<i32>} : memref<1x16x16x144xf32, #tpu.memory_space<vmem>>, vector<1x1x16x144xf32>,
    %c0_430 = arith.constant 0 : index
    %c11_431 = arith.constant 11 : index
    %c0_432 = arith.constant 0 : index
    %c0_433 = arith.constant 0 : index
    %455 = vector.load %arg1[%c0_430, %c11_431, %c0_432, %c0_433] : memref<1x18x18x144xf32, #tpu.memory_space<vmem>>, vector<1x1x16x144xf32>
    %456 = vector.shape_cast %455 : vector<1x1x16x144xf32> to vector<16x144xf32>
    %457 = arith.mulf %456, %4 : vector<16x144xf32>
    %c0_434 = arith.constant 0 : index
    %c11_435 = arith.constant 11 : index
    %c1_436 = arith.constant 1 : index
    %c0_437 = arith.constant 0 : index
    %458 = vector.load %arg1[%c0_434, %c11_435, %c1_436, %c0_437] : memref<1x18x18x144xf32, #tpu.memory_space<vmem>>, vector<1x1x16x144xf32>
    %459 = vector.shape_cast %458 : vector<1x1x16x144xf32> to vector<16x144xf32>
    %460 = arith.mulf %459, %8 : vector<16x144xf32>
    %461 = arith.addf %457, %460 : vector<16x144xf32>
    %c0_438 = arith.constant 0 : index
    %c11_439 = arith.constant 11 : index
    %c2_440 = arith.constant 2 : index
    %c0_441 = arith.constant 0 : index
    %462 = vector.load %arg1[%c0_438, %c11_439, %c2_440, %c0_441] : memref<1x18x18x144xf32, #tpu.memory_space<vmem>>, vector<1x1x16x144xf32>
    %463 = vector.shape_cast %462 : vector<1x1x16x144xf32> to vector<16x144xf32>
    %464 = arith.mulf %463, %12 : vector<16x144xf32>
    %465 = arith.addf %461, %464 : vector<16x144xf32>
    %c0_442 = arith.constant 0 : index
    %c12_443 = arith.constant 12 : index
    %c0_444 = arith.constant 0 : index
    %c0_445 = arith.constant 0 : index
    %466 = vector.load %arg1[%c0_442, %c12_443, %c0_444, %c0_445] : memref<1x18x18x144xf32, #tpu.memory_space<vmem>>, vector<1x1x16x144xf32>
    %467 = vector.shape_cast %466 : vector<1x1x16x144xf32> to vector<16x144xf32>
    %468 = arith.mulf %467, %16 : vector<16x144xf32>
    %469 = arith.addf %465, %468 : vector<16x144xf32>
    %c0_446 = arith.constant 0 : index
    %c12_447 = arith.constant 12 : index
    %c1_448 = arith.constant 1 : index
    %c0_449 = arith.constant 0 : index
    %470 = vector.load %arg1[%c0_446, %c12_447, %c1_448, %c0_449] : memref<1x18x18x144xf32, #tpu.memory_space<vmem>>, vector<1x1x16x144xf32>
    %471 = vector.shape_cast %470 : vector<1x1x16x144xf32> to vector<16x144xf32>
    %472 = arith.mulf %471, %20 : vector<16x144xf32>
    %473 = arith.addf %469, %472 : vector<16x144xf32>
    %c0_450 = arith.constant 0 : index
    %c12_451 = arith.constant 12 : index
    %c2_452 = arith.constant 2 : index
    %c0_453 = arith.constant 0 : index
    %474 = vector.load %arg1[%c0_450, %c12_451, %c2_452, %c0_453] : memref<1x18x18x144xf32, #tpu.memory_space<vmem>>, vector<1x1x16x144xf32>
    %475 = vector.shape_cast %474 : vector<1x1x16x144xf32> to vector<16x144xf32>
    %476 = arith.mulf %475, %24 : vector<16x144xf32>
    %477 = arith.addf %473, %476 : vector<16x144xf32>
    %c0_454 = arith.constant 0 : index
    %c13 = arith.constant 13 : index
    %c0_455 = arith.constant 0 : index
    %c0_456 = arith.constant 0 : index
    %478 = vector.load %arg1[%c0_454, %c13, %c0_455, %c0_456] : memref<1x18x18x144xf32, #tpu.memory_space<vmem>>, vector<1x1x16x144xf32>
    %479 = vector.shape_cast %478 : vector<1x1x16x144xf32> to vector<16x144xf32>
    %480 = arith.mulf %479, %28 : vector<16x144xf32>
    %481 = arith.addf %477, %480 : vector<16x144xf32>
    %c0_457 = arith.constant 0 : index
    %c13_458 = arith.constant 13 : index
    %c1_459 = arith.constant 1 : index
    %c0_460 = arith.constant 0 : index
    %482 = vector.load %arg1[%c0_457, %c13_458, %c1_459, %c0_460] : memref<1x18x18x144xf32, #tpu.memory_space<vmem>>, vector<1x1x16x144xf32>
    %483 = vector.shape_cast %482 : vector<1x1x16x144xf32> to vector<16x144xf32>
    %484 = arith.mulf %483, %32 : vector<16x144xf32>
    %485 = arith.addf %481, %484 : vector<16x144xf32>
    %c0_461 = arith.constant 0 : index
    %c13_462 = arith.constant 13 : index
    %c2_463 = arith.constant 2 : index
    %c0_464 = arith.constant 0 : index
    %486 = vector.load %arg1[%c0_461, %c13_462, %c2_463, %c0_464] : memref<1x18x18x144xf32, #tpu.memory_space<vmem>>, vector<1x1x16x144xf32>
    %487 = vector.shape_cast %486 : vector<1x1x16x144xf32> to vector<16x144xf32>
    %488 = arith.mulf %487, %36 : vector<16x144xf32>
    %489 = arith.addf %485, %488 : vector<16x144xf32>
    %c0_465 = arith.constant 0 : index
    %c11_466 = arith.constant 11 : index
    %c0_467 = arith.constant 0 : index
    %c0_468 = arith.constant 0 : index
    %490 = vector.load %arg3[%c0_465, %c11_466, %c0_467, %c0_468] : memref<1x16x16x144xf32, #tpu.memory_space<vmem>>, vector<1x1x16x144xf32>
    %491 = vector.shape_cast %490 : vector<1x1x16x144xf32> to vector<16x144xf32>
    %492 = vector.shape_cast %489 : vector<16x144xf32> to vector<1x1x16x144xf32>
    tpu.vector_store %arg3[%c0_465, %c11_466, %c0_467, %c0_468], %492 {strides = array<i32>} : memref<1x16x16x144xf32, #tpu.memory_space<vmem>>, vector<1x1x16x144xf32>,
    %c0_469 = arith.constant 0 : index
    %c12_470 = arith.constant 12 : index
    %c0_471 = arith.constant 0 : index
    %c0_472 = arith.constant 0 : index
    %493 = vector.load %arg1[%c0_469, %c12_470, %c0_471, %c0_472] : memref<1x18x18x144xf32, #tpu.memory_space<vmem>>, vector<1x1x16x144xf32>
    %494 = vector.shape_cast %493 : vector<1x1x16x144xf32> to vector<16x144xf32>
    %495 = arith.mulf %494, %4 : vector<16x144xf32>
    %c0_473 = arith.constant 0 : index
    %c12_474 = arith.constant 12 : index
    %c1_475 = arith.constant 1 : index
    %c0_476 = arith.constant 0 : index
    %496 = vector.load %arg1[%c0_473, %c12_474, %c1_475, %c0_476] : memref<1x18x18x144xf32, #tpu.memory_space<vmem>>, vector<1x1x16x144xf32>
    %497 = vector.shape_cast %496 : vector<1x1x16x144xf32> to vector<16x144xf32>
    %498 = arith.mulf %497, %8 : vector<16x144xf32>
    %499 = arith.addf %495, %498 : vector<16x144xf32>
    %c0_477 = arith.constant 0 : index
    %c12_478 = arith.constant 12 : index
    %c2_479 = arith.constant 2 : index
    %c0_480 = arith.constant 0 : index
    %500 = vector.load %arg1[%c0_477, %c12_478, %c2_479, %c0_480] : memref<1x18x18x144xf32, #tpu.memory_space<vmem>>, vector<1x1x16x144xf32>
    %501 = vector.shape_cast %500 : vector<1x1x16x144xf32> to vector<16x144xf32>
    %502 = arith.mulf %501, %12 : vector<16x144xf32>
    %503 = arith.addf %499, %502 : vector<16x144xf32>
    %c0_481 = arith.constant 0 : index
    %c13_482 = arith.constant 13 : index
    %c0_483 = arith.constant 0 : index
    %c0_484 = arith.constant 0 : index
    %504 = vector.load %arg1[%c0_481, %c13_482, %c0_483, %c0_484] : memref<1x18x18x144xf32, #tpu.memory_space<vmem>>, vector<1x1x16x144xf32>
    %505 = vector.shape_cast %504 : vector<1x1x16x144xf32> to vector<16x144xf32>
    %506 = arith.mulf %505, %16 : vector<16x144xf32>
    %507 = arith.addf %503, %506 : vector<16x144xf32>
    %c0_485 = arith.constant 0 : index
    %c13_486 = arith.constant 13 : index
    %c1_487 = arith.constant 1 : index
    %c0_488 = arith.constant 0 : index
    %508 = vector.load %arg1[%c0_485, %c13_486, %c1_487, %c0_488] : memref<1x18x18x144xf32, #tpu.memory_space<vmem>>, vector<1x1x16x144xf32>
    %509 = vector.shape_cast %508 : vector<1x1x16x144xf32> to vector<16x144xf32>
    %510 = arith.mulf %509, %20 : vector<16x144xf32>
    %511 = arith.addf %507, %510 : vector<16x144xf32>
    %c0_489 = arith.constant 0 : index
    %c13_490 = arith.constant 13 : index
    %c2_491 = arith.constant 2 : index
    %c0_492 = arith.constant 0 : index
    %512 = vector.load %arg1[%c0_489, %c13_490, %c2_491, %c0_492] : memref<1x18x18x144xf32, #tpu.memory_space<vmem>>, vector<1x1x16x144xf32>
    %513 = vector.shape_cast %512 : vector<1x1x16x144xf32> to vector<16x144xf32>
    %514 = arith.mulf %513, %24 : vector<16x144xf32>
    %515 = arith.addf %511, %514 : vector<16x144xf32>
    %c0_493 = arith.constant 0 : index
    %c14 = arith.constant 14 : index
    %c0_494 = arith.constant 0 : index
    %c0_495 = arith.constant 0 : index
    %516 = vector.load %arg1[%c0_493, %c14, %c0_494, %c0_495] : memref<1x18x18x144xf32, #tpu.memory_space<vmem>>, vector<1x1x16x144xf32>
    %517 = vector.shape_cast %516 : vector<1x1x16x144xf32> to vector<16x144xf32>
    %518 = arith.mulf %517, %28 : vector<16x144xf32>
    %519 = arith.addf %515, %518 : vector<16x144xf32>
    %c0_496 = arith.constant 0 : index
    %c14_497 = arith.constant 14 : index
    %c1_498 = arith.constant 1 : index
    %c0_499 = arith.constant 0 : index
    %520 = vector.load %arg1[%c0_496, %c14_497, %c1_498, %c0_499] : memref<1x18x18x144xf32, #tpu.memory_space<vmem>>, vector<1x1x16x144xf32>
    %521 = vector.shape_cast %520 : vector<1x1x16x144xf32> to vector<16x144xf32>
    %522 = arith.mulf %521, %32 : vector<16x144xf32>
    %523 = arith.addf %519, %522 : vector<16x144xf32>
    %c0_500 = arith.constant 0 : index
    %c14_501 = arith.constant 14 : index
    %c2_502 = arith.constant 2 : index
    %c0_503 = arith.constant 0 : index
    %524 = vector.load %arg1[%c0_500, %c14_501, %c2_502, %c0_503] : memref<1x18x18x144xf32, #tpu.memory_space<vmem>>, vector<1x1x16x144xf32>
    %525 = vector.shape_cast %524 : vector<1x1x16x144xf32> to vector<16x144xf32>
    %526 = arith.mulf %525, %36 : vector<16x144xf32>
    %527 = arith.addf %523, %526 : vector<16x144xf32>
    %c0_504 = arith.constant 0 : index
    %c12_505 = arith.constant 12 : index
    %c0_506 = arith.constant 0 : index
    %c0_507 = arith.constant 0 : index
    %528 = vector.load %arg3[%c0_504, %c12_505, %c0_506, %c0_507] : memref<1x16x16x144xf32, #tpu.memory_space<vmem>>, vector<1x1x16x144xf32>
    %529 = vector.shape_cast %528 : vector<1x1x16x144xf32> to vector<16x144xf32>
    %530 = vector.shape_cast %527 : vector<16x144xf32> to vector<1x1x16x144xf32>
    tpu.vector_store %arg3[%c0_504, %c12_505, %c0_506, %c0_507], %530 {strides = array<i32>} : memref<1x16x16x144xf32, #tpu.memory_space<vmem>>, vector<1x1x16x144xf32>,
    %c0_508 = arith.constant 0 : index
    %c13_509 = arith.constant 13 : index
    %c0_510 = arith.constant 0 : index
    %c0_511 = arith.constant 0 : index
    %531 = vector.load %arg1[%c0_508, %c13_509, %c0_510, %c0_511] : memref<1x18x18x144xf32, #tpu.memory_space<vmem>>, vector<1x1x16x144xf32>
    %532 = vector.shape_cast %531 : vector<1x1x16x144xf32> to vector<16x144xf32>
    %533 = arith.mulf %532, %4 : vector<16x144xf32>
    %c0_512 = arith.constant 0 : index
    %c13_513 = arith.constant 13 : index
    %c1_514 = arith.constant 1 : index
    %c0_515 = arith.constant 0 : index
    %534 = vector.load %arg1[%c0_512, %c13_513, %c1_514, %c0_515] : memref<1x18x18x144xf32, #tpu.memory_space<vmem>>, vector<1x1x16x144xf32>
    %535 = vector.shape_cast %534 : vector<1x1x16x144xf32> to vector<16x144xf32>
    %536 = arith.mulf %535, %8 : vector<16x144xf32>
    %537 = arith.addf %533, %536 : vector<16x144xf32>
    %c0_516 = arith.constant 0 : index
    %c13_517 = arith.constant 13 : index
    %c2_518 = arith.constant 2 : index
    %c0_519 = arith.constant 0 : index
    %538 = vector.load %arg1[%c0_516, %c13_517, %c2_518, %c0_519] : memref<1x18x18x144xf32, #tpu.memory_space<vmem>>, vector<1x1x16x144xf32>
    %539 = vector.shape_cast %538 : vector<1x1x16x144xf32> to vector<16x144xf32>
    %540 = arith.mulf %539, %12 : vector<16x144xf32>
    %541 = arith.addf %537, %540 : vector<16x144xf32>
    %c0_520 = arith.constant 0 : index
    %c14_521 = arith.constant 14 : index
    %c0_522 = arith.constant 0 : index
    %c0_523 = arith.constant 0 : index
    %542 = vector.load %arg1[%c0_520, %c14_521, %c0_522, %c0_523] : memref<1x18x18x144xf32, #tpu.memory_space<vmem>>, vector<1x1x16x144xf32>
    %543 = vector.shape_cast %542 : vector<1x1x16x144xf32> to vector<16x144xf32>
    %544 = arith.mulf %543, %16 : vector<16x144xf32>
    %545 = arith.addf %541, %544 : vector<16x144xf32>
    %c0_524 = arith.constant 0 : index
    %c14_525 = arith.constant 14 : index
    %c1_526 = arith.constant 1 : index
    %c0_527 = arith.constant 0 : index
    %546 = vector.load %arg1[%c0_524, %c14_525, %c1_526, %c0_527] : memref<1x18x18x144xf32, #tpu.memory_space<vmem>>, vector<1x1x16x144xf32>
    %547 = vector.shape_cast %546 : vector<1x1x16x144xf32> to vector<16x144xf32>
    %548 = arith.mulf %547, %20 : vector<16x144xf32>
    %549 = arith.addf %545, %548 : vector<16x144xf32>
    %c0_528 = arith.constant 0 : index
    %c14_529 = arith.constant 14 : index
    %c2_530 = arith.constant 2 : index
    %c0_531 = arith.constant 0 : index
    %550 = vector.load %arg1[%c0_528, %c14_529, %c2_530, %c0_531] : memref<1x18x18x144xf32, #tpu.memory_space<vmem>>, vector<1x1x16x144xf32>
    %551 = vector.shape_cast %550 : vector<1x1x16x144xf32> to vector<16x144xf32>
    %552 = arith.mulf %551, %24 : vector<16x144xf32>
    %553 = arith.addf %549, %552 : vector<16x144xf32>
    %c0_532 = arith.constant 0 : index
    %c15 = arith.constant 15 : index
    %c0_533 = arith.constant 0 : index
    %c0_534 = arith.constant 0 : index
    %554 = vector.load %arg1[%c0_532, %c15, %c0_533, %c0_534] : memref<1x18x18x144xf32, #tpu.memory_space<vmem>>, vector<1x1x16x144xf32>
    %555 = vector.shape_cast %554 : vector<1x1x16x144xf32> to vector<16x144xf32>
    %556 = arith.mulf %555, %28 : vector<16x144xf32>
    %557 = arith.addf %553, %556 : vector<16x144xf32>
    %c0_535 = arith.constant 0 : index
    %c15_536 = arith.constant 15 : index
    %c1_537 = arith.constant 1 : index
    %c0_538 = arith.constant 0 : index
    %558 = vector.load %arg1[%c0_535, %c15_536, %c1_537, %c0_538] : memref<1x18x18x144xf32, #tpu.memory_space<vmem>>, vector<1x1x16x144xf32>
    %559 = vector.shape_cast %558 : vector<1x1x16x144xf32> to vector<16x144xf32>
    %560 = arith.mulf %559, %32 : vector<16x144xf32>
    %561 = arith.addf %557, %560 : vector<16x144xf32>
    %c0_539 = arith.constant 0 : index
    %c15_540 = arith.constant 15 : index
    %c2_541 = arith.constant 2 : index
    %c0_542 = arith.constant 0 : index
    %562 = vector.load %arg1[%c0_539, %c15_540, %c2_541, %c0_542] : memref<1x18x18x144xf32, #tpu.memory_space<vmem>>, vector<1x1x16x144xf32>
    %563 = vector.shape_cast %562 : vector<1x1x16x144xf32> to vector<16x144xf32>
    %564 = arith.mulf %563, %36 : vector<16x144xf32>
    %565 = arith.addf %561, %564 : vector<16x144xf32>
    %c0_543 = arith.constant 0 : index
    %c13_544 = arith.constant 13 : index
    %c0_545 = arith.constant 0 : index
    %c0_546 = arith.constant 0 : index
    %566 = vector.load %arg3[%c0_543, %c13_544, %c0_545, %c0_546] : memref<1x16x16x144xf32, #tpu.memory_space<vmem>>, vector<1x1x16x144xf32>
    %567 = vector.shape_cast %566 : vector<1x1x16x144xf32> to vector<16x144xf32>
    %568 = vector.shape_cast %565 : vector<16x144xf32> to vector<1x1x16x144xf32>
    tpu.vector_store %arg3[%c0_543, %c13_544, %c0_545, %c0_546], %568 {strides = array<i32>} : memref<1x16x16x144xf32, #tpu.memory_space<vmem>>, vector<1x1x16x144xf32>,
    %c0_547 = arith.constant 0 : index
    %c14_548 = arith.constant 14 : index
    %c0_549 = arith.constant 0 : index
    %c0_550 = arith.constant 0 : index
    %569 = vector.load %arg1[%c0_547, %c14_548, %c0_549, %c0_550] : memref<1x18x18x144xf32, #tpu.memory_space<vmem>>, vector<1x1x16x144xf32>
    %570 = vector.shape_cast %569 : vector<1x1x16x144xf32> to vector<16x144xf32>
    %571 = arith.mulf %570, %4 : vector<16x144xf32>
    %c0_551 = arith.constant 0 : index
    %c14_552 = arith.constant 14 : index
    %c1_553 = arith.constant 1 : index
    %c0_554 = arith.constant 0 : index
    %572 = vector.load %arg1[%c0_551, %c14_552, %c1_553, %c0_554] : memref<1x18x18x144xf32, #tpu.memory_space<vmem>>, vector<1x1x16x144xf32>
    %573 = vector.shape_cast %572 : vector<1x1x16x144xf32> to vector<16x144xf32>
    %574 = arith.mulf %573, %8 : vector<16x144xf32>
    %575 = arith.addf %571, %574 : vector<16x144xf32>
    %c0_555 = arith.constant 0 : index
    %c14_556 = arith.constant 14 : index
    %c2_557 = arith.constant 2 : index
    %c0_558 = arith.constant 0 : index
    %576 = vector.load %arg1[%c0_555, %c14_556, %c2_557, %c0_558] : memref<1x18x18x144xf32, #tpu.memory_space<vmem>>, vector<1x1x16x144xf32>
    %577 = vector.shape_cast %576 : vector<1x1x16x144xf32> to vector<16x144xf32>
    %578 = arith.mulf %577, %12 : vector<16x144xf32>
    %579 = arith.addf %575, %578 : vector<16x144xf32>
    %c0_559 = arith.constant 0 : index
    %c15_560 = arith.constant 15 : index
    %c0_561 = arith.constant 0 : index
    %c0_562 = arith.constant 0 : index
    %580 = vector.load %arg1[%c0_559, %c15_560, %c0_561, %c0_562] : memref<1x18x18x144xf32, #tpu.memory_space<vmem>>, vector<1x1x16x144xf32>
    %581 = vector.shape_cast %580 : vector<1x1x16x144xf32> to vector<16x144xf32>
    %582 = arith.mulf %581, %16 : vector<16x144xf32>
    %583 = arith.addf %579, %582 : vector<16x144xf32>
    %c0_563 = arith.constant 0 : index
    %c15_564 = arith.constant 15 : index
    %c1_565 = arith.constant 1 : index
    %c0_566 = arith.constant 0 : index
    %584 = vector.load %arg1[%c0_563, %c15_564, %c1_565, %c0_566] : memref<1x18x18x144xf32, #tpu.memory_space<vmem>>, vector<1x1x16x144xf32>
    %585 = vector.shape_cast %584 : vector<1x1x16x144xf32> to vector<16x144xf32>
    %586 = arith.mulf %585, %20 : vector<16x144xf32>
    %587 = arith.addf %583, %586 : vector<16x144xf32>
    %c0_567 = arith.constant 0 : index
    %c15_568 = arith.constant 15 : index
    %c2_569 = arith.constant 2 : index
    %c0_570 = arith.constant 0 : index
    %588 = vector.load %arg1[%c0_567, %c15_568, %c2_569, %c0_570] : memref<1x18x18x144xf32, #tpu.memory_space<vmem>>, vector<1x1x16x144xf32>
    %589 = vector.shape_cast %588 : vector<1x1x16x144xf32> to vector<16x144xf32>
    %590 = arith.mulf %589, %24 : vector<16x144xf32>
    %591 = arith.addf %587, %590 : vector<16x144xf32>
    %c0_571 = arith.constant 0 : index
    %c16 = arith.constant 16 : index
    %c0_572 = arith.constant 0 : index
    %c0_573 = arith.constant 0 : index
    %592 = vector.load %arg1[%c0_571, %c16, %c0_572, %c0_573] : memref<1x18x18x144xf32, #tpu.memory_space<vmem>>, vector<1x1x16x144xf32>
    %593 = vector.shape_cast %592 : vector<1x1x16x144xf32> to vector<16x144xf32>
    %594 = arith.mulf %593, %28 : vector<16x144xf32>
    %595 = arith.addf %591, %594 : vector<16x144xf32>
    %c0_574 = arith.constant 0 : index
    %c16_575 = arith.constant 16 : index
    %c1_576 = arith.constant 1 : index
    %c0_577 = arith.constant 0 : index
    %596 = vector.load %arg1[%c0_574, %c16_575, %c1_576, %c0_577] : memref<1x18x18x144xf32, #tpu.memory_space<vmem>>, vector<1x1x16x144xf32>
    %597 = vector.shape_cast %596 : vector<1x1x16x144xf32> to vector<16x144xf32>
    %598 = arith.mulf %597, %32 : vector<16x144xf32>
    %599 = arith.addf %595, %598 : vector<16x144xf32>
    %c0_578 = arith.constant 0 : index
    %c16_579 = arith.constant 16 : index
    %c2_580 = arith.constant 2 : index
    %c0_581 = arith.constant 0 : index
    %600 = vector.load %arg1[%c0_578, %c16_579, %c2_580, %c0_581] : memref<1x18x18x144xf32, #tpu.memory_space<vmem>>, vector<1x1x16x144xf32>
    %601 = vector.shape_cast %600 : vector<1x1x16x144xf32> to vector<16x144xf32>
    %602 = arith.mulf %601, %36 : vector<16x144xf32>
    %603 = arith.addf %599, %602 : vector<16x144xf32>
    %c0_582 = arith.constant 0 : index
    %c14_583 = arith.constant 14 : index
    %c0_584 = arith.constant 0 : index
    %c0_585 = arith.constant 0 : index
    %604 = vector.load %arg3[%c0_582, %c14_583, %c0_584, %c0_585] : memref<1x16x16x144xf32, #tpu.memory_space<vmem>>, vector<1x1x16x144xf32>
    %605 = vector.shape_cast %604 : vector<1x1x16x144xf32> to vector<16x144xf32>
    %606 = vector.shape_cast %603 : vector<16x144xf32> to vector<1x1x16x144xf32>
    tpu.vector_store %arg3[%c0_582, %c14_583, %c0_584, %c0_585], %606 {strides = array<i32>} : memref<1x16x16x144xf32, #tpu.memory_space<vmem>>, vector<1x1x16x144xf32>,
    %c0_586 = arith.constant 0 : index
    %c15_587 = arith.constant 15 : index
    %c0_588 = arith.constant 0 : index
    %c0_589 = arith.constant 0 : index
    %607 = vector.load %arg1[%c0_586, %c15_587, %c0_588, %c0_589] : memref<1x18x18x144xf32, #tpu.memory_space<vmem>>, vector<1x1x16x144xf32>
    %608 = vector.shape_cast %607 : vector<1x1x16x144xf32> to vector<16x144xf32>
    %609 = arith.mulf %608, %4 : vector<16x144xf32>
    %c0_590 = arith.constant 0 : index
    %c15_591 = arith.constant 15 : index
    %c1_592 = arith.constant 1 : index
    %c0_593 = arith.constant 0 : index
    %610 = vector.load %arg1[%c0_590, %c15_591, %c1_592, %c0_593] : memref<1x18x18x144xf32, #tpu.memory_space<vmem>>, vector<1x1x16x144xf32>
    %611 = vector.shape_cast %610 : vector<1x1x16x144xf32> to vector<16x144xf32>
    %612 = arith.mulf %611, %8 : vector<16x144xf32>
    %613 = arith.addf %609, %612 : vector<16x144xf32>
    %c0_594 = arith.constant 0 : index
    %c15_595 = arith.constant 15 : index
    %c2_596 = arith.constant 2 : index
    %c0_597 = arith.constant 0 : index
    %614 = vector.load %arg1[%c0_594, %c15_595, %c2_596, %c0_597] : memref<1x18x18x144xf32, #tpu.memory_space<vmem>>, vector<1x1x16x144xf32>
    %615 = vector.shape_cast %614 : vector<1x1x16x144xf32> to vector<16x144xf32>
    %616 = arith.mulf %615, %12 : vector<16x144xf32>
    %617 = arith.addf %613, %616 : vector<16x144xf32>
    %c0_598 = arith.constant 0 : index
    %c16_599 = arith.constant 16 : index
    %c0_600 = arith.constant 0 : index
    %c0_601 = arith.constant 0 : index
    %618 = vector.load %arg1[%c0_598, %c16_599, %c0_600, %c0_601] : memref<1x18x18x144xf32, #tpu.memory_space<vmem>>, vector<1x1x16x144xf32>
    %619 = vector.shape_cast %618 : vector<1x1x16x144xf32> to vector<16x144xf32>
    %620 = arith.mulf %619, %16 : vector<16x144xf32>
    %621 = arith.addf %617, %620 : vector<16x144xf32>
    %c0_602 = arith.constant 0 : index
    %c16_603 = arith.constant 16 : index
    %c1_604 = arith.constant 1 : index
    %c0_605 = arith.constant 0 : index
    %622 = vector.load %arg1[%c0_602, %c16_603, %c1_604, %c0_605] : memref<1x18x18x144xf32, #tpu.memory_space<vmem>>, vector<1x1x16x144xf32>
    %623 = vector.shape_cast %622 : vector<1x1x16x144xf32> to vector<16x144xf32>
    %624 = arith.mulf %623, %20 : vector<16x144xf32>
    %625 = arith.addf %621, %624 : vector<16x144xf32>
    %c0_606 = arith.constant 0 : index
    %c16_607 = arith.constant 16 : index
    %c2_608 = arith.constant 2 : index
    %c0_609 = arith.constant 0 : index
    %626 = vector.load %arg1[%c0_606, %c16_607, %c2_608, %c0_609] : memref<1x18x18x144xf32, #tpu.memory_space<vmem>>, vector<1x1x16x144xf32>
    %627 = vector.shape_cast %626 : vector<1x1x16x144xf32> to vector<16x144xf32>
    %628 = arith.mulf %627, %24 : vector<16x144xf32>
    %629 = arith.addf %625, %628 : vector<16x144xf32>
    %c0_610 = arith.constant 0 : index
    %c17 = arith.constant 17 : index
    %c0_611 = arith.constant 0 : index
    %c0_612 = arith.constant 0 : index
    %630 = vector.load %arg1[%c0_610, %c17, %c0_611, %c0_612] : memref<1x18x18x144xf32, #tpu.memory_space<vmem>>, vector<1x1x16x144xf32>
    %631 = vector.shape_cast %630 : vector<1x1x16x144xf32> to vector<16x144xf32>
    %632 = arith.mulf %631, %28 : vector<16x144xf32>
    %633 = arith.addf %629, %632 : vector<16x144xf32>
    %c0_613 = arith.constant 0 : index
    %c17_614 = arith.constant 17 : index
    %c1_615 = arith.constant 1 : index
    %c0_616 = arith.constant 0 : index
    %634 = vector.load %arg1[%c0_613, %c17_614, %c1_615, %c0_616] : memref<1x18x18x144xf32, #tpu.memory_space<vmem>>, vector<1x1x16x144xf32>
    %635 = vector.shape_cast %634 : vector<1x1x16x144xf32> to vector<16x144xf32>
    %636 = arith.mulf %635, %32 : vector<16x144xf32>
    %637 = arith.addf %633, %636 : vector<16x144xf32>
    %c0_617 = arith.constant 0 : index
    %c17_618 = arith.constant 17 : index
    %c2_619 = arith.constant 2 : index
    %c0_620 = arith.constant 0 : index
    %638 = vector.load %arg1[%c0_617, %c17_618, %c2_619, %c0_620] : memref<1x18x18x144xf32, #tpu.memory_space<vmem>>, vector<1x1x16x144xf32>
    %639 = vector.shape_cast %638 : vector<1x1x16x144xf32> to vector<16x144xf32>
    %640 = arith.mulf %639, %36 : vector<16x144xf32>
    %641 = arith.addf %637, %640 : vector<16x144xf32>
    %c0_621 = arith.constant 0 : index
    %c15_622 = arith.constant 15 : index
    %c0_623 = arith.constant 0 : index
    %c0_624 = arith.constant 0 : index
    %642 = vector.load %arg3[%c0_621, %c15_622, %c0_623, %c0_624] : memref<1x16x16x144xf32, #tpu.memory_space<vmem>>, vector<1x1x16x144xf32>
    %643 = vector.shape_cast %642 : vector<1x1x16x144xf32> to vector<16x144xf32>
    %644 = vector.shape_cast %641 : vector<16x144xf32> to vector<1x1x16x144xf32>
    tpu.vector_store %arg3[%c0_621, %c15_622, %c0_623, %c0_624], %644 {strides = array<i32>} : memref<1x16x16x144xf32, #tpu.memory_space<vmem>>, vector<1x1x16x144xf32>,
    return
  }
  func.func @transform_0(%arg0: i32) -> (i32, i32, i32, i32) {
    %c0_i32 = arith.constant 0 : i32
    %c0_i32_0 = arith.constant 0 : i32
    %c0_i32_1 = arith.constant 0 : i32
    %c0_i32_2 = arith.constant 0 : i32
    return %arg0, %c0_i32, %c0_i32_0, %c0_i32_1 : i32, i32, i32, i32
  }
  func.func @transform_1(%arg0: i32) -> (i32, i32, i32) {
    %c0_i32 = arith.constant 0 : i32
    %c0_i32_0 = arith.constant 0 : i32
    %c0_i32_1 = arith.constant 0 : i32
    %c0_i32_2 = arith.constant 0 : i32
    return %c0_i32, %c0_i32_0, %c0_i32_1 : i32, i32, i32
  }
  func.func @transform_2(%arg0: i32) -> (i32, i32, i32, i32) {
    %c0_i32 = arith.constant 0 : i32
    %c0_i32_0 = arith.constant 0 : i32
    %c0_i32_1 = arith.constant 0 : i32
    %c0_i32_2 = arith.constant 0 : i32
    return %arg0, %c0_i32, %c0_i32_0, %c0_i32_1 : i32, i32, i32, i32
  }
}

</mosaic_0001>

<bundles_post_ra>
// kernel: depthwise_conv3x3_nchw.1
= control target key start
LH: loop header
LB: loop body
LE: loop exit
PB: predicated region body
PF: predicated region fallthrough
CT: control target
= control target key end

     0   :  { %7 = vsyncpa [#allocation3], 0  ;;  %s8644_s0 = inlined_call_operand.vmem [shape: f32[2,18,18,144], index: 0, kind: input, shape index: {}]   ;;  %s8645_s1 = inlined_call_operand.vmem [shape: f32[3,3,144], index: 1, kind: input, shape index: {}]   ;;  %s8646_s2 = inlined_call_operand.hbm [shape: f32[2,16,16,144], index: 2, kind: output, shape index: {}]  }
   0x1   :  { %9 = vsyncpa [#allocation3 + $0x1], 0  ;;  %s4914_s9 = smov 0   ;;  %s4916_s10 = smov 0  }
   0x2   :  { %s4918_s11 = smov 0   ;;  %s4920_s12 = smov 0  }
   0x3 LB: > { %s4935_s13 = sadd.s32 4294967295, %s4895_s12   ;;  %s4155_s14 = sadd.s32 4294967294, %s4895_s12   ;;  %s4895_s12 = sphi %s4920_s12, %s9038_s12   ;;  %s4891_s11 = sphi %s4918_s11, %s9037_s11   ;;  %s4887_s10 = sphi %s4916_s10, %s9036_s10   ;;  %s4883_s9 = sphi %s4914_s9, %s9035_s9  }
   0x4   : > { %s4939_s15 = sadd.s32 1, %s4895_s12   ;;  %s69_s16 = sadd.s32 1, %s4891_s11 }
   0x5   : > { %s66_s17 = ssub.s32 %s4895_s12, %s4939_s15  ;;  %p79_p0 = scmp.ne.s32.totalorder %s4891_s11, %s4887_s10 }
   0x6   : > { %p67_p1 = scmp.eq.s32.totalorder %s66_s17, 0  ;;  %p80_p2 = scmp.eq.s32.totalorder %s4935_s13, 1 }
   0x7   : > { %p85_p3 = scmp.ne.s32.totalorder %s4887_s10, %s4883_s9  ;;  %p86_p4 = scmp.eq.s32.totalorder %s4155_s14, 1 }
   0x8   : > { %s4950_s18 = scalar_select %p67_p1, %s4891_s11, %s69_s16  }
   0x9   : > { %p4952_p5 = por %p80_p2, %p79_p0  ;;  %p4956_p6 = por %p86_p4, %p85_p3 }
   0xa   : > { %p4158_p7 = scmp.ge.s32.totalorder %s4895_s12, 1  ;;  %p115_p8 = scmp.lt.s32.totalorder %s4895_s12, 3 }
   0xc   : > { %p116_p9 = pnand %p4158_p7, %p115_p8 }
   0xe   : > { %119 = sbr.rel (%p116_p9) target bundleno = 641 (0x281), region = 28 }
  0x13   : > { %p137_p10 = scmp.lt.s32.totalorder %s4935_s13, 1  ;;  %v4966_v0 = vld [vmem:[%s8645_s1] sm:$0x77]  ;;  %v4971_v1 = vld [vmem:[%s8645_s1 + $0x8] sm:$0x77]  ;;  %vm226_vm0 = vcmask 1046528  }
  0x14   : > { %v146_v2 = vperm.slane %v4966_v0, 0  ;;  %v152_v3 = vperm.slane %v4966_v0, 1  ;;  %v153_v4 = vperm.slane %v4966_v0, 5  ;;  %v4979_v5 = vld [vmem:[%s8645_s1 + $0x10] sm:$0x77]  ;;  %v158_v6 = vperm.slane %v4966_v0, 2 }
  0x15   : > { %v159_v7 = vperm.slane %v4966_v0, 6  ;;  %v165_v8 = vperm.slane %v4971_v1, 0  ;;  %v171_v9 = vperm.slane %v4971_v1, 1  ;;  %s138_s27 = scalar_select %p137_p10, %s4935_s13, 1  ;;  %v172_v11 = vperm.slane %v4971_v1, 5 }
  0x16   : > { %v4986_v10 = vperm.slane %v146_v2, 0  ;;  %v4989_v12 = vperm.slane %v152_v3, 1  ;;  %v4991_v13 = vperm.slane %v153_v4, 1  ;;  %v4993_v14 = vperm.slane %v158_v6, 2  ;;  %s134_s4 = sand.u32 1, %s4887_s10   ;;  %s4790_s7 = sshll.u32 %s4935_s13, 9 }
  0x17   : > { %v4995_v15 = vperm.slane %v159_v7, 2  ;;  %s4791_s28 = smul.u32 864, %s138_s27  ;;  %v4997_v16 = vperm.slane %v165_v8, 0  ;;  %v177_v17 = vperm.slane %v4971_v1, 2  ;;  %v178_v18 = vperm.slane %v4971_v1, 6  ;;  %s5164_s5 = sshll.u32 %s134_s4, 9 }
  0x18   : > { %v184_v19 = vperm.slane %v4979_v5, 0  ;;  %v5002_v20 = vperm.slane %v171_v9, 1  ;;  %v190_v21 = vperm.slane %v4979_v5, 1  ;;  %v191_v22 = vperm.slane %v4979_v5, 5  ;;  %s5213_s6 = scalar_lea.vmem [#allocation2], %s5164_s5  ;;  %s4089_s16 = scalar_lea.hbm %s8646_s2, %s4790_s7 }
  0x19   : > { %v196_v23 = vperm.slane %v4979_v5, 2  ;;  %s5010_s3 = scalar_lea.vmem %s8644_s0, %s4791_s28  ;;  %v5012_v24 = vperm.slane %v172_v11, 1  ;;  %v5014_v25 = vperm.slane %v177_v17, 2  ;;  %v5016_v26 = vperm.slane %v178_v18, 2  ;;  %s4090_s13 = sshll.u32 %s5213_s6, 4  ;;  %s4091_s13 = int_to_ptr.vmem [resolvable:$true] %s4090_s13 }
  0x1a   : > { %v197_v27 = vperm.slane %v4979_v5, 6  ;;  %v5019_v28 = vperm.slane %v184_v19, 0  ;;  %v5021_v29 = vperm.slane %v190_v21, 1  ;;  %v5023_v30 = vperm.slane %v191_v22, 1  ;;  %v202_v31 = vld [vmem:[%s5010_s3] sm:$0xff]  ;;  %v5027_v32 = vld [vmem:[%s5010_s3 + $0x10] sm:$0xff] }
  0x1b   : > { %v5029_v33 = vperm.slane %v196_v23, 2  ;;  %v210_v34 = vld [vmem:[%s5010_s3] sm:$0xfe]  ;;  %v5034_v35 = vmul.f32 %v5027_v32, %v4989_v12  ;;  %v5039_v37 = vmul.f32 %v5027_v32, %v4993_v14  ;;  %vm261_vm1 = vcmask 1045504   ;;  %v4165_v42 = vld [vmem:[%s5010_s3 + $0x30] sm:$0xfe] }
  0x1c   : > { %v245_v36 = vld [vmem:[%s5010_s3] sm:$0xfc]  ;;  %v206_v38 = vmul.f32 %v202_v31, %v4986_v10  ;;  %v214_v39 = vmul.f32 %v210_v34, %v4989_v12  ;;  %v4169_v43 = vld [vmem:[%s5010_s3 + $0x30] sm:$0xfc]  ;;  %v147_v44 = vperm.slane %v4966_v0, 4  ;;  %v297_v47 = vmul.f32 %v4165_v42, %v5002_v20  ;;  %v203_v19 = vld [vmem:[%s5010_s3 + $0x8] sm:$0xff] }
  0x1d   : > { %v249_v40 = vmul.f32 %v245_v36, %v4993_v14  ;;  %v5045_v41 = vld [vmem:[%s5010_s3 + $0x40] sm:$0xff]  ;;  %v8654_v45 = vrot.slane %v5034_v35, 1  ;;  %v8653_v46 = vrot.slane %v5039_v37, 2  ;;  %v331_v52 = vmul.f32 %v4169_v43, %v5014_v25  ;;  %v5075_v61 = vld [vmem:[%s5010_s3 + $0x30] sm:$0xff]  ;;  %v211_v8 = vld [vmem:[%s5010_s3 + $0x8] sm:$0xfe] }
  0x1e   : > { %v5055_v48 = vmul.f32 %v5045_v41, %v5002_v20  ;;  %v4177_v49 = vld [vmem:[%s5010_s3 + $0x60] sm:$0xfe]  ;;  %v227_v50 = vrot.slane %v214_v39, 1  ;;  %v5061_v53 = vmul.f32 %v5045_v41, %v5014_v25  ;;  %v5063_v54 = vperm.slane %v197_v27, 2  ;;  %v5082_v2 = vld [vmem:[%s5010_s3 + $0x70] sm:$0xff]  ;;  %v5105_v31 = vld [vmem:[%s5010_s3 + $0x18] sm:$0xff] }
  0x1f   : > { %v262_v51 = vrot.slane %v249_v40, 2  ;;  %v309_v55 = vrot.slane %v297_v47, 1  ;;  %v378_v57 = vmul.f32 %v4177_v49, %v5021_v29  ;;  %v4181_v58 = vld [vmem:[%s5010_s3 + $0x60] sm:$0xfc]  ;;  %v343_v62 = vrot.slane %v331_v52, 2  ;;  %s4092_s17 = sshll.u32 %s4089_s16, 4  ;;  %s4093_s17 = int_to_ptr.hbm [resolvable:$true] %s4092_s17 }
  0x20   : > { %v8652_v56 = vrot.slane %v5055_v48, 1  ;;  %v229_v59 = vsel %vm226_vm0, %v227_v50, %v8654_v45  ;;  %v8651_v63 = vrot.slane %v5061_v53, 2  ;;  %v5079_v0 = vld [vmem:[%s5010_s3 + $0x60] sm:$0xff]  ;;  %v285_v4 = vmul.f32 %v5075_v61, %v4997_v16  ;;  %v246_v34 = vld [vmem:[%s5010_s3 + $0x8] sm:$0xfc]  ;;  %s4078_s21 = scalar_lea.sflag [#allocation3], %s134_s4 }
  0x21   : > { %v264_v60 = vsel %vm261_vm1, %v262_v51, %v8653_v46  ;;  %v241_v3 = vadd.f32 %v229_v59, %v206_v38  ;;  %v366_v6 = vmul.f32 %v5079_v0, %v5019_v28  ;;  %v5090_v7 = vmul.f32 %v5082_v2, %v5021_v29  ;;  %v4166_v42 = vld [vmem:[%s5010_s3 + $0x38] sm:$0xfe]  ;;  %v5136_v59 = vld [vmem:[%s5010_s3 + $0x48] sm:$0xff]  ;;  %v4179_v45 = vld [vmem:[%s5010_s3 + $0x80] sm:$0x1]  ;;  %s4847_s22 = sshra.s32 %s4093_s17, 4  ;;  %s4848_s22 = int_to_ptr.hbm [resolvable:$true] %s4847_s22 }
  0x22   : > { %v390_v9 = vrot.slane %v378_v57, 1  ;;  %v412_v11 = vmul.f32 %v4181_v58, %v5029_v33  ;;  %v5096_v17 = vmul.f32 %v5082_v2, %v5029_v33  ;;  %v5098_v18 = vperm.slane %v147_v44, 0  ;;  %v4170_v47 = vld [vmem:[%s5010_s3 + $0x38] sm:$0xfc]  ;;  %s4849_s23 = scalar_lea.hbm %s4848_s22, 512  ;;  %s4853_s26 = scalar_lea.hbm %s8646_s2, 1024 }
  0x23   : > { %v276_v21 = vadd.f32 %v264_v60, %v241_v3  ;;  %v8647_v22 = vrot.slane %v5090_v7, 1  ;;  %v166_v23 = vperm.slane %v4971_v1, 4  ;;  %v185_v27 = vperm.slane %v4979_v5, 4  ;;  %p4850_p11 = scmp.ne.s32.totalorder %s4848_s22, %s4849_s23  ;;  %p4854_p0 = scmp.lt.s32.totalorder %s4848_s22, %s8646_s2 }
  0x24   : > { %v311_v36 = vsel %vm226_vm0, %v309_v55, %v8652_v56  ;;  %v345_v38 = vsel %vm261_vm1, %v343_v62, %v8651_v63  ;;  %v424_v39 = vrot.slane %v412_v11, 2  ;;  %v215_v40 = vmul.f32 %v211_v8, %v4991_v13  ;;  %p4855_p1 = scmp.lt.s32.totalorder %s4853_s26, %s4849_s23 }
  0x25   : > { %v289_v1 = vadd.f32 %v285_v4, %v276_v21  ;;  %v8650_v5 = vrot.slane %v5096_v17, 2  ;;  %v5117_v43 = vperm.slane %v166_v23, 0  ;;  %v207_v44 = vmul.f32 %v203_v19, %v5098_v18  ;;  %v5142_v4 = vld [vmem:[%s5010_s3 + $0x38] sm:$0xff]  ;;  %p4851_p12 = pnand %p4850_p11, %p4952_p5 }
  0x26   : > { %v392_v49 = vsel %vm226_vm0, %v390_v9, %v8647_v22  ;;  %v5126_v50 = vmul.f32 %v5105_v31, %v4991_v13  ;;  %v230_v51 = vrot.slane %v215_v40, 1  ;;  %v250_v52 = vmul.f32 %v246_v34, %v4995_v15  ;;  %8834 = vst [vmem:[#allocation5_spill] sm:$0xff] %v5142_v4  ;;  %v4182_v34 = vld [vmem:[%s5010_s3 + $0x68] sm:$0xfc]  ;;  %v5171_v22 = vld [vmem:[%s5010_s3 + $0x78] sm:$0xff]  ;;  %p4856_p2 = por %p4855_p1, %p4854_p0 }
  0x27   : > { %v323_v55 = vadd.f32 %v311_v36, %v289_v1  ;;  %v5129_v57 = vperm.slane %v185_v27, 0  ;;  %v5133_v58 = vmul.f32 %v5105_v31, %v4995_v15  ;;  %v298_v60 = vmul.f32 %v4166_v42, %v5012_v24  ;;  %v4178_v27 = vld [vmem:[%s5010_s3 + $0x68] sm:$0xfe]  ;;  %p4852_p13 = pneg %p4851_p12 }
  0x28   : > { %v8649_v62 = vrot.slane %v5126_v50, 1  ;;  %v265_v3 = vrot.slane %v250_v52, 2  ;;  %v5146_v8 = vmul.f32 %v5136_v59, %v5012_v24  ;;  %v332_v9 = vmul.f32 %v4170_v47, %v5016_v26 }
  0x29   : > { %v357_v11 = vadd.f32 %v345_v38, %v323_v55  ;;  %v8648_v19 = vrot.slane %v5133_v58, 2  ;;  %v286_v21 = vmul.f32 %v5142_v4, %v5117_v43  ;;  %v5154_v23 = vmul.f32 %v5136_v59, %v5016_v26  ;;  %p4857_p3 = pnand %p4856_p2, %p4852_p13 }
  0x2a   : > { %v232_v36 = vsel %vm226_vm0, %v230_v51, %v8649_v62  ;;  %v312_v40 = vrot.slane %v298_v60, 1  ;;  %v8659_v42 = vrot.slane %v5146_v8, 1  ;;  %v346_v38 = vrot.slane %v332_v9, 2  ;;  %v5177_v60 = vld [vmem:[%s5010_s3 + $0x68] sm:$0xff]  ;;  %v247_v62 = vld [vmem:[%s5010_s3 + $0x20] sm:$0x3] }
  0x2b   : > { %v370_v1 = vadd.f32 %v366_v6, %v357_v11  ;;  %v242_v47 = vadd.f32 %v232_v36, %v207_v44  ;;  %v267_v52 = vsel %vm261_vm1, %v265_v3, %v8648_v19  ;;  %v8658_v55 = vrot.slane %v5154_v23, 2  ;;  %8835 = vst [vmem:[#allocation6_spill] sm:$0xff] %v5177_v60  ;;  %v212_v19 = vld [vmem:[%s5010_s3 + $0x20] sm:$0x1] }
  0x2c   : > { %v426_v51 = vsel %vm261_vm1, %v424_v39, %v8650_v5  ;;  %v379_v9 = vmul.f32 %v4178_v27, %v5023_v30  ;;  %v5182_v6 = vmul.f32 %v5171_v22, %v5023_v30  ;;  %v413_v44 = vmul.f32 %v4182_v34, %v5063_v54  ;;  %v4167_v5 = vld [vmem:[%s5010_s3 + $0x50] sm:$0x1] }
  0x2d   : > { %v404_v3 = vadd.f32 %v392_v49, %v370_v1  ;;  %v277_v11 = vadd.f32 %v267_v52, %v242_v47  ;;  %v367_v36 = vmul.f32 %v5177_v60, %v5129_v57  ;;  %v5189_v39 = vmul.f32 %v5171_v22, %v5063_v54  ;;  %v4171_v47 = vld [vmem:[%s5010_s3 + $0x50] sm:$0x3] }
  0x2e   : > { %v314_v27 = vsel %vm226_vm0, %v312_v40, %v8659_v42  ;;  %v393_v34 = vrot.slane %v379_v9, 1  ;;  %v8657_v49 = vrot.slane %v5182_v6, 1  ;;  %v427_v1 = vrot.slane %v413_v44, 2  ;;  %v248_v42 = vld [vmem:[%s5010_s3 + $0x28] sm:$0x3] }
  0x2f   : > { %v438_v52 = vadd.f32 %v426_v51, %v404_v3  ;;  %v290_v63 = vadd.f32 %v286_v21, %v277_v11  ;;  %v348_v56 = vsel %vm261_vm1, %v346_v38, %v8658_v55  ;;  %v428_v46 = vrot.slane %v5189_v39, 2  ;;  %v4183_v21 = vld [vmem:[%s5010_s3 + $0x80] sm:$0x3]  ;;  %v213_v55 = vld [vmem:[%s5010_s3 + $0x28] sm:$0x1] }
  0x30   : > { %v395_v60 = vsel %vm226_vm0, %v393_v34, %v8657_v49  ;;  %vm443_vm2 = vcmask 130048   ;;  %v208_v40 = vmul.f32 %v5027_v32, %v4986_v10  ;;  %v218_v9 = vmul.f32 %v212_v19, %v4989_v12 }
  0x31   : > { %v253_v51 = vmul.f32 %v247_v62, %v4993_v14  ;;  %442 = vst [vmem:[%s5213_s6] sm:$0xff] %v438_v52  ;;  %v324_v38 = vadd.f32 %v314_v27, %v290_v63  ;;  %v287_v44 = vmul.f32 %v5045_v41, %v4997_v16  ;;  %v301_v3 = vmul.f32 %v4167_v5, %v5002_v20 }
  0x32   : > { %v335_v32 = vmul.f32 %v4171_v47, %v5014_v25  ;;  %v429_v62 = vsel %vm261_vm1, %v427_v1, %v428_v46  ;;  %v233_v19 = vrot.slane %v218_v9, 1  ;;  %v382_v34 = vmul.f32 %v4179_v45, %v5021_v29 }
  0x33   : > { %v268_v11 = vrot.slane %v253_v51, 2  ;;  %v358_v49 = vadd.f32 %v348_v56, %v324_v38  ;;  %v315_v52 = vrot.slane %v301_v3, 1  ;;  %v416_v27 = vmul.f32 %v4183_v21, %v5029_v33  ;;  %v4168_v56 = vld [vmem:[%s5010_s3 + $0x58] sm:$0x1] }
  0x34   : > { %v349_v63 = vrot.slane %v335_v32, 2  ;;  %v8836_v5 = vrot.slane %v5034_v35, 1  ;;  %v8837_v4 = vrot.slane %v5039_v37, 2  ;;  %v368_v9 = vmul.f32 %v5082_v2, %v5019_v28  ;;  %v4172_v32 = vld [vmem:[%s5010_s3 + $0x58] sm:$0x3] }
  0x35   : > { %v396_v45 = vrot.slane %v382_v34, 1  ;;  %v371_v51 = vadd.f32 %v367_v36, %v358_v49  ;;  %v8838_v21 = vrot.slane %v5055_v48, 1  ;;  %v209_v35 = vmul.f32 %v5105_v31, %v5098_v18  ;;  %v4180_v31 = vld [vmem:[%s5010_s3 + $0x88] sm:$0x1] }
  0x36   : > { %v234_v47 = vsel %vm226_vm0, %v8836_v5, %v233_v19  ;;  %v269_v1 = vsel %vm261_vm1, %v8837_v4, %v268_v11  ;;  %v8839_v37 = vrot.slane %v5061_v53, 2  ;;  %v430_v19 = vrot.slane %v416_v27, 2  ;;  %v4184_v27 = vld [vmem:[%s5010_s3 + $0x88] sm:$0x3] }
  0x37   : > { %v243_v38 = vadd.f32 %v234_v47, %v208_v40  ;;  %v316_v3 = vsel %vm226_vm0, %v8838_v21, %v315_v52  ;;  %v219_v11 = vmul.f32 %v213_v55, %v4991_v13  ;;  %v254_v36 = vmul.f32 %v248_v42, %v4995_v15 }
  0x38   : > { %v350_v4 = vsel %vm261_vm1, %v8839_v37, %v349_v63  ;;  %v405_v49 = vadd.f32 %v395_v60, %v371_v51  ;;  %v8840_v48 = vrot.slane %v5090_v7, 1  ;;  %v302_v52 = vmul.f32 %v4168_v56, %v5012_v24 }
  0x39   : > { %v278_v40 = vadd.f32 %v269_v1, %v243_v38  ;;  %v235_v5 = vrot.slane %v219_v11, 1  ;;  %v270_v53 = vrot.slane %v254_v36, 2  ;;  %v288_v63 = vmul.f32 %v5136_v59, %v5117_v43 }
  0x3a   : > { %v397_v34 = vsel %vm226_vm0, %v8840_v48, %v396_v45  ;;  %v336_v55 = vmul.f32 %v4172_v32, %v5016_v26  ;;  %v439_v42 = vadd.f32 %v429_v62, %v405_v49  ;;  %v8841_v47 = vrot.slane %v5096_v17, 2  ;;  %v4189_v45 = vld [vmem:[%s5010_s3 + $0x30] sm:$0xfe] }
  0x3b   : > { %v291_v60 = vadd.f32 %v287_v44, %v278_v40  ;;  %v317_v1 = vrot.slane %v302_v52, 1  ;;  %v8842_v56 = vrot.slane %v5126_v50, 1  ;;  %v8843_v38 = vrot.slane %v5133_v58, 2  ;;  %v4193_v50 = vld [vmem:[%s5010_s3 + $0x30] sm:$0xfc] }
  0x3c   : > { %v431_v7 = vsel %vm261_vm1, %v8841_v47, %v430_v19  ;;  %v351_v37 = vrot.slane %v336_v55, 2  ;;  %v383_v32 = vmul.f32 %v4180_v31, %v5023_v30  ;;  %444 = vst.msk [vmem:[%s5213_s6 + $0x8] sm:$0xff] %vm443_vm2, %v439_v42  ;;  %v369_v62 = vmul.f32 %v5171_v22, %v5129_v57  ;;  %v4205_v47 = vld [vmem:[%s5010_s3 + $0x60] sm:$0xfc] }
  0x3d   : > { %v236_v51 = vsel %vm226_vm0, %v8842_v56, %v235_v5  ;;  %v271_v21 = vsel %vm261_vm1, %v8843_v38, %v270_v53  ;;  %v325_v44 = vadd.f32 %v316_v3, %v291_v60  ;;  %v417_v19 = vmul.f32 %v4184_v27, %v5063_v54 }
  0x3e   : > { %v244_v17 = vadd.f32 %v236_v51, %v209_v35  ;;  %v8844_v11 = vrot.slane %v5146_v8, 1  ;;  %v8845_v36 = vrot.slane %v5154_v23, 2  ;;  %v398_v40 = vrot.slane %v383_v32, 1  ;;  %v4201_v8 = vld [vmem:[%s5010_s3 + $0x60] sm:$0xfe] }
  0x3f   : > { %v459_v48 = vmul.f32 %v4189_v45, %v4989_v12  ;;  %v359_v3 = vadd.f32 %v350_v4, %v325_v44  ;;  %v451_v52 = vmul.f32 %v5075_v61, %v4986_v10  ;;  %v5284_v31 = vmul.f32 %v5045_v41, %v4989_v12 }
  0x40   : > { %v318_v58 = vsel %vm226_vm0, %v8844_v11, %v317_v1  ;;  %v352_v49 = vsel %vm261_vm1, %v8845_v36, %v351_v37  ;;  %v279_v35 = vadd.f32 %v271_v21, %v244_v17  ;;  %v432_v5 = vrot.slane %v417_v19, 2 }
  0x41   : > { %v471_v53 = vrot.slane %v459_v48, 1  ;;  %v493_v23 = vmul.f32 %v4193_v50, %v4993_v14  ;;  %v5290_v55 = vmul.f32 %v5045_v41, %v4993_v14  ;;  %v372_v27 = vadd.f32 %v368_v9, %v359_v3  ;;  %v5323_v3 = vld [vmem:[%s5010_s3 + $0xa0] sm:$0xff] }
  0x42   : > { %v292_v4 = vadd.f32 %v288_v63, %v279_v35  ;;  %v8846_v42 = vrot.slane %v5182_v6, 1  ;;  %v472_v60 = vrot.slane %v5284_v31, 1  ;;  %v527_v56 = vmul.f32 %v5079_v0, %v4997_v16  ;;  %v4213_v63 = vld [vmem:[%s5010_s3 + $0x90] sm:$0xfe] }
  0x43   : > { %v505_v1 = vrot.slane %v493_v23, 2  ;;  %v506_v45 = vrot.slane %v5290_v55, 2  ;;  %v539_v51 = vmul.f32 %v4201_v8, %v5002_v20  ;;  %v406_v38 = vadd.f32 %v397_v34, %v372_v27  ;;  %v4194_v27 = vld [vmem:[%s5010_s3 + $0x38] sm:$0xfc] }
  0x44   : > { %v399_v61 = vsel %vm226_vm0, %v8846_v42, %v398_v40  ;;  %v326_v21 = vadd.f32 %v318_v58, %v292_v4  ;;  %v473_v6 = vsel %vm226_vm0, %v471_v53, %v472_v60  ;;  %v5306_v9 = vmul.f32 %v5082_v2, %v5002_v20  ;;  %v4217_v58 = vld [vmem:[%s5010_s3 + $0x90] sm:$0xfc] }
  0x45   : > { %v485_v37 = vadd.f32 %v473_v6, %v451_v52  ;;  %v507_v32 = vsel %vm261_vm1, %v505_v1, %v506_v45  ;;  %v551_v44 = vrot.slane %v539_v51, 1  ;;  %v573_v34 = vmul.f32 %v4205_v47, %v5014_v25  ;;  %v4202_v6 = vld [vmem:[%s5010_s3 + $0x68] sm:$0xfe] }
  0x46   : > { %v440_v17 = vadd.f32 %v431_v7, %v406_v38  ;;  %v360_v19 = vadd.f32 %v352_v49, %v326_v21  ;;  %v8667_v50 = vrot.slane %v5306_v9, 1  ;;  %v5316_v11 = vmul.f32 %v5082_v2, %v5014_v25 }
  0x47   : > { %v433_v36 = vsel %vm261_vm1, %v428_v46, %v432_v5  ;;  %v519_v40 = vadd.f32 %v507_v32, %v485_v37  ;;  %v585_v48 = vrot.slane %v573_v34, 2  ;;  %v620_v7 = vmul.f32 %v4213_v63, %v5021_v29  ;;  %v4190_v46 = vld [vmem:[%s5010_s3 + $0x38] sm:$0xfe]  ;;  %v5337_v5 = vld [vmem:[%s5010_s3 + $0x90] sm:$0xff]  ;;  %v4206_v34 = vld [vmem:[%s5010_s3 + $0x68] sm:$0xfc] }
  0x48   : > { %445 = vst [vmem:[%s5213_s6 + $0x10] sm:$0xff] %v440_v17  ;;  %v373_v49 = vadd.f32 %v369_v62, %v360_v19  ;;  %v553_v35 = vsel %vm226_vm0, %v551_v44, %v8667_v50  ;;  %v8665_v52 = vrot.slane %v5316_v11, 2  ;;  %v5333_v39 = vmul.f32 %v5323_v3, %v5021_v29 }
  0x49   : > { %v531_v8 = vadd.f32 %v527_v56, %v519_v40  ;;  %v632_v53 = vrot.slane %v620_v7, 1  ;;  %v654_v23 = vmul.f32 %v4217_v58, %v5029_v33  ;;  %v5342_v62 = vmul.f32 %v5323_v3, %v5029_v33 }
  0x4a   : > { %v407_v4 = vadd.f32 %v399_v61, %v373_v49  ;;  %v587_v42 = vsel %vm261_vm1, %v585_v48, %v8665_v52  ;;  %v608_v47 = vmul.f32 %v5337_v5, %v5019_v28  ;;  %v8664_v1 = vrot.slane %v5333_v39, 1  ;;  %v8847_v61 = vld [vmem:[#allocation5_spill] sm:$0xff] }
  0x4b   : > { %v565_v56 = vadd.f32 %v553_v35, %v531_v8  ;;  %v666_v51 = vrot.slane %v654_v23, 2  ;;  %v8663_v38 = vrot.slane %v5342_v62, 2  ;;  %v460_v21 = vmul.f32 %v4190_v46, %v4991_v13  ;;  %v4214_v23 = vld [vmem:[%s5010_s3 + $0x98] sm:$0xfe] }
  0x4c   : > { %v441_v63 = vadd.f32 %v433_v36, %v407_v4  ;;  %v452_v37 = vmul.f32 %v8847_v61, %v5098_v18  ;;  %v5358_v32 = vmul.f32 %v5136_v59, %v4991_v13  ;;  %v494_v44 = vmul.f32 %v4194_v27, %v4995_v15  ;;  %v8848_v4 = vld [vmem:[#allocation6_spill] sm:$0xff] }
  0x4d   : > { %v599_v17 = vadd.f32 %v587_v42, %v565_v56  ;;  %v634_v19 = vsel %vm226_vm0, %v632_v53, %v8664_v1  ;;  %v474_v58 = vrot.slane %v460_v21, 1  ;;  %v5367_v36 = vmul.f32 %v5136_v59, %v4995_v15 }
  0x4e   : > { %446 = vst.msk [vmem:[%s5213_s6 + $0x18] sm:$0xff] %vm443_vm2, %v441_v63  ;;  %v668_v40 = vsel %vm261_vm1, %v666_v51, %v8663_v38  ;;  %v8662_v48 = vrot.slane %v5358_v32, 1  ;;  %v508_v7 = vrot.slane %v494_v44, 2  ;;  %v540_v49 = vmul.f32 %v4202_v6, %v5012_v24  ;;  %v4218_v51 = vld [vmem:[%s5010_s3 + $0x98] sm:$0xfc]  ;;  %v5398_v44 = vld [vmem:[%s5010_s3 + $0xa8] sm:$0xff] }
  0x4f   : > { %v612_v35 = vadd.f32 %v608_v47, %v599_v17  ;;  %v8661_v46 = vrot.slane %v5367_v36, 2  ;;  %v5379_v8 = vmul.f32 %v5171_v22, %v5012_v24  ;;  %v574_v53 = vmul.f32 %v4206_v34, %v5016_v26 }
  0x50   : > { %v476_v27 = vsel %vm226_vm0, %v474_v58, %v8662_v48  ;;  %v528_v42 = vmul.f32 %v8848_v4, %v5117_v43  ;;  %v554_v56 = vrot.slane %v540_v49, 1  ;;  %v5390_v47 = vmul.f32 %v5171_v22, %v5016_v26  ;;  %v5402_v58 = vld [vmem:[%s5010_s3 + $0x98] sm:$0xff] }
  0x51   : > { %v646_v21 = vadd.f32 %v634_v19, %v612_v35  ;;  %v486_v6 = vadd.f32 %v476_v27, %v452_v37  ;;  %v510_v63 = vsel %vm261_vm1, %v508_v7, %v8661_v46  ;;  %v8666_v61 = vrot.slane %v5379_v8, 1  ;;  %8849 = vst [vmem:[#allocation5_spill] sm:$0xff] %v5402_v58  ;;  %v4191_v19 = vld [vmem:[%s5010_s3 + $0x50] sm:$0x1] }
  0x52   : > { %v588_v34 = vrot.slane %v574_v53, 2  ;;  %v8669_v17 = vrot.slane %v5390_v47, 2  ;;  %v621_v49 = vmul.f32 %v4214_v23, %v5023_v30  ;;  %v5407_v37 = vmul.f32 %v5398_v44, %v5023_v30  ;;  %v4195_v46 = vld [vmem:[%s5010_s3 + $0x50] sm:$0x3] }
  0x53   : > { %v680_v7 = vadd.f32 %v668_v40, %v646_v21  ;;  %v520_v35 = vadd.f32 %v510_v63, %v486_v6  ;;  %v609_v27 = vmul.f32 %v5402_v58, %v5129_v57  ;;  %v655_v53 = vmul.f32 %v4218_v51, %v5063_v54  ;;  %v4203_v40 = vld [vmem:[%s5010_s3 + $0x80] sm:$0x1]  ;;  %v4196_v58 = vld [vmem:[%s5010_s3 + $0x58] sm:$0x3] }
  0x54   : > { %v556_v48 = vsel %vm226_vm0, %v554_v56, %v8666_v61  ;;  %v635_v38 = vrot.slane %v621_v49, 1  ;;  %v8668_v23 = vrot.slane %v5407_v37, 1  ;;  %v5420_v1 = vmul.f32 %v5398_v44, %v5063_v54  ;;  %v4207_v21 = vld [vmem:[%s5010_s3 + $0x80] sm:$0x3]  ;;  %v4215_v56 = vld [vmem:[%s5010_s3 + $0xb0] sm:$0x1] }
  0x55   : > { %4221 = vst [vmem:[%s5213_s6 + $0x20] sm:$0xff] %v680_v7  ;;  %v532_v6 = vadd.f32 %v528_v42, %v520_v35  ;;  %v590_v51 = vsel %vm261_vm1, %v588_v34, %v8669_v17  ;;  %v669_v63 = vrot.slane %v655_v53, 2  ;;  %v463_v52 = vmul.f32 %v4191_v19, %v4989_v12  ;;  %v4219_v53 = vld [vmem:[%s5010_s3 + $0xb0] sm:$0x3] }
  0x56   : > { %v637_v49 = vsel %vm226_vm0, %v635_v38, %v8668_v23  ;;  %v8670_v61 = vrot.slane %v5420_v1, 2  ;;  %v453_v50 = vmul.f32 %v5045_v41, %v4986_v10  ;;  %v497_v42 = vmul.f32 %v4195_v46, %v4993_v14 }
  0x57   : > { %v566_v7 = vadd.f32 %v556_v48, %v532_v6  ;;  %v477_v35 = vrot.slane %v463_v52, 1  ;;  %v543_v34 = vmul.f32 %v4203_v40, %v5002_v20  ;;  %v577_v19 = vmul.f32 %v4207_v21, %v5014_v25  ;;  %v4192_v21 = vld [vmem:[%s5010_s3 + $0x58] sm:$0x1] }
  0x58   : > { %v671_v38 = vsel %vm261_vm1, %v669_v63, %v8670_v61  ;;  %v511_v23 = vrot.slane %v497_v42, 2  ;;  %v529_v17 = vmul.f32 %v5082_v2, %v4997_v16  ;;  %v624_v41 = vmul.f32 %v4215_v56, %v5021_v29  ;;  %v4204_v56 = vld [vmem:[%s5010_s3 + $0x88] sm:$0x1] }
  0x59   : > { %v600_v48 = vadd.f32 %v590_v51, %v566_v7  ;;  %v478_v52 = vsel %vm226_vm0, %v472_v60, %v477_v35  ;;  %v557_v46 = vrot.slane %v543_v34, 1  ;;  %v591_v40 = vrot.slane %v577_v19, 2 }
  0x5a   : > { %v487_v6 = vadd.f32 %v478_v52, %v453_v50  ;;  %v512_v63 = vsel %vm261_vm1, %v506_v45, %v511_v23  ;;  %v638_v42 = vrot.slane %v624_v41, 1  ;;  %v658_v61 = vmul.f32 %v4219_v53, %v5029_v33  ;;  %v4208_v45 = vld [vmem:[%s5010_s3 + $0x88] sm:$0x3]  ;;  %v4216_v41 = vld [vmem:[%s5010_s3 + $0xb8] sm:$0x1] }
  0x5b   : > { %v613_v4 = vadd.f32 %v609_v27, %v600_v48  ;;  %v8850_v51 = vrot.slane %v5306_v9, 1  ;;  %v8851_v60 = vrot.slane %v5316_v11, 2  ;;  %v610_v55 = vmul.f32 %v5323_v3, %v5019_v28 }
  0x5c   : > { %v521_v50 = vadd.f32 %v512_v63, %v487_v6  ;;  %v672_v23 = vrot.slane %v658_v61, 2  ;;  %v454_v35 = vmul.f32 %v5136_v59, %v5098_v18  ;;  %v464_v27 = vmul.f32 %v4192_v21, %v4991_v13 }
  0x5d   : > { %v558_v31 = vsel %vm226_vm0, %v8850_v51, %v557_v46  ;;  %v592_v7 = vsel %vm261_vm1, %v8851_v60, %v591_v40  ;;  %v647_v34 = vadd.f32 %v637_v49, %v613_v4  ;;  %v8852_v9 = vrot.slane %v5333_v39, 1  ;;  %v4220_v4 = vld [vmem:[%s5010_s3 + $0xb8] sm:$0x3] }
  0x5e   : > { %v498_v11 = vmul.f32 %v4196_v58, %v4995_v15  ;;  %v544_v53 = vmul.f32 %v4204_v56, %v5012_v24  ;;  %v533_v48 = vadd.f32 %v529_v17, %v521_v50  ;;  %v479_v52 = vrot.slane %v464_v27, 1  ;;  %v4229_v56 = vld [vmem:[%s5010_s3 + $0x60] sm:$0xfe] }
  0x5f   : > { %v639_v19 = vsel %vm226_vm0, %v8852_v9, %v638_v42  ;;  %v530_v61 = vmul.f32 %v5171_v22, %v5117_v43  ;;  %v578_v59 = vmul.f32 %v4208_v45, %v5016_v26  ;;  %v681_v49 = vadd.f32 %v671_v38, %v647_v34 }
  0x60   : > { %v8853_v39 = vrot.slane %v5342_v62, 2  ;;  %v513_v58 = vrot.slane %v498_v11, 2  ;;  %v559_v40 = vrot.slane %v544_v53, 1  ;;  %v567_v21 = vadd.f32 %v558_v31, %v533_v48  ;;  %v4241_v48 = vld [vmem:[%s5010_s3 + $0x90] sm:$0xfe] }
  0x61   : > { %v8854_v6 = vrot.slane %v5358_v32, 1  ;;  %v593_v63 = vrot.slane %v578_v59, 2  ;;  %v625_v42 = vmul.f32 %v4216_v41, %v5023_v30  ;;  %4222 = vst.msk [vmem:[%s5213_s6 + $0x28] sm:$0xff] %vm443_vm2, %v681_v49  ;;  %v8855_v38 = vrot.slane %v5367_v36, 2  ;;  %v4233_v32 = vld [vmem:[%s5010_s3 + $0x60] sm:$0xfc] }
  0x62   : > { %v673_v46 = vsel %vm261_vm1, %v8853_v39, %v672_v23  ;;  %v611_v60 = vmul.f32 %v5398_v44, %v5129_v57  ;;  %v659_v31 = vmul.f32 %v4220_v4, %v5063_v54  ;;  %v601_v45 = vadd.f32 %v592_v7, %v567_v21  ;;  %v4245_v39 = vld [vmem:[%s5010_s3 + $0x90] sm:$0xfc] }
  0x63   : > { %v480_v17 = vsel %vm226_vm0, %v8854_v6, %v479_v52  ;;  %v514_v62 = vsel %vm261_vm1, %v8855_v38, %v513_v58  ;;  %v8856_v50 = vrot.slane %v5379_v8, 1  ;;  %v8857_v27 = vrot.slane %v5390_v47, 2 }
  0x64   : > { %v488_v51 = vadd.f32 %v480_v17, %v454_v35  ;;  %v640_v36 = vrot.slane %v625_v42, 1  ;;  %v693_v9 = vmul.f32 %v5079_v0, %v4986_v10  ;;  %v701_v11 = vmul.f32 %v4229_v56, %v4989_v12 }
  0x65   : > { %v560_v23 = vsel %vm226_vm0, %v8856_v50, %v559_v40  ;;  %v594_v35 = vsel %vm261_vm1, %v8857_v27, %v593_v63  ;;  %v5506_v53 = vmul.f32 %v5082_v2, %v4989_v12  ;;  %v614_v7 = vadd.f32 %v610_v55, %v601_v45  ;;  %v4257_v45 = vld [vmem:[%s5010_s3 + $0xc0] sm:$0xfc] }
  0x66   : > { %v522_v34 = vadd.f32 %v514_v62, %v488_v51  ;;  %v674_v8 = vrot.slane %v659_v31, 2  ;;  %v735_v41 = vmul.f32 %v4233_v32, %v4993_v14  ;;  %v5511_v47 = vmul.f32 %v5082_v2, %v4993_v14 }
  0x67   : > { %v8858_v59 = vrot.slane %v5407_v37, 1  ;;  %v713_v4 = vrot.slane %v701_v11, 1  ;;  %v714_v49 = vrot.slane %v5506_v53, 1  ;;  %v648_v58 = vadd.f32 %v639_v19, %v614_v7  ;;  %v4253_v19 = vld [vmem:[%s5010_s3 + $0xc0] sm:$0xfe] }
  0x68   : > { %v534_v52 = vadd.f32 %v530_v61, %v522_v34  ;;  %v747_v55 = vrot.slane %v735_v41, 2  ;;  %v748_v40 = vrot.slane %v5511_v47, 2  ;;  %v769_v21 = vmul.f32 %v5337_v5, %v4997_v16  ;;  %v5559_v41 = vld [vmem:[%s5010_s3 + $0xc0] sm:$0xff] }
  0x69   : > { %v641_v0 = vsel %vm226_vm0, %v8858_v59, %v640_v36  ;;  %v715_v37 = vsel %vm226_vm0, %v713_v4, %v714_v49  ;;  %v781_v61 = vmul.f32 %v4241_v48, %v5002_v20  ;;  %v5528_v17 = vmul.f32 %v5323_v3, %v5002_v20  ;;  %v5546_v36 = vld [vmem:[%s5010_s3 + $0xd0] sm:$0xff]  ;;  %v4234_v59 = vld [vmem:[%s5010_s3 + $0x68] sm:$0xfc] }
  0x6a   : > { %v568_v6 = vadd.f32 %v560_v23, %v534_v52  ;;  %v682_v63 = vadd.f32 %v673_v46, %v648_v58  ;;  %v727_v42 = vadd.f32 %v715_v37, %v693_v9  ;;  %v749_v56 = vsel %vm261_vm1, %v747_v55, %v748_v40 }
  0x6b   : > { %v815_v51 = vmul.f32 %v4245_v39, %v5014_v25  ;;  %v793_v62 = vrot.slane %v781_v61, 1  ;;  %v8679_v31 = vrot.slane %v5528_v17, 1  ;;  %v5538_v32 = vmul.f32 %v5323_v3, %v5014_v25 }
  0x6c   : > { %v602_v38 = vadd.f32 %v594_v35, %v568_v6  ;;  %4223 = vst [vmem:[%s5213_s6 + $0x30] sm:$0xff] %v682_v63  ;;  %v8859_v46 = vrot.slane %v5420_v1, 2  ;;  %v761_v23 = vadd.f32 %v749_v56, %v727_v42  ;;  %v862_v35 = vmul.f32 %v4253_v19, %v5021_v29  ;;  %v4230_v1 = vld [vmem:[%s5010_s3 + $0x68] sm:$0xfe]  ;;  %v4242_v19 = vld [vmem:[%s5010_s3 + $0x98] sm:$0xfe] }
  0x6d   : > { %v827_v27 = vrot.slane %v815_v51, 2  ;;  %v795_v9 = vsel %vm226_vm0, %v793_v62, %v8679_v31  ;;  %v8677_v11 = vrot.slane %v5538_v32, 2  ;;  %v5555_v7 = vmul.f32 %v5546_v36, %v5021_v29 }
  0x6e   : > { %v675_v50 = vsel %vm261_vm1, %v8859_v46, %v674_v8  ;;  %v615_v34 = vadd.f32 %v611_v60, %v602_v38  ;;  %v773_v8 = vadd.f32 %v769_v21, %v761_v23  ;;  %v874_v48 = vrot.slane %v862_v35, 1  ;;  %v4246_v38 = vld [vmem:[%s5010_s3 + $0x98] sm:$0xfc] }
  0x6f   : > { %v896_v52 = vmul.f32 %v4257_v45, %v5029_v33  ;;  %v5564_v60 = vmul.f32 %v5546_v36, %v5029_v33  ;;  %v829_v39 = vsel %vm261_vm1, %v827_v27, %v8677_v11  ;;  %v850_v58 = vmul.f32 %v5559_v41, %v5019_v28 }
  0x70   : > { %v649_v4 = vadd.f32 %v641_v0, %v615_v34  ;;  %v8676_v55 = vrot.slane %v5555_v7, 1  ;;  %v807_v21 = vadd.f32 %v795_v9, %v773_v8  ;;  %v702_v61 = vmul.f32 %v4230_v1, %v4991_v13  ;;  %v8860_v0 = vld [vmem:[#allocation6_spill] sm:$0xff] }
  0x71   : > { %v908_v6 = vrot.slane %v896_v52, 2  ;;  %v8675_v37 = vrot.slane %v5564_v60, 2  ;;  %v694_v42 = vmul.f32 %v8860_v0, %v5098_v18  ;;  %v5580_v56 = vmul.f32 %v5171_v22, %v4991_v13  ;;  %v4254_v52 = vld [vmem:[%s5010_s3 + $0xc8] sm:$0xfe] }
  0x72   : > { %v683_v63 = vadd.f32 %v675_v50, %v649_v4  ;;  %v736_v51 = vmul.f32 %v4234_v59, %v4995_v15  ;;  %v841_v62 = vadd.f32 %v829_v39, %v807_v21  ;;  %v876_v45 = vsel %vm226_vm0, %v874_v48, %v8676_v55  ;;  %v8861_v4 = vld [vmem:[#allocation5_spill] sm:$0xff] }
  0x73   : > { %v716_v46 = vrot.slane %v702_v61, 1  ;;  %v5589_v50 = vmul.f32 %v5171_v22, %v4995_v15  ;;  %v910_v23 = vsel %vm261_vm1, %v908_v6, %v8675_v37  ;;  %v8674_v27 = vrot.slane %v5580_v56, 1  ;;  %v4258_v6 = vld [vmem:[%s5010_s3 + $0xc8] sm:$0xfc] }
  0x74   : > { %4224 = vst.msk [vmem:[%s5213_s6 + $0x38] sm:$0xff] %vm443_vm2, %v683_v63  ;;  %v750_v35 = vrot.slane %v736_v51, 2  ;;  %v782_v34 = vmul.f32 %v4242_v19, %v5012_v24  ;;  %v854_v9 = vadd.f32 %v850_v58, %v841_v62  ;;  %v5601_v8 = vmul.f32 %v5398_v44, %v5012_v24  ;;  %v5620_v51 = vld [vmem:[%s5010_s3 + $0xd8] sm:$0xff] }
  0x75   : > { %v8673_v1 = vrot.slane %v5589_v50, 2  ;;  %v816_v48 = vmul.f32 %v4246_v38, %v5016_v26  ;;  %v718_v59 = vsel %vm226_vm0, %v716_v46, %v8674_v27  ;;  %v770_v39 = vmul.f32 %v8861_v4, %v5117_v43  ;;  %v5624_v46 = vld [vmem:[%s5010_s3 + $0xc8] sm:$0xff] }
  0x76   : > { %v796_v21 = vrot.slane %v782_v34, 1  ;;  %v5612_v58 = vmul.f32 %v5398_v44, %v5016_v26  ;;  %v888_v61 = vadd.f32 %v876_v45, %v854_v9  ;;  %v728_v19 = vadd.f32 %v718_v59, %v694_v42  ;;  %8862 = vst [vmem:[#allocation6_spill] sm:$0xff] %v5624_v46  ;;  %v4231_v45 = vld [vmem:[%s5010_s3 + $0x80] sm:$0x1] }
  0x77   : > { %v752_v63 = vsel %vm261_vm1, %v750_v35, %v8673_v1  ;;  %v8678_v0 = vrot.slane %v5601_v8, 1  ;;  %v830_v38 = vrot.slane %v816_v48, 2  ;;  %v863_v34 = vmul.f32 %v4254_v52, %v5023_v30  ;;  %v4235_v1 = vld [vmem:[%s5010_s3 + $0x80] sm:$0x3] }
  0x78   : > { %v8681_v62 = vrot.slane %v5612_v58, 2  ;;  %v5629_v42 = vmul.f32 %v5620_v51, %v5023_v30  ;;  %v922_v35 = vadd.f32 %v910_v23, %v888_v61  ;;  %v762_v9 = vadd.f32 %v752_v63, %v728_v19  ;;  %v4243_v23 = vld [vmem:[%s5010_s3 + $0xb0] sm:$0x1] }
  0x79   : > { %v851_v59 = vmul.f32 %v5624_v46, %v5129_v57  ;;  %v897_v48 = vmul.f32 %v4258_v6, %v5063_v54  ;;  %v798_v27 = vsel %vm226_vm0, %v796_v21, %v8678_v0  ;;  %v877_v37 = vrot.slane %v863_v34, 1  ;;  %v4247_v61 = vld [vmem:[%s5010_s3 + $0xb0] sm:$0x3]  ;;  %v4255_v21 = vld [vmem:[%s5010_s3 + $0xe0] sm:$0x1] }
  0x7a   : > { %v8680_v52 = vrot.slane %v5629_v42, 1  ;;  %v5642_v55 = vmul.f32 %v5620_v51, %v5063_v54  ;;  %4261 = vst [vmem:[%s5213_s6 + $0x40] sm:$0xff] %v922_v35  ;;  %v774_v19 = vadd.f32 %v770_v39, %v762_v9  ;;  %v832_v6 = vsel %vm261_vm1, %v830_v38, %v8681_v62  ;;  %v4236_v46 = vld [vmem:[%s5010_s3 + $0x88] sm:$0x3] }
  0x7b   : > { %v911_v63 = vrot.slane %v897_v48, 2  ;;  %v705_v11 = vmul.f32 %v4231_v45, %v4989_v12  ;;  %v695_v31 = vmul.f32 %v5082_v2, %v4986_v10  ;;  %v739_v39 = vmul.f32 %v4235_v1, %v4993_v14  ;;  %v4259_v48 = vld [vmem:[%s5010_s3 + $0xe0] sm:$0x3] }
  0x7c   : > { %v879_v34 = vsel %vm226_vm0, %v877_v37, %v8680_v52  ;;  %v8682_v0 = vrot.slane %v5642_v55, 2  ;;  %v808_v35 = vadd.f32 %v798_v27, %v774_v19  ;;  %v785_v38 = vmul.f32 %v4243_v23, %v5002_v20 }
  0x7d   : > { %v719_v9 = vrot.slane %v705_v11, 1  ;;  %v819_v45 = vmul.f32 %v4247_v61, %v5014_v25  ;;  %v753_v52 = vrot.slane %v739_v39, 2  ;;  %v771_v62 = vmul.f32 %v5323_v3, %v4997_v16  ;;  %v4232_v61 = vld [vmem:[%s5010_s3 + $0x88] sm:$0x1] }
  0x7e   : > { %v913_v37 = vsel %vm261_vm1, %v911_v63, %v8682_v0  ;;  %v866_v2 = vmul.f32 %v4255_v21, %v5021_v29  ;;  %v842_v27 = vadd.f32 %v832_v6, %v808_v35  ;;  %v799_v1 = vrot.slane %v785_v38, 1  ;;  %v4244_v21 = vld [vmem:[%s5010_s3 + $0xb8] sm:$0x1] }
  0x7f   : > { %v720_v11 = vsel %vm226_vm0, %v714_v49, %v719_v9  ;;  %v833_v23 = vrot.slane %v819_v45, 2  ;;  %v754_v63 = vsel %vm261_vm1, %v748_v40, %v753_v52  ;;  %v900_v0 = vmul.f32 %v4259_v48, %v5029_v33  ;;  %v4248_v40 = vld [vmem:[%s5010_s3 + $0xb8] sm:$0x3] }
  0x80   : > { %v729_v19 = vadd.f32 %v720_v11, %v695_v31  ;;  %v880_v39 = vrot.slane %v866_v2, 1  ;;  %v855_v4 = vadd.f32 %v851_v59, %v842_v27  ;;  %v8863_v6 = vrot.slane %v5528_v17, 1  ;;  %v4256_v2 = vld [vmem:[%s5010_s3 + $0xe8] sm:$0x1] }
  0x81   : > { %v8864_v49 = vrot.slane %v5538_v32, 2  ;;  %v852_v47 = vmul.f32 %v5546_v36, %v5019_v28  ;;  %v914_v52 = vrot.slane %v900_v0, 2  ;;  %v696_v9 = vmul.f32 %v5171_v22, %v5098_v18 }
  0x82   : > { %v800_v53 = vsel %vm226_vm0, %v8863_v6, %v799_v1  ;;  %v763_v31 = vadd.f32 %v754_v63, %v729_v19  ;;  %v706_v59 = vmul.f32 %v4232_v61, %v4991_v13  ;;  %v889_v38 = vadd.f32 %v879_v34, %v855_v4  ;;  %v4260_v4 = vld [vmem:[%s5010_s3 + $0xe8] sm:$0x3] }
  0x83   : > { %v834_v35 = vsel %vm261_vm1, %v8864_v49, %v833_v23  ;;  %v8865_v17 = vrot.slane %v5555_v7, 1  ;;  %v740_v32 = vmul.f32 %v4236_v46, %v4995_v15  ;;  %v786_v48 = vmul.f32 %v4244_v21, %v5012_v24  ;;  %v4269_v21 = vld [vmem:[%s5010_s3 + $0x90] sm:$0xfe] }
  0x84   : > { %v775_v27 = vadd.f32 %v771_v62, %v763_v31  ;;  %v721_v11 = vrot.slane %v706_v59, 1  ;;  %v772_v0 = vmul.f32 %v5398_v44, %v5117_v43  ;;  %v820_v22 = vmul.f32 %v4248_v40, %v5016_v26 }
  0x85   : > { %v881_v45 = vsel %vm226_vm0, %v8865_v17, %v880_v39  ;;  %v923_v34 = vadd.f32 %v913_v37, %v889_v38  ;;  %v8866_v7 = vrot.slane %v5564_v60, 2  ;;  %v755_v46 = vrot.slane %v740_v32, 2 }
  0x86   : > { %v801_v23 = vrot.slane %v786_v48, 1  ;;  %v809_v61 = vadd.f32 %v800_v53, %v775_v27  ;;  %v8867_v19 = vrot.slane %v5580_v56, 1  ;;  %v835_v63 = vrot.slane %v820_v22, 2  ;;  %v4273_v56 = vld [vmem:[%s5010_s3 + $0x90] sm:$0xfc] }
  0x87   : > { %v915_v1 = vsel %vm261_vm1, %v8866_v7, %v914_v52  ;;  %v867_v39 = vmul.f32 %v4256_v2, %v5023_v30  ;;  %4262 = vst.msk [vmem:[%s5213_s6 + $0x48] sm:$0xff] %vm443_vm2, %v923_v34  ;;  %v8868_v37 = vrot.slane %v5589_v50, 2  ;;  %v853_v49 = vmul.f32 %v5620_v51, %v5129_v57  ;;  %v4281_v27 = vld [vmem:[%s5010_s3 + $0xc0] sm:$0xfe] }
  0x88   : > { %v722_v62 = vsel %vm226_vm0, %v8867_v19, %v721_v11  ;;  %v901_v53 = vmul.f32 %v4260_v4, %v5063_v54  ;;  %v843_v40 = vadd.f32 %v834_v35, %v809_v61  ;;  %v8869_v31 = vrot.slane %v5601_v8, 1  ;;  %v4285_v7 = vld [vmem:[%s5010_s3 + $0xc0] sm:$0xfc] }
  0x89   : > { %v730_v6 = vadd.f32 %v722_v62, %v696_v9  ;;  %v756_v60 = vsel %vm261_vm1, %v8868_v37, %v755_v46  ;;  %v8870_v59 = vrot.slane %v5612_v58, 2  ;;  %v882_v50 = vrot.slane %v867_v39, 1 }
  0x8a   : > { %v802_v52 = vsel %vm226_vm0, %v8869_v31, %v801_v23  ;;  %v935_v17 = vmul.f32 %v5337_v5, %v4986_v10  ;;  %v943_v32 = vmul.f32 %v4269_v21, %v4989_v12  ;;  %v5728_v48 = vmul.f32 %v5323_v3, %v4989_v12 }
  0x8b   : > { %v836_v9 = vsel %vm261_vm1, %v8870_v59, %v835_v63  ;;  %v764_v38 = vadd.f32 %v756_v60, %v730_v6  ;;  %v856_v35 = vadd.f32 %v852_v47, %v843_v40  ;;  %v916_v8 = vrot.slane %v901_v53, 2  ;;  %v4297_v40 = vld [vmem:[%s5010_s3 + $0xf0] sm:$0xfc] }
  0x8c   : > { %v977_v2 = vmul.f32 %v4273_v56, %v4993_v14  ;;  %v5733_v58 = vmul.f32 %v5323_v3, %v4993_v14  ;;  %v8871_v22 = vrot.slane %v5629_v42, 1  ;;  %v955_v4 = vrot.slane %v943_v32, 1 }
  0x8d   : > { %v776_v11 = vadd.f32 %v772_v0, %v764_v38  ;;  %v956_v34 = vrot.slane %v5728_v48, 1  ;;  %v890_v46 = vadd.f32 %v881_v45, %v856_v35  ;;  %v1011_v61 = vmul.f32 %v5559_v41, %v4997_v16  ;;  %v4293_v45 = vld [vmem:[%s5010_s3 + $0xf0] sm:$0xfe] }
  0x8e   : > { %v883_v5 = vsel %vm226_vm0, %v8871_v22, %v882_v50  ;;  %v989_v47 = vrot.slane %v977_v2, 2  ;;  %v990_v23 = vrot.slane %v5733_v58, 2  ;;  %v1023_v0 = vmul.f32 %v4281_v27, %v5002_v20  ;;  %v5768_v50 = vld [vmem:[%s5010_s3 + $0x100] sm:$0xff]  ;;  %v5781_v2 = vld [vmem:[%s5010_s3 + $0xf0] sm:$0xff]  ;;  %v4274_v22 = vld [vmem:[%s5010_s3 + $0x98] sm:$0xfc] }
  0x8f   : > { %v810_v19 = vadd.f32 %v802_v52, %v776_v11  ;;  %v957_v42 = vsel %vm226_vm0, %v955_v4, %v956_v34  ;;  %v5750_v62 = vmul.f32 %v5546_v36, %v5002_v20  ;;  %v924_v63 = vadd.f32 %v915_v1, %v890_v46 }
  0x90   : > { %v969_v39 = vadd.f32 %v957_v42, %v935_v17  ;;  %v991_v21 = vsel %vm261_vm1, %v989_v47, %v990_v23  ;;  %v1057_v6 = vmul.f32 %v4285_v7, %v5014_v25  ;;  %v1035_v60 = vrot.slane %v1023_v0, 1 }
  0x91   : > { %v844_v37 = vadd.f32 %v836_v9, %v810_v19  ;;  %v8691_v53 = vrot.slane %v5750_v62, 1  ;;  %v5760_v56 = vmul.f32 %v5546_v36, %v5014_v25  ;;  %4263 = vst [vmem:[%s5213_s6 + $0x50] sm:$0xff] %v924_v63  ;;  %v8872_v1 = vrot.slane %v5642_v55, 2  ;;  %v4270_v55 = vld [vmem:[%s5010_s3 + $0x98] sm:$0xfe] }
  0x92   : > { %v1003_v52 = vadd.f32 %v991_v21, %v969_v39  ;;  %v1069_v59 = vrot.slane %v1057_v6, 2  ;;  %v1104_v9 = vmul.f32 %v4293_v45, %v5021_v29  ;;  %v5777_v35 = vmul.f32 %v5768_v50, %v5021_v29  ;;  %v4282_v45 = vld [vmem:[%s5010_s3 + $0xc8] sm:$0xfe] }
  0x93   : > { %v917_v31 = vsel %vm261_vm1, %v8872_v1, %v916_v8  ;;  %v857_v38 = vadd.f32 %v853_v49, %v844_v37  ;;  %v1037_v17 = vsel %vm226_vm0, %v1035_v60, %v8691_v53  ;;  %v8689_v32 = vrot.slane %v5760_v56, 2  ;;  %v4286_v37 = vld [vmem:[%s5010_s3 + $0xc8] sm:$0xfc] }
  0x94   : > { %v1015_v8 = vadd.f32 %v1011_v61, %v1003_v52  ;;  %v1116_v27 = vrot.slane %v1104_v9, 1  ;;  %v1138_v11 = vmul.f32 %v4297_v40, %v5029_v33  ;;  %v5786_v49 = vmul.f32 %v5768_v50, %v5029_v33 }
  0x95   : > { %v891_v4 = vadd.f32 %v883_v5, %v857_v38  ;;  %v1071_v7 = vsel %vm261_vm1, %v1069_v59, %v8689_v32  ;;  %v1092_v46 = vmul.f32 %v5781_v2, %v5019_v28  ;;  %v8688_v47 = vrot.slane %v5777_v35, 1  ;;  %v8873_v5 = vld [vmem:[#allocation5_spill] sm:$0xff] }
  0x96   : > { %v1049_v61 = vadd.f32 %v1037_v17, %v1015_v8  ;;  %v1150_v19 = vrot.slane %v1138_v11, 2  ;;  %v8687_v42 = vrot.slane %v5786_v49, 2  ;;  %v944_v0 = vmul.f32 %v4270_v55, %v4991_v13  ;;  %v4294_v11 = vld [vmem:[%s5010_s3 + $0xf8] sm:$0xfe] }
  0x97   : > { %v925_v63 = vadd.f32 %v917_v31, %v891_v4  ;;  %v936_v39 = vmul.f32 %v8873_v5, %v5098_v18  ;;  %v5802_v21 = vmul.f32 %v5398_v44, %v4991_v13  ;;  %v978_v6 = vmul.f32 %v4274_v22, %v4995_v15  ;;  %v8874_v4 = vld [vmem:[#allocation6_spill] sm:$0xff] }
  0x98   : > { %v1083_v60 = vadd.f32 %v1071_v7, %v1049_v61  ;;  %v1118_v40 = vsel %vm226_vm0, %v1116_v27, %v8688_v47  ;;  %v958_v1 = vrot.slane %v944_v0, 1  ;;  %v5811_v31 = vmul.f32 %v5398_v44, %v4995_v15 }
  0x99   : > { %4264 = vst.msk [vmem:[%s5213_s6 + $0x58] sm:$0xff] %vm443_vm2, %v925_v63  ;;  %v1152_v52 = vsel %vm261_vm1, %v1150_v19, %v8687_v42  ;;  %v8686_v59 = vrot.slane %v5802_v21, 1  ;;  %v992_v9 = vrot.slane %v978_v6, 2  ;;  %v1024_v38 = vmul.f32 %v4282_v45, %v5012_v24  ;;  %v4298_v19 = vld [vmem:[%s5010_s3 + $0xf8] sm:$0xfc]  ;;  %v5842_v6 = vld [vmem:[%s5010_s3 + $0x108] sm:$0xff] }
  0x9a   : > { %v1096_v17 = vadd.f32 %v1092_v46, %v1083_v60  ;;  %v8685_v55 = vrot.slane %v5811_v31, 2  ;;  %v5823_v8 = vmul.f32 %v5620_v51, %v5012_v24  ;;  %v1058_v27 = vmul.f32 %v4286_v37, %v5016_v26 }
  0x9b   : > { %v960_v22 = vsel %vm226_vm0, %v958_v1, %v8686_v59  ;;  %v1012_v7 = vmul.f32 %v8874_v4, %v5117_v43  ;;  %v1038_v61 = vrot.slane %v1024_v38, 1  ;;  %v5834_v46 = vmul.f32 %v5620_v51, %v5016_v26  ;;  %v5846_v1 = vld [vmem:[%s5010_s3 + $0xf8] sm:$0xff] }
  0x9c   : > { %v1130_v0 = vadd.f32 %v1118_v40, %v1096_v17  ;;  %v970_v45 = vadd.f32 %v960_v22, %v936_v39  ;;  %v994_v63 = vsel %vm261_vm1, %v992_v9, %v8685_v55  ;;  %v8690_v5 = vrot.slane %v5823_v8, 1  ;;  %8875 = vst [vmem:[#allocation5_spill] sm:$0xff] %v5846_v1  ;;  %v4271_v40 = vld [vmem:[%s5010_s3 + $0xb0] sm:$0x1] }
  0x9d   : > { %v1072_v37 = vrot.slane %v1058_v27, 2  ;;  %v8693_v60 = vrot.slane %v5834_v46, 2  ;;  %v1105_v38 = vmul.f32 %v4294_v11, %v5023_v30  ;;  %v5851_v39 = vmul.f32 %v5842_v6, %v5023_v30  ;;  %v4275_v55 = vld [vmem:[%s5010_s3 + $0xb0] sm:$0x3] }
  0x9e   : > { %v1164_v9 = vadd.f32 %v1152_v52, %v1130_v0  ;;  %v1004_v17 = vadd.f32 %v994_v63, %v970_v45  ;;  %v1093_v22 = vmul.f32 %v5846_v1, %v5129_v57  ;;  %v1139_v27 = vmul.f32 %v4298_v19, %v5063_v54  ;;  %v4283_v52 = vld [vmem:[%s5010_s3 + $0xe0] sm:$0x1]  ;;  %v4276_v1 = vld [vmem:[%s5010_s3 + $0xb8] sm:$0x3] }
  0x9f   : > { %v1040_v59 = vsel %vm226_vm0, %v1038_v61, %v8690_v5  ;;  %v1119_v42 = vrot.slane %v1105_v38, 1  ;;  %v8692_v11 = vrot.slane %v5851_v39, 1  ;;  %v5864_v47 = vmul.f32 %v5842_v6, %v5063_v54  ;;  %v4287_v0 = vld [vmem:[%s5010_s3 + $0xe0] sm:$0x3]  ;;  %v4295_v61 = vld [vmem:[%s5010_s3 + $0x110] sm:$0x1] }
  0xa0   : > { %4301 = vst [vmem:[%s5213_s6 + $0x60] sm:$0xff] %v1164_v9  ;;  %v1016_v45 = vadd.f32 %v1012_v7, %v1004_v17  ;;  %v1074_v19 = vsel %vm261_vm1, %v1072_v37, %v8693_v60  ;;  %v1153_v63 = vrot.slane %v1139_v27, 2  ;;  %v947_v32 = vmul.f32 %v4271_v40, %v4989_v12  ;;  %v4299_v27 = vld [vmem:[%s5010_s3 + $0x110] sm:$0x3] }
  0xa1   : > { %v1121_v38 = vsel %vm226_vm0, %v1119_v42, %v8692_v11  ;;  %v8694_v5 = vrot.slane %v5864_v47, 2  ;;  %v937_v53 = vmul.f32 %v5323_v3, %v4986_v10  ;;  %v981_v7 = vmul.f32 %v4275_v55, %v4993_v14 }
  0xa2   : > { %v1050_v9 = vadd.f32 %v1040_v59, %v1016_v45  ;;  %v961_v17 = vrot.slane %v947_v32, 1  ;;  %v1027_v37 = vmul.f32 %v4283_v52, %v5002_v20  ;;  %v1061_v40 = vmul.f32 %v4287_v0, %v5014_v25  ;;  %v4272_v0 = vld [vmem:[%s5010_s3 + $0xb8] sm:$0x1] }
  0xa3   : > { %v1155_v42 = vsel %vm261_vm1, %v1153_v63, %v8694_v5  ;;  %v995_v11 = vrot.slane %v981_v7, 2  ;;  %v1013_v60 = vmul.f32 %v5546_v36, %v4997_v16  ;;  %v1108_v3 = vmul.f32 %v4295_v61, %v5021_v29  ;;  %v4284_v61 = vld [vmem:[%s5010_s3 + $0xe8] sm:$0x1] }
  0xa4   : > { %v1084_v59 = vadd.f32 %v1074_v19, %v1050_v9  ;;  %v962_v32 = vsel %vm226_vm0, %v956_v34, %v961_v17  ;;  %v1041_v55 = vrot.slane %v1027_v37, 1  ;;  %v1075_v52 = vrot.slane %v1061_v40, 2 }
  0xa5   : > { %v971_v45 = vadd.f32 %v962_v32, %v937_v53  ;;  %v996_v63 = vsel %vm261_vm1, %v990_v23, %v995_v11  ;;  %v1122_v7 = vrot.slane %v1108_v3, 1  ;;  %v1142_v5 = vmul.f32 %v4299_v27, %v5029_v33  ;;  %v4288_v23 = vld [vmem:[%s5010_s3 + $0xe8] sm:$0x3]  ;;  %v4296_v3 = vld [vmem:[%s5010_s3 + $0x118] sm:$0x1] }
  0xa6   : > { %v1097_v4 = vadd.f32 %v1093_v22, %v1084_v59  ;;  %v8876_v19 = vrot.slane %v5750_v62, 1  ;;  %v8877_v34 = vrot.slane %v5760_v56, 2  ;;  %v1094_v58 = vmul.f32 %v5768_v50, %v5019_v28 }
  0xa7   : > { %v1005_v53 = vadd.f32 %v996_v63, %v971_v45  ;;  %v1156_v11 = vrot.slane %v1142_v5, 2  ;;  %v938_v17 = vmul.f32 %v5398_v44, %v5098_v18  ;;  %v948_v22 = vmul.f32 %v4272_v0, %v4991_v13 }
  0xa8   : > { %v1042_v48 = vsel %vm226_vm0, %v8876_v19, %v1041_v55  ;;  %v1076_v9 = vsel %vm261_vm1, %v8877_v34, %v1075_v52  ;;  %v1131_v37 = vadd.f32 %v1121_v38, %v1097_v4  ;;  %v8878_v62 = vrot.slane %v5777_v35, 1  ;;  %v4300_v4 = vld [vmem:[%s5010_s3 + $0x118] sm:$0x3] }
  0xa9   : > { %v982_v56 = vmul.f32 %v4276_v1, %v4995_v15  ;;  %v1028_v27 = vmul.f32 %v4284_v61, %v5012_v24  ;;  %v1017_v59 = vadd.f32 %v1013_v60, %v1005_v53  ;;  %v963_v32 = vrot.slane %v948_v22, 1  ;;  %v4309_v61 = vld [vmem:[%s5010_s3 + $0xc0] sm:$0xfe] }
  0xaa   : > { %v1123_v40 = vsel %vm226_vm0, %v8878_v62, %v1122_v7  ;;  %v1014_v5 = vmul.f32 %v5620_v51, %v5117_v43  ;;  %v1062_v44 = vmul.f32 %v4288_v23, %v5016_v26  ;;  %v1165_v38 = vadd.f32 %v1155_v42, %v1131_v37 }
  0xab   : > { %v8879_v35 = vrot.slane %v5786_v49, 2  ;;  %v997_v1 = vrot.slane %v982_v56, 2  ;;  %v1043_v52 = vrot.slane %v1028_v27, 1  ;;  %v1051_v0 = vadd.f32 %v1042_v48, %v1017_v59  ;;  %v4321_v59 = vld [vmem:[%s5010_s3 + $0xf0] sm:$0xfe] }
  0xac   : > { %v8880_v45 = vrot.slane %v5802_v21, 1  ;;  %v1077_v63 = vrot.slane %v1062_v44, 2  ;;  %v1109_v7 = vmul.f32 %v4296_v3, %v5023_v30  ;;  %4302 = vst.msk [vmem:[%s5213_s6 + $0x68] sm:$0xff] %vm443_vm2, %v1165_v38  ;;  %v8881_v42 = vrot.slane %v5811_v31, 2  ;;  %v4313_v21 = vld [vmem:[%s5010_s3 + $0xc0] sm:$0xfc] }
  0xad   : > { %v1157_v55 = vsel %vm261_vm1, %v8879_v35, %v1156_v11  ;;  %v1095_v34 = vmul.f32 %v5842_v6, %v5129_v57  ;;  %v1143_v48 = vmul.f32 %v4300_v4, %v5063_v54  ;;  %v1085_v23 = vadd.f32 %v1076_v9, %v1051_v0  ;;  %v4325_v35 = vld [vmem:[%s5010_s3 + $0xf0] sm:$0xfc] }
  0xae   : > { %v964_v60 = vsel %vm226_vm0, %v8880_v45, %v963_v32  ;;  %v998_v49 = vsel %vm261_vm1, %v8881_v42, %v997_v1  ;;  %v8882_v53 = vrot.slane %v5823_v8, 1  ;;  %v8883_v22 = vrot.slane %v5834_v46, 2 }
  0xaf   : > { %v972_v19 = vadd.f32 %v964_v60, %v938_v17  ;;  %v1124_v31 = vrot.slane %v1109_v7, 1  ;;  %v1177_v62 = vmul.f32 %v5559_v41, %v4986_v10  ;;  %v1185_v56 = vmul.f32 %v4309_v61, %v4989_v12 }
  0xb0   : > { %v1044_v11 = vsel %vm226_vm0, %v8882_v53, %v1043_v52  ;;  %v1078_v17 = vsel %vm261_vm1, %v8883_v22, %v1077_v63  ;;  %v5950_v27 = vmul.f32 %v5546_v36, %v4989_v12  ;;  %v1098_v9 = vadd.f32 %v1094_v58, %v1085_v23  ;;  %v4337_v23 = vld [vmem:[%s5010_s3 + $0x120] sm:$0xfc] }
  0xb1   : > { %v1006_v37 = vadd.f32 %v998_v49, %v972_v19  ;;  %v1158_v8 = vrot.slane %v1143_v48, 2  ;;  %v1219_v3 = vmul.f32 %v4313_v21, %v4993_v14  ;;  %v5955_v46 = vmul.f32 %v5546_v36, %v4993_v14 }
  0xb2   : > { %v8884_v44 = vrot.slane %v5851_v39, 1  ;;  %v1197_v4 = vrot.slane %v1185_v56, 1  ;;  %v1198_v38 = vrot.slane %v5950_v27, 1  ;;  %v1132_v1 = vadd.f32 %v1123_v40, %v1098_v9  ;;  %v4333_v40 = vld [vmem:[%s5010_s3 + $0x120] sm:$0xfe] }
  0xb3   : > { %v1018_v32 = vadd.f32 %v1014_v5, %v1006_v37  ;;  %v1231_v58 = vrot.slane %v1219_v3, 2  ;;  %v1232_v52 = vrot.slane %v5955_v46, 2  ;;  %v1253_v0 = vmul.f32 %v5781_v2, %v4997_v16  ;;  %v6003_v3 = vld [vmem:[%s5010_s3 + $0x120] sm:$0xff] }
  0xb4   : > { %v1125_v41 = vsel %vm226_vm0, %v8884_v44, %v1124_v31  ;;  %v1199_v39 = vsel %vm226_vm0, %v1197_v4, %v1198_v38  ;;  %v1265_v5 = vmul.f32 %v4321_v59, %v5002_v20  ;;  %v5972_v60 = vmul.f32 %v5768_v50, %v5002_v20  ;;  %v5990_v31 = vld [vmem:[%s5010_s3 + $0x130] sm:$0xff]  ;;  %v4314_v44 = vld [vmem:[%s5010_s3 + $0xc8] sm:$0xfc] }
  0xb5   : > { %v1052_v45 = vadd.f32 %v1044_v11, %v1018_v32  ;;  %v1166_v63 = vadd.f32 %v1157_v55, %v1132_v1  ;;  %v1211_v7 = vadd.f32 %v1199_v39, %v1177_v62  ;;  %v1233_v61 = vsel %vm261_vm1, %v1231_v58, %v1232_v52 }
  0xb6   : > { %v1299_v19 = vmul.f32 %v4325_v35, %v5014_v25  ;;  %v1277_v49 = vrot.slane %v1265_v5, 1  ;;  %v8703_v48 = vrot.slane %v5972_v60, 1  ;;  %v5982_v21 = vmul.f32 %v5768_v50, %v5014_v25 }
  0xb7   : > { %v1086_v42 = vadd.f32 %v1078_v17, %v1052_v45  ;;  %4303 = vst [vmem:[%s5213_s6 + $0x70] sm:$0xff] %v1166_v63  ;;  %v8885_v55 = vrot.slane %v5864_v47, 2  ;;  %v1245_v11 = vadd.f32 %v1233_v61, %v1211_v7  ;;  %v1346_v17 = vmul.f32 %v4333_v40, %v5021_v29  ;;  %v4310_v47 = vld [vmem:[%s5010_s3 + $0xc8] sm:$0xfe]  ;;  %v4322_v40 = vld [vmem:[%s5010_s3 + $0xf8] sm:$0xfe] }
  0xb8   : > { %v1311_v22 = vrot.slane %v1299_v19, 2  ;;  %v1279_v62 = vsel %vm226_vm0, %v1277_v49, %v8703_v48  ;;  %v8701_v56 = vrot.slane %v5982_v21, 2  ;;  %v5999_v9 = vmul.f32 %v5990_v31, %v5021_v29 }
  0xb9   : > { %v1159_v53 = vsel %vm261_vm1, %v8885_v55, %v1158_v8  ;;  %v1099_v37 = vadd.f32 %v1095_v34, %v1086_v42  ;;  %v1257_v8 = vadd.f32 %v1253_v0, %v1245_v11  ;;  %v1358_v59 = vrot.slane %v1346_v17, 1  ;;  %v4326_v42 = vld [vmem:[%s5010_s3 + $0xf8] sm:$0xfc] }
  0xba   : > { %v1380_v32 = vmul.f32 %v4337_v23, %v5029_v33  ;;  %v6008_v34 = vmul.f32 %v5990_v31, %v5029_v33  ;;  %v1313_v35 = vsel %vm261_vm1, %v1311_v22, %v8701_v56  ;;  %v1334_v1 = vmul.f32 %v6003_v3, %v5019_v28 }
  0xbb   : > { %v1133_v4 = vadd.f32 %v1125_v41, %v1099_v37  ;;  %v8700_v58 = vrot.slane %v5999_v9, 1  ;;  %v1291_v0 = vadd.f32 %v1279_v62, %v1257_v8  ;;  %v1186_v5 = vmul.f32 %v4310_v47, %v4991_v13  ;;  %v8886_v41 = vld [vmem:[#allocation6_spill] sm:$0xff] }
  0xbc   : > { %v1392_v45 = vrot.slane %v1380_v32, 2  ;;  %v8699_v39 = vrot.slane %v6008_v34, 2  ;;  %v1178_v7 = vmul.f32 %v8886_v41, %v5098_v18  ;;  %v6024_v61 = vmul.f32 %v5620_v51, %v4991_v13  ;;  %v4334_v32 = vld [vmem:[%s5010_s3 + $0x128] sm:$0xfe] }
  0xbd   : > { %v1167_v63 = vadd.f32 %v1159_v53, %v1133_v4  ;;  %v1220_v19 = vmul.f32 %v4314_v44, %v4995_v15  ;;  %v1325_v49 = vadd.f32 %v1313_v35, %v1291_v0  ;;  %v1360_v23 = vsel %vm226_vm0, %v1358_v59, %v8700_v58  ;;  %v8887_v4 = vld [vmem:[#allocation5_spill] sm:$0xff] }
  0xbe   : > { %v1200_v55 = vrot.slane %v1186_v5, 1  ;;  %v6033_v53 = vmul.f32 %v5620_v51, %v4995_v15  ;;  %v1394_v11 = vsel %vm261_vm1, %v1392_v45, %v8699_v39  ;;  %v8698_v22 = vrot.slane %v6024_v61, 1  ;;  %v4338_v45 = vld [vmem:[%s5010_s3 + $0x128] sm:$0xfc] }
  0xbf   : > { %4304 = vst.msk [vmem:[%s5213_s6 + $0x78] sm:$0xff] %vm443_vm2, %v1167_v63  ;;  %v1234_v17 = vrot.slane %v1220_v19, 2  ;;  %v1266_v37 = vmul.f32 %v4322_v40, %v5012_v24  ;;  %v1338_v62 = vadd.f32 %v1334_v1, %v1325_v49  ;;  %v6045_v8 = vmul.f32 %v5842_v6, %v5012_v24  ;;  %v6064_v19 = vld [vmem:[%s5010_s3 + $0x138] sm:$0xff] }
  0xc0   : > { %v8697_v47 = vrot.slane %v6033_v53, 2  ;;  %v1300_v59 = vmul.f32 %v4326_v42, %v5016_v26  ;;  %v1202_v44 = vsel %vm226_vm0, %v1200_v55, %v8698_v22  ;;  %v1254_v35 = vmul.f32 %v8887_v4, %v5117_v43  ;;  %v6068_v55 = vld [vmem:[%s5010_s3 + $0x128] sm:$0xff] }
  0xc1   : > { %v1280_v0 = vrot.slane %v1266_v37, 1  ;;  %v6056_v1 = vmul.f32 %v5842_v6, %v5016_v26  ;;  %v1372_v5 = vadd.f32 %v1360_v23, %v1338_v62  ;;  %v1212_v40 = vadd.f32 %v1202_v44, %v1178_v7  ;;  %8888 = vst [vmem:[#allocation6_spill] sm:$0xff] %v6068_v55  ;;  %v4311_v23 = vld [vmem:[%s5010_s3 + $0xe0] sm:$0x1] }
  0xc2   : > { %v1236_v63 = vsel %vm261_vm1, %v1234_v17, %v8697_v47  ;;  %v8702_v41 = vrot.slane %v6045_v8, 1  ;;  %v1314_v42 = vrot.slane %v1300_v59, 2  ;;  %v1347_v37 = vmul.f32 %v4334_v32, %v5023_v30  ;;  %v4315_v47 = vld [vmem:[%s5010_s3 + $0xe0] sm:$0x3] }
  0xc3   : > { %v8705_v49 = vrot.slane %v6056_v1, 2  ;;  %v6073_v7 = vmul.f32 %v6064_v19, %v5023_v30  ;;  %v1406_v17 = vadd.f32 %v1394_v11, %v1372_v5  ;;  %v1246_v62 = vadd.f32 %v1236_v63, %v1212_v40  ;;  %v4323_v11 = vld [vmem:[%s5010_s3 + $0x110] sm:$0x1] }
  0xc4   : > { %v1335_v44 = vmul.f32 %v6068_v55, %v5129_v57  ;;  %v1381_v59 = vmul.f32 %v4338_v45, %v5063_v54  ;;  %v1282_v22 = vsel %vm226_vm0, %v1280_v0, %v8702_v41  ;;  %v1361_v39 = vrot.slane %v1347_v37, 1  ;;  %v4327_v5 = vld [vmem:[%s5010_s3 + $0x110] sm:$0x3]  ;;  %v4335_v0 = vld [vmem:[%s5010_s3 + $0x140] sm:$0x1] }
  0xc5   : > { %v8704_v32 = vrot.slane %v6073_v7, 1  ;;  %v6086_v58 = vmul.f32 %v6064_v19, %v5063_v54  ;;  %4341 = vst [vmem:[%s5213_s6 + $0x80] sm:$0xff] %v1406_v17  ;;  %v1258_v40 = vadd.f32 %v1254_v35, %v1246_v62  ;;  %v1316_v45 = vsel %vm261_vm1, %v1314_v42, %v8705_v49  ;;  %v4316_v55 = vld [vmem:[%s5010_s3 + $0xe8] sm:$0x3] }
  0xc6   : > { %v1395_v63 = vrot.slane %v1381_v59, 2  ;;  %v1189_v56 = vmul.f32 %v4311_v23, %v4989_v12  ;;  %v1179_v48 = vmul.f32 %v5546_v36, %v4986_v10  ;;  %v1223_v35 = vmul.f32 %v4315_v47, %v4993_v14  ;;  %v4339_v59 = vld [vmem:[%s5010_s3 + $0x140] sm:$0x3] }
  0xc7   : > { %v1363_v37 = vsel %vm226_vm0, %v1361_v39, %v8704_v32  ;;  %v8706_v41 = vrot.slane %v6086_v58, 2  ;;  %v1292_v17 = vadd.f32 %v1282_v22, %v1258_v40  ;;  %v1269_v42 = vmul.f32 %v4323_v11, %v5002_v20 }
  0xc8   : > { %v1203_v62 = vrot.slane %v1189_v56, 1  ;;  %v1303_v23 = vmul.f32 %v4327_v5, %v5014_v25  ;;  %v1237_v32 = vrot.slane %v1223_v35, 2  ;;  %v1255_v49 = vmul.f32 %v5768_v50, %v4997_v16  ;;  %v4312_v5 = vld [vmem:[%s5010_s3 + $0xe8] sm:$0x1] }
  0xc9   : > { %v1397_v39 = vsel %vm261_vm1, %v1395_v63, %v8706_v41  ;;  %v1350_v36 = vmul.f32 %v4335_v0, %v5021_v29  ;;  %v1326_v22 = vadd.f32 %v1316_v45, %v1292_v17  ;;  %v1283_v47 = vrot.slane %v1269_v42, 1  ;;  %v4324_v0 = vld [vmem:[%s5010_s3 + $0x118] sm:$0x1] }
  0xca   : > { %v1204_v56 = vsel %vm226_vm0, %v1198_v38, %v1203_v62  ;;  %v1317_v11 = vrot.slane %v1303_v23, 2  ;;  %v1238_v63 = vsel %vm261_vm1, %v1232_v52, %v1237_v32  ;;  %v1384_v41 = vmul.f32 %v4339_v59, %v5029_v33  ;;  %v4328_v52 = vld [vmem:[%s5010_s3 + $0x118] sm:$0x3] }
  0xcb   : > { %v1213_v40 = vadd.f32 %v1204_v56, %v1179_v48  ;;  %v1364_v35 = vrot.slane %v1350_v36, 1  ;;  %v1339_v4 = vadd.f32 %v1335_v44, %v1326_v22  ;;  %v8889_v45 = vrot.slane %v5972_v60, 1  ;;  %v4336_v36 = vld [vmem:[%s5010_s3 + $0x148] sm:$0x1] }
  0xcc   : > { %v8890_v38 = vrot.slane %v5982_v21, 2  ;;  %v1336_v46 = vmul.f32 %v5990_v31, %v5019_v28  ;;  %v1398_v32 = vrot.slane %v1384_v41, 2  ;;  %v1180_v62 = vmul.f32 %v5620_v51, %v5098_v18 }
  0xcd   : > { %v1284_v27 = vsel %vm226_vm0, %v8889_v45, %v1283_v47  ;;  %v1247_v48 = vadd.f32 %v1238_v63, %v1213_v40  ;;  %v1190_v44 = vmul.f32 %v4312_v5, %v4991_v13  ;;  %v1373_v42 = vadd.f32 %v1363_v37, %v1339_v4  ;;  %v4340_v4 = vld [vmem:[%s5010_s3 + $0x148] sm:$0x3] }
  0xce   : > { %v1318_v17 = vsel %vm261_vm1, %v8890_v38, %v1317_v11  ;;  %v8891_v60 = vrot.slane %v5999_v9, 1  ;;  %v1224_v21 = vmul.f32 %v4316_v55, %v4995_v15  ;;  %v1270_v59 = vmul.f32 %v4324_v0, %v5012_v24  ;;  %v4349_v0 = vld [vmem:[%s5010_s3 + $0xf0] sm:$0xfe] }
  0xcf   : > { %v1259_v22 = vadd.f32 %v1255_v49, %v1247_v48  ;;  %v1205_v56 = vrot.slane %v1190_v44, 1  ;;  %v1256_v41 = vmul.f32 %v5842_v6, %v5117_v43  ;;  %v1304_v51 = vmul.f32 %v4328_v52, %v5016_v26 }
  0xd0   : > { %v1365_v23 = vsel %vm226_vm0, %v8891_v60, %v1364_v35  ;;  %v1407_v37 = vadd.f32 %v1397_v39, %v1373_v42  ;;  %v8892_v9 = vrot.slane %v6008_v34, 2  ;;  %v1239_v55 = vrot.slane %v1224_v21, 2 }
  0xd1   : > { %v1285_v11 = vrot.slane %v1270_v59, 1  ;;  %v1293_v5 = vadd.f32 %v1284_v27, %v1259_v22  ;;  %v8893_v40 = vrot.slane %v6024_v61, 1  ;;  %v1319_v63 = vrot.slane %v1304_v51, 2  ;;  %v4353_v61 = vld [vmem:[%s5010_s3 + $0xf0] sm:$0xfc] }
  0xd2   : > { %v1399_v47 = vsel %vm261_vm1, %v8892_v9, %v1398_v32  ;;  %v1351_v35 = vmul.f32 %v4336_v36, %v5023_v30  ;;  %4342 = vst.msk [vmem:[%s5213_s6 + $0x88] sm:$0xff] %vm443_vm2, %v1407_v37  ;;  %v8894_v39 = vrot.slane %v6033_v53, 2  ;;  %v1337_v38 = vmul.f32 %v6064_v19, %v5129_v57  ;;  %v4361_v22 = vld [vmem:[%s5010_s3 + $0x120] sm:$0xfe] }
  0xd3   : > { %v1206_v49 = vsel %vm226_vm0, %v8893_v40, %v1205_v56  ;;  %v1385_v27 = vmul.f32 %v4340_v4, %v5063_v54  ;;  %v1327_v52 = vadd.f32 %v1318_v17, %v1293_v5  ;;  %v8895_v48 = vrot.slane %v6045_v8, 1  ;;  %v4365_v9 = vld [vmem:[%s5010_s3 + $0x120] sm:$0xfc] }
  0xd4   : > { %v1214_v45 = vadd.f32 %v1206_v49, %v1180_v62  ;;  %v1240_v34 = vsel %vm261_vm1, %v8894_v39, %v1239_v55  ;;  %v8896_v44 = vrot.slane %v6056_v1, 2  ;;  %v1366_v53 = vrot.slane %v1351_v35, 1 }
  0xd5   : > { %v1286_v32 = vsel %vm226_vm0, %v8895_v48, %v1285_v11  ;;  %v1419_v60 = vmul.f32 %v5781_v2, %v4986_v10  ;;  %v1427_v21 = vmul.f32 %v4349_v0, %v4989_v12  ;;  %v6172_v59 = vmul.f32 %v5768_v50, %v4989_v12 }
  0xd6   : > { %v1320_v62 = vsel %vm261_vm1, %v8896_v44, %v1319_v63  ;;  %v1248_v42 = vadd.f32 %v1240_v34, %v1214_v45  ;;  %v1340_v17 = vadd.f32 %v1336_v46, %v1327_v52  ;;  %v1400_v8 = vrot.slane %v1385_v27, 2  ;;  %v4377_v52 = vld [vmem:[%s5010_s3 + $0x150] sm:$0xfc] }
  0xd7   : > { %v1461_v36 = vmul.f32 %v4353_v61, %v4993_v14  ;;  %v6177_v1 = vmul.f32 %v5768_v50, %v4993_v14  ;;  %v8897_v51 = vrot.slane %v6073_v7, 1  ;;  %v1439_v4 = vrot.slane %v1427_v21, 1 }
  0xd8   : > { %v1260_v56 = vadd.f32 %v1256_v41, %v1248_v42  ;;  %v1440_v37 = vrot.slane %v6172_v59, 1  ;;  %v1374_v55 = vadd.f32 %v1365_v23, %v1340_v17  ;;  %v1495_v5 = vmul.f32 %v6003_v3, %v4997_v16  ;;  %v4373_v23 = vld [vmem:[%s5010_s3 + $0x150] sm:$0xfe] }
  0xd9   : > { %v1367_v2 = vsel %vm226_vm0, %v8897_v51, %v1366_v53  ;;  %v1473_v46 = vrot.slane %v1461_v36, 2  ;;  %v1474_v11 = vrot.slane %v6177_v1, 2  ;;  %v1507_v41 = vmul.f32 %v4361_v22, %v5002_v20  ;;  %v6212_v53 = vld [vmem:[%s5010_s3 + $0x160] sm:$0xff]  ;;  %v6225_v36 = vld [vmem:[%s5010_s3 + $0x150] sm:$0xff]  ;;  %v4354_v51 = vld [vmem:[%s5010_s3 + $0xf8] sm:$0xfc] }
  0xda   : > { %v1294_v40 = vadd.f32 %v1286_v32, %v1260_v56  ;;  %v1441_v7 = vsel %vm226_vm0, %v1439_v4, %v1440_v37  ;;  %v6194_v49 = vmul.f32 %v5990_v31, %v5002_v20  ;;  %v1408_v63 = vadd.f32 %v1399_v47, %v1374_v55 }
  0xdb   : > { %v1453_v35 = vadd.f32 %v1441_v7, %v1419_v60  ;;  %v1475_v0 = vsel %vm261_vm1, %v1473_v46, %v1474_v11  ;;  %v1541_v45 = vmul.f32 %v4365_v9, %v5014_v25  ;;  %v1519_v34 = vrot.slane %v1507_v41, 1 }
  0xdc   : > { %v1328_v39 = vadd.f32 %v1320_v62, %v1294_v40  ;;  %v8715_v27 = vrot.slane %v6194_v49, 1  ;;  %v6204_v61 = vmul.f32 %v5990_v31, %v5014_v25  ;;  %4343 = vst [vmem:[%s5213_s6 + $0x90] sm:$0xff] %v1408_v63  ;;  %v8898_v47 = vrot.slane %v6086_v58, 2  ;;  %v4350_v58 = vld [vmem:[%s5010_s3 + $0xf8] sm:$0xfe] }
  0xdd   : > { %v1487_v32 = vadd.f32 %v1475_v0, %v1453_v35  ;;  %v1553_v44 = vrot.slane %v1541_v45, 2  ;;  %v1588_v62 = vmul.f32 %v4373_v23, %v5021_v29  ;;  %v6221_v17 = vmul.f32 %v6212_v53, %v5021_v29  ;;  %v4362_v23 = vld [vmem:[%s5010_s3 + $0x128] sm:$0xfe] }
  0xde   : > { %v1401_v48 = vsel %vm261_vm1, %v8898_v47, %v1400_v8  ;;  %v1341_v42 = vadd.f32 %v1337_v38, %v1328_v39  ;;  %v1521_v60 = vsel %vm226_vm0, %v1519_v34, %v8715_v27  ;;  %v8713_v21 = vrot.slane %v6204_v61, 2  ;;  %v4366_v39 = vld [vmem:[%s5010_s3 + $0x128] sm:$0xfc] }
  0xdf   : > { %v1499_v8 = vadd.f32 %v1495_v5, %v1487_v32  ;;  %v1600_v22 = vrot.slane %v1588_v62, 1  ;;  %v1622_v56 = vmul.f32 %v4377_v52, %v5029_v33  ;;  %v6230_v38 = vmul.f32 %v6212_v53, %v5029_v33 }
  0xe0   : > { %v1375_v4 = vadd.f32 %v1367_v2, %v1341_v42  ;;  %v1555_v9 = vsel %vm261_vm1, %v1553_v44, %v8713_v21  ;;  %v1576_v55 = vmul.f32 %v6225_v36, %v5019_v28  ;;  %v8712_v46 = vrot.slane %v6221_v17, 1  ;;  %v8899_v2 = vld [vmem:[#allocation5_spill] sm:$0xff] }
  0xe1   : > { %v1533_v5 = vadd.f32 %v1521_v60, %v1499_v8  ;;  %v1634_v40 = vrot.slane %v1622_v56, 2  ;;  %v8711_v7 = vrot.slane %v6230_v38, 2  ;;  %v1428_v41 = vmul.f32 %v4350_v58, %v4991_v13  ;;  %v4374_v56 = vld [vmem:[%s5010_s3 + $0x158] sm:$0xfe] }
  0xe2   : > { %v1409_v63 = vadd.f32 %v1401_v48, %v1375_v4  ;;  %v1420_v35 = vmul.f32 %v8899_v2, %v5098_v18  ;;  %v6246_v0 = vmul.f32 %v5842_v6, %v4991_v13  ;;  %v1462_v45 = vmul.f32 %v4354_v51, %v4995_v15  ;;  %v8900_v4 = vld [vmem:[#allocation6_spill] sm:$0xff] }
  0xe3   : > { %v1567_v34 = vadd.f32 %v1555_v9, %v1533_v5  ;;  %v1602_v52 = vsel %vm226_vm0, %v1600_v22, %v8712_v46  ;;  %v1442_v47 = vrot.slane %v1428_v41, 1  ;;  %v6255_v48 = vmul.f32 %v5842_v6, %v4995_v15 }
  0xe4   : > { %4344 = vst.msk [vmem:[%s5213_s6 + $0x98] sm:$0xff] %vm443_vm2, %v1409_v63  ;;  %v1636_v32 = vsel %vm261_vm1, %v1634_v40, %v8711_v7  ;;  %v8710_v44 = vrot.slane %v6246_v0, 1  ;;  %v1476_v62 = vrot.slane %v1462_v45, 2  ;;  %v1508_v42 = vmul.f32 %v4362_v23, %v5012_v24  ;;  %v4378_v40 = vld [vmem:[%s5010_s3 + $0x158] sm:$0xfc]  ;;  %v6286_v45 = vld [vmem:[%s5010_s3 + $0x168] sm:$0xff] }
  0xe5   : > { %v1580_v60 = vadd.f32 %v1576_v55, %v1567_v34  ;;  %v8709_v58 = vrot.slane %v6255_v48, 2  ;;  %v6267_v8 = vmul.f32 %v6064_v19, %v5012_v24  ;;  %v1542_v22 = vmul.f32 %v4366_v39, %v5016_v26 }
  0xe6   : > { %v1444_v51 = vsel %vm226_vm0, %v1442_v47, %v8710_v44  ;;  %v1496_v9 = vmul.f32 %v8900_v4, %v5117_v43  ;;  %v1522_v5 = vrot.slane %v1508_v42, 1  ;;  %v6278_v55 = vmul.f32 %v6064_v19, %v5016_v26  ;;  %v6290_v47 = vld [vmem:[%s5010_s3 + $0x158] sm:$0xff] }
  0xe7   : > { %v1614_v41 = vadd.f32 %v1602_v52, %v1580_v60  ;;  %v1454_v23 = vadd.f32 %v1444_v51, %v1420_v35  ;;  %v1478_v63 = vsel %vm261_vm1, %v1476_v62, %v8709_v58  ;;  %v8714_v2 = vrot.slane %v6267_v8, 1  ;;  %8901 = vst [vmem:[#allocation5_spill] sm:$0xff] %v6290_v47  ;;  %v4351_v52 = vld [vmem:[%s5010_s3 + $0x110] sm:$0x1] }
  0xe8   : > { %v1556_v39 = vrot.slane %v1542_v22, 2  ;;  %v8717_v34 = vrot.slane %v6278_v55, 2  ;;  %v1589_v42 = vmul.f32 %v4374_v56, %v5023_v30  ;;  %v6295_v35 = vmul.f32 %v6286_v45, %v5023_v30  ;;  %v4355_v58 = vld [vmem:[%s5010_s3 + $0x110] sm:$0x3] }
  0xe9   : > { %v1648_v62 = vadd.f32 %v1636_v32, %v1614_v41  ;;  %v1488_v60 = vadd.f32 %v1478_v63, %v1454_v23  ;;  %v1577_v51 = vmul.f32 %v6290_v47, %v5129_v57  ;;  %v1623_v22 = vmul.f32 %v4378_v40, %v5063_v54  ;;  %v4363_v32 = vld [vmem:[%s5010_s3 + $0x140] sm:$0x1]  ;;  %v4356_v47 = vld [vmem:[%s5010_s3 + $0x118] sm:$0x3] }
  0xea   : > { %v1524_v44 = vsel %vm226_vm0, %v1522_v5, %v8714_v2  ;;  %v1603_v7 = vrot.slane %v1589_v42, 1  ;;  %v8716_v56 = vrot.slane %v6295_v35, 1  ;;  %v6308_v46 = vmul.f32 %v6286_v45, %v5063_v54  ;;  %v4367_v41 = vld [vmem:[%s5010_s3 + $0x140] sm:$0x3]  ;;  %v4375_v5 = vld [vmem:[%s5010_s3 + $0x170] sm:$0x1] }
  0xeb   : > { %4381 = vst [vmem:[%s5213_s6 + $0xa0] sm:$0xff] %v1648_v62  ;;  %v1500_v23 = vadd.f32 %v1496_v9, %v1488_v60  ;;  %v1558_v40 = vsel %vm261_vm1, %v1556_v39, %v8717_v34  ;;  %v1637_v63 = vrot.slane %v1623_v22, 2  ;;  %v1431_v21 = vmul.f32 %v4351_v52, %v4989_v12  ;;  %v4379_v22 = vld [vmem:[%s5010_s3 + $0x170] sm:$0x3] }
  0xec   : > { %v1605_v42 = vsel %vm226_vm0, %v1603_v7, %v8716_v56  ;;  %v8718_v2 = vrot.slane %v6308_v46, 2  ;;  %v1421_v27 = vmul.f32 %v5768_v50, %v4986_v10  ;;  %v1465_v9 = vmul.f32 %v4355_v58, %v4993_v14 }
  0xed   : > { %v1534_v62 = vadd.f32 %v1524_v44, %v1500_v23  ;;  %v1445_v60 = vrot.slane %v1431_v21, 1  ;;  %v1511_v39 = vmul.f32 %v4363_v32, %v5002_v20  ;;  %v1545_v52 = vmul.f32 %v4367_v41, %v5014_v25  ;;  %v4352_v41 = vld [vmem:[%s5010_s3 + $0x118] sm:$0x1] }
  0xee   : > { %v1639_v7 = vsel %vm261_vm1, %v1637_v63, %v8718_v2  ;;  %v1479_v56 = vrot.slane %v1465_v9, 2  ;;  %v1497_v34 = vmul.f32 %v5990_v31, %v4997_v16  ;;  %v1592_v50 = vmul.f32 %v4375_v5, %v5021_v29  ;;  %v4364_v5 = vld [vmem:[%s5010_s3 + $0x148] sm:$0x1] }
  0xef   : > { %v1568_v44 = vadd.f32 %v1558_v40, %v1534_v62  ;;  %v1446_v21 = vsel %vm226_vm0, %v1440_v37, %v1445_v60  ;;  %v1525_v58 = vrot.slane %v1511_v39, 1  ;;  %v1559_v32 = vrot.slane %v1545_v52, 2 }
  0xf0   : > { %v1455_v23 = vadd.f32 %v1446_v21, %v1421_v27  ;;  %v1480_v63 = vsel %vm261_vm1, %v1474_v11, %v1479_v56  ;;  %v1606_v9 = vrot.slane %v1592_v50, 1  ;;  %v1626_v2 = vmul.f32 %v4379_v22, %v5029_v33  ;;  %v4368_v11 = vld [vmem:[%s5010_s3 + $0x148] sm:$0x3]  ;;  %v4376_v50 = vld [vmem:[%s5010_s3 + $0x178] sm:$0x1] }
  0xf1   : > { %v1581_v4 = vadd.f32 %v1577_v51, %v1568_v44  ;;  %v8902_v40 = vrot.slane %v6194_v49, 1  ;;  %v8903_v37 = vrot.slane %v6204_v61, 2  ;;  %v1578_v1 = vmul.f32 %v6212_v53, %v5019_v28 }
  0xf2   : > { %v1489_v27 = vadd.f32 %v1480_v63, %v1455_v23  ;;  %v1640_v56 = vrot.slane %v1626_v2, 2  ;;  %v1422_v60 = vmul.f32 %v5842_v6, %v5098_v18  ;;  %v1432_v51 = vmul.f32 %v4352_v41, %v4991_v13 }
  0xf3   : > { %v1526_v59 = vsel %vm226_vm0, %v8902_v40, %v1525_v58  ;;  %v1560_v62 = vsel %vm261_vm1, %v8903_v37, %v1559_v32  ;;  %v1615_v39 = vadd.f32 %v1605_v42, %v1581_v4  ;;  %v8904_v49 = vrot.slane %v6221_v17, 1  ;;  %v4380_v4 = vld [vmem:[%s5010_s3 + $0x178] sm:$0x3] }
  0xf4   : > { %v1466_v61 = vmul.f32 %v4356_v47, %v4995_v15  ;;  %v1512_v22 = vmul.f32 %v4364_v5, %v5012_v24  ;;  %v1501_v44 = vadd.f32 %v1497_v34, %v1489_v27  ;;  %v1447_v21 = vrot.slane %v1432_v51, 1  ;;  %v4389_v5 = vld [vmem:[%s5010_s3 + $0x120] sm:$0xfe] }
  0xf5   : > { %v1607_v52 = vsel %vm226_vm0, %v8904_v49, %v1606_v9  ;;  %v1498_v2 = vmul.f32 %v6064_v19, %v5117_v43  ;;  %v1546_v6 = vmul.f32 %v4368_v11, %v5016_v26  ;;  %v1649_v42 = vadd.f32 %v1639_v7, %v1615_v39 }
  0xf6   : > { %v8905_v17 = vrot.slane %v6230_v38, 2  ;;  %v1481_v47 = vrot.slane %v1466_v61, 2  ;;  %v1527_v32 = vrot.slane %v1512_v22, 1  ;;  %v1535_v41 = vadd.f32 %v1526_v59, %v1501_v44  ;;  %v4401_v44 = vld [vmem:[%s5010_s3 + $0x150] sm:$0xfe] }
  0xf7   : > { %v8906_v23 = vrot.slane %v6246_v0, 1  ;;  %v1561_v63 = vrot.slane %v1546_v6, 2  ;;  %v1593_v9 = vmul.f32 %v4376_v50, %v5023_v30  ;;  %4382 = vst.msk [vmem:[%s5213_s6 + $0xa8] sm:$0xff] %vm443_vm2, %v1649_v42  ;;  %v8907_v7 = vrot.slane %v6255_v48, 2  ;;  %v4393_v0 = vld [vmem:[%s5010_s3 + $0x120] sm:$0xfc] }
  0xf8   : > { %v1641_v58 = vsel %vm261_vm1, %v8905_v17, %v1640_v56  ;;  %v1579_v37 = vmul.f32 %v6286_v45, %v5129_v57  ;;  %v1627_v59 = vmul.f32 %v4380_v4, %v5063_v54  ;;  %v1569_v11 = vadd.f32 %v1560_v62, %v1535_v41  ;;  %v4405_v17 = vld [vmem:[%s5010_s3 + $0x150] sm:$0xfc] }
  0xf9   : > { %v1448_v34 = vsel %vm226_vm0, %v8906_v23, %v1447_v21  ;;  %v1482_v38 = vsel %vm261_vm1, %v8907_v7, %v1481_v47  ;;  %v8908_v27 = vrot.slane %v6267_v8, 1  ;;  %v8909_v51 = vrot.slane %v6278_v55, 2 }
  0xfa   : > { %v1456_v40 = vadd.f32 %v1448_v34, %v1422_v60  ;;  %v1608_v48 = vrot.slane %v1593_v9, 1  ;;  %v1661_v49 = vmul.f32 %v6003_v3, %v4986_v10  ;;  %v1669_v61 = vmul.f32 %v4389_v5, %v4989_v12 }
  0xfb   : > { %v1528_v56 = vsel %vm226_vm0, %v8908_v27, %v1527_v32  ;;  %v1562_v60 = vsel %vm261_vm1, %v8909_v51, %v1561_v63  ;;  %v6394_v22 = vmul.f32 %v5990_v31, %v4989_v12  ;;  %v1582_v62 = vadd.f32 %v1578_v1, %v1569_v11  ;;  %v4417_v11 = vld [vmem:[%s5010_s3 + $0x180] sm:$0xfc] }
  0xfc   : > { %v1490_v39 = vadd.f32 %v1482_v38, %v1456_v40  ;;  %v1642_v8 = vrot.slane %v1627_v59, 2  ;;  %v1703_v50 = vmul.f32 %v4393_v0, %v4993_v14  ;;  %v6399_v55 = vmul.f32 %v5990_v31, %v4993_v14 }
  0xfd   : > { %v8910_v6 = vrot.slane %v6295_v35, 1  ;;  %v1681_v4 = vrot.slane %v1669_v61, 1  ;;  %v1682_v42 = vrot.slane %v6394_v22, 1  ;;  %v1616_v47 = vadd.f32 %v1607_v52, %v1582_v62  ;;  %v4413_v52 = vld [vmem:[%s5010_s3 + $0x180] sm:$0xfe] }
  0xfe   : > { %v1502_v21 = vadd.f32 %v1498_v2, %v1490_v39  ;;  %v1715_v1 = vrot.slane %v1703_v50, 2  ;;  %v1716_v32 = vrot.slane %v6399_v55, 2  ;;  %v1737_v41 = vmul.f32 %v6225_v36, %v4997_v16  ;;  %v6447_v50 = vld [vmem:[%s5010_s3 + $0x180] sm:$0xff] }
  0xff   : > { %v1609_v3 = vsel %vm226_vm0, %v8910_v6, %v1608_v48  ;;  %v1683_v35 = vsel %vm226_vm0, %v1681_v4, %v1682_v42  ;;  %v1749_v2 = vmul.f32 %v4401_v44, %v5002_v20  ;;  %v6416_v34 = vmul.f32 %v6212_v53, %v5002_v20  ;;  %v6434_v48 = vld [vmem:[%s5010_s3 + $0x190] sm:$0xff]  ;;  %v4394_v6 = vld [vmem:[%s5010_s3 + $0x128] sm:$0xfc] }
 0x100   : > { %v1536_v23 = vadd.f32 %v1528_v56, %v1502_v21  ;;  %v1650_v63 = vadd.f32 %v1641_v58, %v1616_v47  ;;  %v1695_v9 = vadd.f32 %v1683_v35, %v1661_v49  ;;  %v1717_v5 = vsel %vm261_vm1, %v1715_v1, %v1716_v32 }
 0x101   : > { %v1783_v40 = vmul.f32 %v4405_v17, %v5014_v25  ;;  %v1761_v38 = vrot.slane %v1749_v2, 1  ;;  %v8727_v59 = vrot.slane %v6416_v34, 1  ;;  %v6426_v0 = vmul.f32 %v6212_v53, %v5014_v25 }
 0x102   : > { %v1570_v7 = vadd.f32 %v1562_v60, %v1536_v23  ;;  %4383 = vst [vmem:[%s5213_s6 + $0xb0] sm:$0xff] %v1650_v63  ;;  %v8911_v58 = vrot.slane %v6308_v46, 2  ;;  %v1729_v56 = vadd.f32 %v1717_v5, %v1695_v9  ;;  %v1830_v60 = vmul.f32 %v4413_v52, %v5021_v29  ;;  %v4390_v46 = vld [vmem:[%s5010_s3 + $0x128] sm:$0xfe]  ;;  %v4402_v52 = vld [vmem:[%s5010_s3 + $0x158] sm:$0xfe] }
 0x103   : > { %v1795_v51 = vrot.slane %v1783_v40, 2  ;;  %v1763_v49 = vsel %vm226_vm0, %v1761_v38, %v8727_v59  ;;  %v8725_v61 = vrot.slane %v6426_v0, 2  ;;  %v6443_v62 = vmul.f32 %v6434_v48, %v5021_v29 }
 0x104   : > { %v1643_v27 = vsel %vm261_vm1, %v8911_v58, %v1642_v8  ;;  %v1583_v39 = vadd.f32 %v1579_v37, %v1570_v7  ;;  %v1741_v8 = vadd.f32 %v1737_v41, %v1729_v56  ;;  %v1842_v44 = vrot.slane %v1830_v60, 1  ;;  %v4406_v7 = vld [vmem:[%s5010_s3 + $0x158] sm:$0xfc] }
 0x105   : > { %v1864_v21 = vmul.f32 %v4417_v11, %v5029_v33  ;;  %v6452_v37 = vmul.f32 %v6434_v48, %v5029_v33  ;;  %v1797_v17 = vsel %vm261_vm1, %v1795_v51, %v8725_v61  ;;  %v1818_v47 = vmul.f32 %v6447_v50, %v5019_v28 }
 0x106   : > { %v1617_v4 = vadd.f32 %v1609_v3, %v1583_v39  ;;  %v8724_v1 = vrot.slane %v6443_v62, 1  ;;  %v1775_v41 = vadd.f32 %v1763_v49, %v1741_v8  ;;  %v1670_v2 = vmul.f32 %v4390_v46, %v4991_v13  ;;  %v8912_v3 = vld [vmem:[#allocation6_spill] sm:$0xff] }
 0x107   : > { %v1876_v23 = vrot.slane %v1864_v21, 2  ;;  %v8723_v35 = vrot.slane %v6452_v37, 2  ;;  %v1662_v9 = vmul.f32 %v8912_v3, %v5098_v18  ;;  %v6468_v5 = vmul.f32 %v6064_v19, %v4991_v13  ;;  %v4414_v21 = vld [vmem:[%s5010_s3 + $0x188] sm:$0xfe] }
 0x108   : > { %v1651_v63 = vadd.f32 %v1643_v27, %v1617_v4  ;;  %v1704_v40 = vmul.f32 %v4394_v6, %v4995_v15  ;;  %v1809_v38 = vadd.f32 %v1797_v17, %v1775_v41  ;;  %v1844_v11 = vsel %vm226_vm0, %v1842_v44, %v8724_v1  ;;  %v8913_v4 = vld [vmem:[#allocation5_spill] sm:$0xff] }
 0x109   : > { %v1684_v58 = vrot.slane %v1670_v2, 1  ;;  %v6477_v27 = vmul.f32 %v6064_v19, %v4995_v15  ;;  %v1878_v56 = vsel %vm261_vm1, %v1876_v23, %v8723_v35  ;;  %v8722_v51 = vrot.slane %v6468_v5, 1  ;;  %v4418_v23 = vld [vmem:[%s5010_s3 + $0x188] sm:$0xfc] }
 0x10a   : > { %4384 = vst.msk [vmem:[%s5213_s6 + $0xb8] sm:$0xff] %vm443_vm2, %v1651_v63  ;;  %v1718_v60 = vrot.slane %v1704_v40, 2  ;;  %v1750_v39 = vmul.f32 %v4402_v52, %v5012_v24  ;;  %v1822_v49 = vadd.f32 %v1818_v47, %v1809_v38  ;;  %v6489_v8 = vmul.f32 %v6286_v45, %v5012_v24  ;;  %v6508_v40 = vld [vmem:[%s5010_s3 + $0x198] sm:$0xff] }
 0x10b   : > { %v8721_v46 = vrot.slane %v6477_v27, 2  ;;  %v1784_v44 = vmul.f32 %v4406_v7, %v5016_v26  ;;  %v1686_v6 = vsel %vm226_vm0, %v1684_v58, %v8722_v51  ;;  %v1738_v17 = vmul.f32 %v8913_v4, %v5117_v43  ;;  %v6512_v58 = vld [vmem:[%s5010_s3 + $0x188] sm:$0xff] }
 0x10c   : > { %v1764_v41 = vrot.slane %v1750_v39, 1  ;;  %v6500_v47 = vmul.f32 %v6286_v45, %v5016_v26  ;;  %v1856_v2 = vadd.f32 %v1844_v11, %v1822_v49  ;;  %v1696_v52 = vadd.f32 %v1686_v6, %v1662_v9  ;;  %8914 = vst [vmem:[#allocation6_spill] sm:$0xff] %v6512_v58  ;;  %v4391_v11 = vld [vmem:[%s5010_s3 + $0x140] sm:$0x1] }
 0x10d   : > { %v1720_v63 = vsel %vm261_vm1, %v1718_v60, %v8721_v46  ;;  %v8726_v3 = vrot.slane %v6489_v8, 1  ;;  %v1798_v7 = vrot.slane %v1784_v44, 2  ;;  %v1831_v39 = vmul.f32 %v4414_v21, %v5023_v30  ;;  %v4395_v46 = vld [vmem:[%s5010_s3 + $0x140] sm:$0x3] }
 0x10e   : > { %v8729_v38 = vrot.slane %v6500_v47, 2  ;;  %v6517_v9 = vmul.f32 %v6508_v40, %v5023_v30  ;;  %v1890_v60 = vadd.f32 %v1878_v56, %v1856_v2  ;;  %v1730_v49 = vadd.f32 %v1720_v63, %v1696_v52  ;;  %v4403_v56 = vld [vmem:[%s5010_s3 + $0x170] sm:$0x1] }
 0x10f   : > { %v1819_v6 = vmul.f32 %v6512_v58, %v5129_v57  ;;  %v1865_v44 = vmul.f32 %v4418_v23, %v5063_v54  ;;  %v1766_v51 = vsel %vm226_vm0, %v1764_v41, %v8726_v3  ;;  %v1845_v35 = vrot.slane %v1831_v39, 1  ;;  %v4407_v2 = vld [vmem:[%s5010_s3 + $0x170] sm:$0x3]  ;;  %v4415_v41 = vld [vmem:[%s5010_s3 + $0x1a0] sm:$0x1] }
 0x110   : > { %v8728_v21 = vrot.slane %v6517_v9, 1  ;;  %v6530_v1 = vmul.f32 %v6508_v40, %v5063_v54  ;;  %4421 = vst [vmem:[%s5213_s6 + $0xc0] sm:$0xff] %v1890_v60  ;;  %v1742_v52 = vadd.f32 %v1738_v17, %v1730_v49  ;;  %v1800_v23 = vsel %vm261_vm1, %v1798_v7, %v8729_v38  ;;  %v4396_v58 = vld [vmem:[%s5010_s3 + $0x148] sm:$0x3] }
 0x111   : > { %v1879_v63 = vrot.slane %v1865_v44, 2  ;;  %v1673_v61 = vmul.f32 %v4391_v11, %v4989_v12  ;;  %v1663_v59 = vmul.f32 %v5990_v31, %v4986_v10  ;;  %v1707_v17 = vmul.f32 %v4395_v46, %v4993_v14  ;;  %v4419_v44 = vld [vmem:[%s5010_s3 + $0x1a0] sm:$0x3] }
 0x112   : > { %v1847_v39 = vsel %vm226_vm0, %v1845_v35, %v8728_v21  ;;  %v8730_v3 = vrot.slane %v6530_v1, 2  ;;  %v1776_v60 = vadd.f32 %v1766_v51, %v1742_v52  ;;  %v1753_v7 = vmul.f32 %v4403_v56, %v5002_v20 }
 0x113   : > { %v1687_v49 = vrot.slane %v1673_v61, 1  ;;  %v1787_v11 = vmul.f32 %v4407_v2, %v5014_v25  ;;  %v1721_v21 = vrot.slane %v1707_v17, 2  ;;  %v1739_v38 = vmul.f32 %v6212_v53, %v4997_v16  ;;  %v4392_v2 = vld [vmem:[%s5010_s3 + $0x148] sm:$0x1] }
 0x114   : > { %v1881_v35 = vsel %vm261_vm1, %v1879_v63, %v8730_v3  ;;  %v1834_v31 = vmul.f32 %v4415_v41, %v5021_v29  ;;  %v1810_v51 = vadd.f32 %v1800_v23, %v1776_v60  ;;  %v1767_v46 = vrot.slane %v1753_v7, 1  ;;  %v4404_v41 = vld [vmem:[%s5010_s3 + $0x178] sm:$0x1] }
 0x115   : > { %v1688_v61 = vsel %vm226_vm0, %v1682_v42, %v1687_v49  ;;  %v1801_v56 = vrot.slane %v1787_v11, 2  ;;  %v1722_v63 = vsel %vm261_vm1, %v1716_v32, %v1721_v21  ;;  %v1868_v3 = vmul.f32 %v4419_v44, %v5029_v33  ;;  %v4408_v32 = vld [vmem:[%s5010_s3 + $0x178] sm:$0x3] }
 0x116   : > { %v1697_v52 = vadd.f32 %v1688_v61, %v1663_v59  ;;  %v1848_v17 = vrot.slane %v1834_v31, 1  ;;  %v1823_v4 = vadd.f32 %v1819_v6, %v1810_v51  ;;  %v8915_v23 = vrot.slane %v6416_v34, 1  ;;  %v4416_v31 = vld [vmem:[%s5010_s3 + $0x1a8] sm:$0x1] }
 0x117   : > { %v8916_v42 = vrot.slane %v6426_v0, 2  ;;  %v1820_v55 = vmul.f32 %v6434_v48, %v5019_v28  ;;  %v1882_v21 = vrot.slane %v1868_v3, 2  ;;  %v1664_v49 = vmul.f32 %v6064_v19, %v5098_v18 }
 0x118   : > { %v1768_v22 = vsel %vm226_vm0, %v8915_v23, %v1767_v46  ;;  %v1731_v59 = vadd.f32 %v1722_v63, %v1697_v52  ;;  %v1674_v6 = vmul.f32 %v4392_v2, %v4991_v13  ;;  %v1857_v7 = vadd.f32 %v1847_v39, %v1823_v4  ;;  %v4420_v4 = vld [vmem:[%s5010_s3 + $0x1a8] sm:$0x3] }
 0x119   : > { %v1802_v60 = vsel %vm261_vm1, %v8916_v42, %v1801_v56  ;;  %v8917_v34 = vrot.slane %v6443_v62, 1  ;;  %v1708_v0 = vmul.f32 %v4396_v58, %v4995_v15  ;;  %v1754_v44 = vmul.f32 %v4404_v41, %v5012_v24  ;;  %v4429_v41 = vld [vmem:[%s5010_s3 + $0x150] sm:$0xfe] }
 0x11a   : > { %v1743_v51 = vadd.f32 %v1739_v38, %v1731_v59  ;;  %v1689_v61 = vrot.slane %v1674_v6, 1  ;;  %v1740_v3 = vmul.f32 %v6286_v45, %v5117_v43  ;;  %v1788_v19 = vmul.f32 %v4408_v32, %v5016_v26 }
 0x11b   : > { %v1849_v11 = vsel %vm226_vm0, %v8917_v34, %v1848_v17  ;;  %v1891_v39 = vadd.f32 %v1881_v35, %v1857_v7  ;;  %v8918_v62 = vrot.slane %v6452_v37, 2  ;;  %v1723_v58 = vrot.slane %v1708_v0, 2 }
 0x11c   : > { %v1769_v56 = vrot.slane %v1754_v44, 1  ;;  %v1777_v2 = vadd.f32 %v1768_v22, %v1743_v51  ;;  %v8919_v52 = vrot.slane %v6468_v5, 1  ;;  %v1803_v63 = vrot.slane %v1788_v19, 2  ;;  %v4433_v5 = vld [vmem:[%s5010_s3 + $0x150] sm:$0xfc] }
 0x11d   : > { %v1883_v46 = vsel %vm261_vm1, %v8918_v62, %v1882_v21  ;;  %v1835_v17 = vmul.f32 %v4416_v31, %v5023_v30  ;;  %4422 = vst.msk [vmem:[%s5213_s6 + $0xc8] sm:$0xff] %vm443_vm2, %v1891_v39  ;;  %v8920_v35 = vrot.slane %v6477_v27, 2  ;;  %v1821_v42 = vmul.f32 %v6508_v40, %v5129_v57  ;;  %v4441_v51 = vld [vmem:[%s5010_s3 + $0x180] sm:$0xfe] }
 0x11e   : > { %v1690_v38 = vsel %vm226_vm0, %v8919_v52, %v1689_v61  ;;  %v1869_v22 = vmul.f32 %v4420_v4, %v5063_v54  ;;  %v1811_v32 = vadd.f32 %v1802_v60, %v1777_v2  ;;  %v8921_v59 = vrot.slane %v6489_v8, 1  ;;  %v4445_v62 = vld [vmem:[%s5010_s3 + $0x180] sm:$0xfc] }
 0x11f   : > { %v1698_v23 = vadd.f32 %v1690_v38, %v1664_v49  ;;  %v1724_v37 = vsel %vm261_vm1, %v8920_v35, %v1723_v58  ;;  %v8922_v6 = vrot.slane %v6500_v47, 2  ;;  %v1850_v27 = vrot.slane %v1835_v17, 1 }
 0x120   : > { %v1770_v21 = vsel %vm226_vm0, %v8921_v59, %v1769_v56  ;;  %v1903_v34 = vmul.f32 %v6225_v36, %v4986_v10  ;;  %v1911_v0 = vmul.f32 %v4429_v41, %v4989_v12  ;;  %v6616_v44 = vmul.f32 %v6212_v53, %v4989_v12 }
 0x121   : > { %v1804_v49 = vsel %vm261_vm1, %v8922_v6, %v1803_v63  ;;  %v1732_v7 = vadd.f32 %v1724_v37, %v1698_v23  ;;  %v1824_v60 = vadd.f32 %v1820_v55, %v1811_v32  ;;  %v1884_v8 = vrot.slane %v1869_v22, 2  ;;  %v4457_v32 = vld [vmem:[%s5010_s3 + $0x1b0] sm:$0xfc] }
 0x122   : > { %v1945_v31 = vmul.f32 %v4433_v5, %v4993_v14  ;;  %v6621_v47 = vmul.f32 %v6212_v53, %v4993_v14  ;;  %v8923_v19 = vrot.slane %v6517_v9, 1  ;;  %v1923_v4 = vrot.slane %v1911_v0, 1 }
 0x123   : > { %v1744_v61 = vadd.f32 %v1740_v3, %v1732_v7  ;;  %v1924_v39 = vrot.slane %v6616_v44, 1  ;;  %v1858_v58 = vadd.f32 %v1849_v11, %v1824_v60  ;;  %v1979_v2 = vmul.f32 %v6447_v50, %v4997_v16  ;;  %v4453_v11 = vld [vmem:[%s5010_s3 + $0x1b0] sm:$0xfe] }
 0x124   : > { %v1851_v36 = vsel %vm226_vm0, %v8923_v19, %v1850_v27  ;;  %v1957_v55 = vrot.slane %v1945_v31, 2  ;;  %v1958_v56 = vrot.slane %v6621_v47, 2  ;;  %v1991_v3 = vmul.f32 %v4441_v51, %v5002_v20  ;;  %v6656_v27 = vld [vmem:[%s5010_s3 + $0x1c0] sm:$0xff]  ;;  %v6669_v31 = vld [vmem:[%s5010_s3 + $0x1b0] sm:$0xff]  ;;  %v4434_v19 = vld [vmem:[%s5010_s3 + $0x158] sm:$0xfc] }
 0x125   : > { %v1778_v52 = vadd.f32 %v1770_v21, %v1744_v61  ;;  %v1925_v9 = vsel %vm226_vm0, %v1923_v4, %v1924_v39  ;;  %v6638_v38 = vmul.f32 %v6434_v48, %v5002_v20  ;;  %v1892_v63 = vadd.f32 %v1883_v46, %v1858_v58 }
 0x126   : > { %v1937_v17 = vadd.f32 %v1925_v9, %v1903_v34  ;;  %v1959_v41 = vsel %vm261_vm1, %v1957_v55, %v1958_v56  ;;  %v2025_v23 = vmul.f32 %v4445_v62, %v5014_v25  ;;  %v2003_v37 = vrot.slane %v1991_v3, 1 }
 0x127   : > { %v1812_v35 = vadd.f32 %v1804_v49, %v1778_v52  ;;  %v8739_v22 = vrot.slane %v6638_v38, 1  ;;  %v6648_v5 = vmul.f32 %v6434_v48, %v5014_v25  ;;  %4423 = vst [vmem:[%s5213_s6 + $0xd0] sm:$0xff] %v1892_v63  ;;  %v8924_v46 = vrot.slane %v6530_v1, 2  ;;  %v4430_v1 = vld [vmem:[%s5010_s3 + $0x158] sm:$0xfe] }
 0x128   : > { %v1971_v21 = vadd.f32 %v1959_v41, %v1937_v17  ;;  %v2037_v6 = vrot.slane %v2025_v23, 2  ;;  %v2072_v49 = vmul.f32 %v4453_v11, %v5021_v29  ;;  %v6665_v60 = vmul.f32 %v6656_v27, %v5021_v29  ;;  %v4442_v11 = vld [vmem:[%s5010_s3 + $0x188] sm:$0xfe] }
 0x129   : > { %v1885_v59 = vsel %vm261_vm1, %v8924_v46, %v1884_v8  ;;  %v1825_v7 = vadd.f32 %v1821_v42, %v1812_v35  ;;  %v2005_v34 = vsel %vm226_vm0, %v2003_v37, %v8739_v22  ;;  %v8737_v0 = vrot.slane %v6648_v5, 2  ;;  %v4446_v35 = vld [vmem:[%s5010_s3 + $0x188] sm:$0xfc] }
 0x12a   : > { %v1983_v8 = vadd.f32 %v1979_v2, %v1971_v21  ;;  %v2084_v51 = vrot.slane %v2072_v49, 1  ;;  %v2106_v61 = vmul.f32 %v4457_v32, %v5029_v33  ;;  %v6674_v42 = vmul.f32 %v6656_v27, %v5029_v33 }
 0x12b   : > { %v1859_v4 = vadd.f32 %v1851_v36, %v1825_v7  ;;  %v2039_v62 = vsel %vm261_vm1, %v2037_v6, %v8737_v0  ;;  %v2060_v58 = vmul.f32 %v6669_v31, %v5019_v28  ;;  %v8736_v55 = vrot.slane %v6665_v60, 1  ;;  %v8925_v36 = vld [vmem:[#allocation5_spill] sm:$0xff] }
 0x12c   : > { %v2017_v2 = vadd.f32 %v2005_v34, %v1983_v8  ;;  %v2118_v52 = vrot.slane %v2106_v61, 2  ;;  %v8735_v9 = vrot.slane %v6674_v42, 2  ;;  %v1912_v3 = vmul.f32 %v4430_v1, %v4991_v13  ;;  %v4454_v61 = vld [vmem:[%s5010_s3 + $0x1b8] sm:$0xfe] }
 0x12d   : > { %v1893_v63 = vadd.f32 %v1885_v59, %v1859_v4  ;;  %v1904_v17 = vmul.f32 %v8925_v36, %v5098_v18  ;;  %v6690_v41 = vmul.f32 %v6286_v45, %v4991_v13  ;;  %v1946_v23 = vmul.f32 %v4434_v19, %v4995_v15  ;;  %v8926_v4 = vld [vmem:[#allocation6_spill] sm:$0xff] }
 0x12e   : > { %v2051_v37 = vadd.f32 %v2039_v62, %v2017_v2  ;;  %v2086_v32 = vsel %vm226_vm0, %v2084_v51, %v8736_v55  ;;  %v1926_v46 = vrot.slane %v1912_v3, 1  ;;  %v6699_v59 = vmul.f32 %v6286_v45, %v4995_v15 }
 0x12f   : > { %4424 = vst.msk [vmem:[%s5213_s6 + $0xd8] sm:$0xff] %vm443_vm2, %v1893_v63  ;;  %v2120_v21 = vsel %vm261_vm1, %v2118_v52, %v8735_v9  ;;  %v8734_v6 = vrot.slane %v6690_v41, 1  ;;  %v1960_v49 = vrot.slane %v1946_v23, 2  ;;  %v1992_v7 = vmul.f32 %v4442_v11, %v5012_v24  ;;  %v4458_v52 = vld [vmem:[%s5010_s3 + $0x1b8] sm:$0xfc]  ;;  %v6730_v23 = vld [vmem:[%s5010_s3 + $0x1c8] sm:$0xff] }
 0x130   : > { %v2064_v34 = vadd.f32 %v2060_v58, %v2051_v37  ;;  %v8733_v1 = vrot.slane %v6699_v59, 2  ;;  %v6711_v8 = vmul.f32 %v6508_v40, %v5012_v24  ;;  %v2026_v51 = vmul.f32 %v4446_v35, %v5016_v26 }
 0x131   : > { %v1928_v19 = vsel %vm226_vm0, %v1926_v46, %v8734_v6  ;;  %v1980_v62 = vmul.f32 %v8926_v4, %v5117_v43  ;;  %v2006_v2 = vrot.slane %v1992_v7, 1  ;;  %v6722_v58 = vmul.f32 %v6508_v40, %v5016_v26  ;;  %v6734_v46 = vld [vmem:[%s5010_s3 + $0x1b8] sm:$0xff] }
 0x132   : > { %v2098_v3 = vadd.f32 %v2086_v32, %v2064_v34  ;;  %v1938_v11 = vadd.f32 %v1928_v19, %v1904_v17  ;;  %v1962_v63 = vsel %vm261_vm1, %v1960_v49, %v8733_v1  ;;  %v8738_v36 = vrot.slane %v6711_v8, 1  ;;  %8927 = vst [vmem:[#allocation5_spill] sm:$0xff] %v6734_v46  ;;  %v4431_v32 = vld [vmem:[%s5010_s3 + $0x170] sm:$0x1] }
 0x133   : > { %v2040_v35 = vrot.slane %v2026_v51, 2  ;;  %v8741_v37 = vrot.slane %v6722_v58, 2  ;;  %v2073_v7 = vmul.f32 %v4454_v61, %v5023_v30  ;;  %v6739_v17 = vmul.f32 %v6730_v23, %v5023_v30  ;;  %v4435_v1 = vld [vmem:[%s5010_s3 + $0x170] sm:$0x3] }
 0x134   : > { %v2132_v49 = vadd.f32 %v2120_v21, %v2098_v3  ;;  %v1972_v34 = vadd.f32 %v1962_v63, %v1938_v11  ;;  %v2061_v19 = vmul.f32 %v6734_v46, %v5129_v57  ;;  %v2107_v51 = vmul.f32 %v4458_v52, %v5063_v54  ;;  %v4443_v21 = vld [vmem:[%s5010_s3 + $0x1a0] sm:$0x1]  ;;  %v4436_v46 = vld [vmem:[%s5010_s3 + $0x178] sm:$0x3] }
 0x135   : > { %v2008_v6 = vsel %vm226_vm0, %v2006_v2, %v8738_v36  ;;  %v2087_v9 = vrot.slane %v2073_v7, 1  ;;  %v8740_v61 = vrot.slane %v6739_v17, 1  ;;  %v6752_v55 = vmul.f32 %v6730_v23, %v5063_v54  ;;  %v4447_v3 = vld [vmem:[%s5010_s3 + $0x1a0] sm:$0x3]  ;;  %v4455_v2 = vld [vmem:[%s5010_s3 + $0x1d0] sm:$0x1] }
 0x136   : > { %4461 = vst [vmem:[%s5213_s6 + $0xe0] sm:$0xff] %v2132_v49  ;;  %v1984_v11 = vadd.f32 %v1980_v62, %v1972_v34  ;;  %v2042_v52 = vsel %vm261_vm1, %v2040_v35, %v8741_v37  ;;  %v2121_v63 = vrot.slane %v2107_v51, 2  ;;  %v1915_v0 = vmul.f32 %v4431_v32, %v4989_v12  ;;  %v4459_v51 = vld [vmem:[%s5010_s3 + $0x1d0] sm:$0x3] }
 0x137   : > { %v2089_v7 = vsel %vm226_vm0, %v2087_v9, %v8740_v61  ;;  %v8742_v36 = vrot.slane %v6752_v55, 2  ;;  %v1905_v22 = vmul.f32 %v6212_v53, %v4986_v10  ;;  %v1949_v62 = vmul.f32 %v4435_v1, %v4993_v14 }
 0x138   : > { %v2018_v49 = vadd.f32 %v2008_v6, %v1984_v11  ;;  %v1929_v34 = vrot.slane %v1915_v0, 1  ;;  %v1995_v35 = vmul.f32 %v4443_v21, %v5002_v20  ;;  %v2029_v32 = vmul.f32 %v4447_v3, %v5014_v25  ;;  %v4432_v3 = vld [vmem:[%s5010_s3 + $0x178] sm:$0x1] }
 0x139   : > { %v2123_v9 = vsel %vm261_vm1, %v2121_v63, %v8742_v36  ;;  %v1963_v61 = vrot.slane %v1949_v62, 2  ;;  %v1981_v37 = vmul.f32 %v6434_v48, %v4997_v16  ;;  %v2076_v53 = vmul.f32 %v4455_v2, %v5021_v29  ;;  %v4444_v2 = vld [vmem:[%s5010_s3 + $0x1a8] sm:$0x1] }
 0x13a   : > { %v2052_v6 = vadd.f32 %v2042_v52, %v2018_v49  ;;  %v1930_v0 = vsel %vm226_vm0, %v1924_v39, %v1929_v34  ;;  %v2009_v1 = vrot.slane %v1995_v35, 1  ;;  %v2043_v21 = vrot.slane %v2029_v32, 2 }
 0x13b   : > { %v1939_v11 = vadd.f32 %v1930_v0, %v1905_v22  ;;  %v1964_v63 = vsel %vm261_vm1, %v1958_v56, %v1963_v61  ;;  %v2090_v62 = vrot.slane %v2076_v53, 1  ;;  %v2110_v36 = vmul.f32 %v4459_v51, %v5029_v33  ;;  %v4448_v56 = vld [vmem:[%s5010_s3 + $0x1a8] sm:$0x3]  ;;  %v4456_v53 = vld [vmem:[%s5010_s3 + $0x1d8] sm:$0x1] }
 0x13c   : > { %v2065_v4 = vadd.f32 %v2061_v19, %v2052_v6  ;;  %v8928_v52 = vrot.slane %v6638_v38, 1  ;;  %v8929_v39 = vrot.slane %v6648_v5, 2  ;;  %v2062_v47 = vmul.f32 %v6656_v27, %v5019_v28 }
 0x13d   : > { %v1973_v22 = vadd.f32 %v1964_v63, %v1939_v11  ;;  %v2124_v61 = vrot.slane %v2110_v36, 2  ;;  %v1906_v34 = vmul.f32 %v6286_v45, %v5098_v18  ;;  %v1916_v19 = vmul.f32 %v4432_v3, %v4991_v13 }
 0x13e   : > { %v2010_v44 = vsel %vm226_vm0, %v8928_v52, %v2009_v1  ;;  %v2044_v49 = vsel %vm261_vm1, %v8929_v39, %v2043_v21  ;;  %v2099_v35 = vadd.f32 %v2089_v7, %v2065_v4  ;;  %v8930_v38 = vrot.slane %v6665_v60, 1  ;;  %v4460_v4 = vld [vmem:[%s5010_s3 + $0x1d8] sm:$0x3] }
 0x13f   : > { %v1950_v5 = vmul.f32 %v4436_v46, %v4995_v15  ;;  %v1996_v51 = vmul.f32 %v4444_v2, %v5012_v24  ;;  %v1985_v6 = vadd.f32 %v1981_v37, %v1973_v22  ;;  %v1931_v0 = vrot.slane %v1916_v19, 1  ;;  %v4469_v2 = vld [vmem:[%s5010_s3 + $0x180] sm:$0xfe] }
 0x140   : > { %v2091_v32 = vsel %vm226_vm0, %v8930_v38, %v2090_v62  ;;  %v1982_v36 = vmul.f32 %v6508_v40, %v5117_v43  ;;  %v2030_v45 = vmul.f32 %v4448_v56, %v5016_v26  ;;  %v2133_v7 = vadd.f32 %v2123_v9, %v2099_v35 }
 0x141   : > { %v8931_v60 = vrot.slane %v6674_v42, 2  ;;  %v1965_v46 = vrot.slane %v1950_v5, 2  ;;  %v2011_v21 = vrot.slane %v1996_v51, 1  ;;  %v2019_v3 = vadd.f32 %v2010_v44, %v1985_v6  ;;  %v4481_v6 = vld [vmem:[%s5010_s3 + $0x1b0] sm:$0xfe] }
 0x142   : > { %v8932_v11 = vrot.slane %v6690_v41, 1  ;;  %v2045_v63 = vrot.slane %v2030_v45, 2  ;;  %v2077_v62 = vmul.f32 %v4456_v53, %v5023_v30  ;;  %4462 = vst.msk [vmem:[%s5213_s6 + $0xe8] sm:$0xff] %vm443_vm2, %v2133_v7  ;;  %v8933_v9 = vrot.slane %v6699_v59, 2  ;;  %v4473_v41 = vld [vmem:[%s5010_s3 + $0x180] sm:$0xfc] }
 0x143   : > { %v2125_v1 = vsel %vm261_vm1, %v8931_v60, %v2124_v61  ;;  %v2063_v39 = vmul.f32 %v6730_v23, %v5129_v57  ;;  %v2111_v44 = vmul.f32 %v4460_v4, %v5063_v54  ;;  %v2053_v56 = vadd.f32 %v2044_v49, %v2019_v3  ;;  %v4485_v60 = vld [vmem:[%s5010_s3 + $0x1b0] sm:$0xfc] }
 0x144   : > { %v1932_v37 = vsel %vm226_vm0, %v8932_v11, %v1931_v0  ;;  %v1966_v42 = vsel %vm261_vm1, %v8933_v9, %v1965_v46  ;;  %v8934_v22 = vrot.slane %v6711_v8, 1  ;;  %v8935_v19 = vrot.slane %v6722_v58, 2 }
 0x145   : > { %v1940_v52 = vadd.f32 %v1932_v37, %v1906_v34  ;;  %v2092_v59 = vrot.slane %v2077_v62, 1  ;;  %v2145_v38 = vmul.f32 %v6447_v50, %v4986_v10  ;;  %v2153_v5 = vmul.f32 %v4469_v2, %v4989_v12 }
 0x146   : > { %v2012_v61 = vsel %vm226_vm0, %v8934_v22, %v2011_v21  ;;  %v2046_v34 = vsel %vm261_vm1, %v8935_v19, %v2045_v63  ;;  %v6838_v51 = vmul.f32 %v6434_v48, %v4989_v12  ;;  %v2066_v49 = vadd.f32 %v2062_v47, %v2053_v56  ;;  %v4497_v56 = vld [vmem:[%s5010_s3 + $0x1e0] sm:$0xfc] }
 0x147   : > { %v1974_v35 = vadd.f32 %v1966_v42, %v1940_v52  ;;  %v2126_v8 = vrot.slane %v2111_v44, 2  ;;  %v2187_v53 = vmul.f32 %v4473_v41, %v4993_v14  ;;  %v6843_v58 = vmul.f32 %v6434_v48, %v4993_v14 }
 0x148   : > { %v8936_v45 = vrot.slane %v6739_v17, 1  ;;  %v2165_v4 = vrot.slane %v2153_v5, 1  ;;  %v2166_v7 = vrot.slane %v6838_v51, 1  ;;  %v2100_v46 = vadd.f32 %v2091_v32, %v2066_v49  ;;  %v4493_v32 = vld [vmem:[%s5010_s3 + $0x1e0] sm:$0xfe] }
 0x149   : > { %v1986_v0 = vadd.f32 %v1982_v36, %v1974_v35  ;;  %v2199_v47 = vrot.slane %v2187_v53, 2  ;;  %v2200_v21 = vrot.slane %v6843_v58, 2  ;;  %v2221_v3 = vmul.f32 %v6669_v31, %v4997_v16  ;;  %v6891_v53 = vld [vmem:[%s5010_s3 + $0x1e0] sm:$0xff] }
 0x14a   : > { %v2093_v50 = vsel %vm226_vm0, %v8936_v45, %v2092_v59  ;;  %v2167_v17 = vsel %vm226_vm0, %v2165_v4, %v2166_v7  ;;  %v2233_v36 = vmul.f32 %v4481_v6, %v5002_v20  ;;  %v6860_v37 = vmul.f32 %v6656_v27, %v5002_v20  ;;  %v6878_v59 = vld [vmem:[%s5010_s3 + $0x1f0] sm:$0xff]  ;;  %v4474_v45 = vld [vmem:[%s5010_s3 + $0x188] sm:$0xfc] }
 0x14b   : > { %v2020_v11 = vadd.f32 %v2012_v61, %v1986_v0  ;;  %v2134_v63 = vadd.f32 %v2125_v1, %v2100_v46  ;;  %v2179_v62 = vadd.f32 %v2167_v17, %v2145_v38  ;;  %v2201_v2 = vsel %vm261_vm1, %v2199_v47, %v2200_v21 }
 0x14c   : > { %v2267_v52 = vmul.f32 %v4485_v60, %v5014_v25  ;;  %v2245_v42 = vrot.slane %v2233_v36, 1  ;;  %v8751_v44 = vrot.slane %v6860_v37, 1  ;;  %v6870_v41 = vmul.f32 %v6656_v27, %v5014_v25 }
 0x14d   : > { %v2054_v9 = vadd.f32 %v2046_v34, %v2020_v11  ;;  %4463 = vst [vmem:[%s5213_s6 + $0xf0] sm:$0xff] %v2134_v63  ;;  %v8937_v1 = vrot.slane %v6752_v55, 2  ;;  %v2213_v61 = vadd.f32 %v2201_v2, %v2179_v62  ;;  %v2314_v34 = vmul.f32 %v4493_v32, %v5021_v29  ;;  %v4470_v55 = vld [vmem:[%s5010_s3 + $0x188] sm:$0xfe]  ;;  %v4482_v32 = vld [vmem:[%s5010_s3 + $0x1b8] sm:$0xfe] }
 0x14e   : > { %v2279_v19 = vrot.slane %v2267_v52, 2  ;;  %v2247_v38 = vsel %vm226_vm0, %v2245_v42, %v8751_v44  ;;  %v8749_v5 = vrot.slane %v6870_v41, 2  ;;  %v6887_v49 = vmul.f32 %v6878_v59, %v5021_v29 }
 0x14f   : > { %v2127_v22 = vsel %vm261_vm1, %v8937_v1, %v2126_v8  ;;  %v2067_v35 = vadd.f32 %v2063_v39, %v2054_v9  ;;  %v2225_v8 = vadd.f32 %v2221_v3, %v2213_v61  ;;  %v2326_v6 = vrot.slane %v2314_v34, 1  ;;  %v4486_v9 = vld [vmem:[%s5010_s3 + $0x1b8] sm:$0xfc] }
 0x150   : > { %v2348_v0 = vmul.f32 %v4497_v56, %v5029_v33  ;;  %v6896_v39 = vmul.f32 %v6878_v59, %v5029_v33  ;;  %v2281_v60 = vsel %vm261_vm1, %v2279_v19, %v8749_v5  ;;  %v2302_v46 = vmul.f32 %v6891_v53, %v5019_v28 }
 0x151   : > { %v2101_v4 = vadd.f32 %v2093_v50, %v2067_v35  ;;  %v8748_v47 = vrot.slane %v6887_v49, 1  ;;  %v2259_v3 = vadd.f32 %v2247_v38, %v2225_v8  ;;  %v2154_v36 = vmul.f32 %v4470_v55, %v4991_v13  ;;  %v8938_v50 = vld [vmem:[#allocation6_spill] sm:$0xff] }
 0x152   : > { %v2360_v11 = vrot.slane %v2348_v0, 2  ;;  %v8747_v17 = vrot.slane %v6896_v39, 2  ;;  %v2146_v62 = vmul.f32 %v8938_v50, %v5098_v18  ;;  %v6912_v2 = vmul.f32 %v6508_v40, %v4991_v13  ;;  %v4494_v0 = vld [vmem:[%s5010_s3 + $0x1e8] sm:$0xfe] }
 0x153   : > { %v2135_v63 = vadd.f32 %v2127_v22, %v2101_v4  ;;  %v2188_v52 = vmul.f32 %v4474_v45, %v4995_v15  ;;  %v2293_v42 = vadd.f32 %v2281_v60, %v2259_v3  ;;  %v2328_v56 = vsel %vm226_vm0, %v2326_v6, %v8748_v47  ;;  %v8939_v4 = vld [vmem:[#allocation5_spill] sm:$0xff] }
 0x154   : > { %v2168_v1 = vrot.slane %v2154_v36, 1  ;;  %v6921_v22 = vmul.f32 %v6508_v40, %v4995_v15  ;;  %v2362_v61 = vsel %vm261_vm1, %v2360_v11, %v8747_v17  ;;  %v8746_v19 = vrot.slane %v6912_v2, 1  ;;  %v4498_v11 = vld [vmem:[%s5010_s3 + $0x1e8] sm:$0xfc] }
 0x155   : > { %4464 = vst.msk [vmem:[%s5213_s6 + $0xf8] sm:$0xff] %vm443_vm2, %v2135_v63  ;;  %v2202_v34 = vrot.slane %v2188_v52, 2  ;;  %v2234_v35 = vmul.f32 %v4482_v32, %v5012_v24  ;;  %v2306_v38 = vadd.f32 %v2302_v46, %v2293_v42  ;;  %v6933_v8 = vmul.f32 %v6730_v23, %v5012_v24  ;;  %v6952_v52 = vld [vmem:[%s5010_s3 + $0x1f8] sm:$0xff] }
 0x156   : > { %v8745_v55 = vrot.slane %v6921_v22, 2  ;;  %v2268_v6 = vmul.f32 %v4486_v9, %v5016_v26  ;;  %v2170_v45 = vsel %vm226_vm0, %v2168_v1, %v8746_v19  ;;  %v2222_v60 = vmul.f32 %v8939_v4, %v5117_v43  ;;  %v6956_v1 = vld [vmem:[%s5010_s3 + $0x1e8] sm:$0xff] }
 0x157   : > { %v2248_v3 = vrot.slane %v2234_v35, 1  ;;  %v6944_v46 = vmul.f32 %v6730_v23, %v5016_v26  ;;  %v2340_v36 = vadd.f32 %v2328_v56, %v2306_v38  ;;  %v2180_v32 = vadd.f32 %v2170_v45, %v2146_v62  ;;  %8940 = vst [vmem:[#allocation6_spill] sm:$0xff] %v6956_v1  ;;  %v4471_v56 = vld [vmem:[%s5010_s3 + $0x1a0] sm:$0x1] }
 0x158   : > { %v2204_v63 = vsel %vm261_vm1, %v2202_v34, %v8745_v55  ;;  %v8750_v50 = vrot.slane %v6933_v8, 1  ;;  %v2282_v9 = vrot.slane %v2268_v6, 2  ;;  %v2315_v35 = vmul.f32 %v4494_v0, %v5023_v30  ;;  %v4475_v55 = vld [vmem:[%s5010_s3 + $0x1a0] sm:$0x3] }
 0x159   : > { %v8753_v42 = vrot.slane %v6944_v46, 2  ;;  %v6961_v62 = vmul.f32 %v6952_v52, %v5023_v30  ;;  %v2374_v34 = vadd.f32 %v2362_v61, %v2340_v36  ;;  %v2214_v38 = vadd.f32 %v2204_v63, %v2180_v32  ;;  %v4483_v61 = vld [vmem:[%s5010_s3 + $0x1d0] sm:$0x1] }
 0x15a   : > { %v2303_v45 = vmul.f32 %v6956_v1, %v5129_v57  ;;  %v2349_v6 = vmul.f32 %v4498_v11, %v5063_v54  ;;  %v2250_v19 = vsel %vm226_vm0, %v2248_v3, %v8750_v50  ;;  %v2329_v17 = vrot.slane %v2315_v35, 1  ;;  %v4487_v36 = vld [vmem:[%s5010_s3 + $0x1d0] sm:$0x3]  ;;  %v4495_v3 = vld [vmem:[%s5010_s3 + $0x200] sm:$0x1] }
 0x15b   : > { %v8752_v0 = vrot.slane %v6961_v62, 1  ;;  %v6974_v47 = vmul.f32 %v6952_v52, %v5063_v54  ;;  %4501 = vst [vmem:[%s5213_s6 + $0x100] sm:$0xff] %v2374_v34  ;;  %v2226_v32 = vadd.f32 %v2222_v60, %v2214_v38  ;;  %v2284_v11 = vsel %vm261_vm1, %v2282_v9, %v8753_v42  ;;  %v4476_v1 = vld [vmem:[%s5010_s3 + $0x1a8] sm:$0x3] }
 0x15c   : > { %v2363_v63 = vrot.slane %v2349_v6, 2  ;;  %v2157_v5 = vmul.f32 %v4471_v56, %v4989_v12  ;;  %v2147_v44 = vmul.f32 %v6434_v48, %v4986_v10  ;;  %v2191_v60 = vmul.f32 %v4475_v55, %v4993_v14  ;;  %v4499_v6 = vld [vmem:[%s5010_s3 + $0x200] sm:$0x3] }
 0x15d   : > { %v2331_v35 = vsel %vm226_vm0, %v2329_v17, %v8752_v0  ;;  %v8754_v50 = vrot.slane %v6974_v47, 2  ;;  %v2260_v34 = vadd.f32 %v2250_v19, %v2226_v32  ;;  %v2237_v9 = vmul.f32 %v4483_v61, %v5002_v20 }
 0x15e   : > { %v2171_v38 = vrot.slane %v2157_v5, 1  ;;  %v2271_v56 = vmul.f32 %v4487_v36, %v5014_v25  ;;  %v2205_v0 = vrot.slane %v2191_v60, 2  ;;  %v2223_v42 = vmul.f32 %v6656_v27, %v4997_v16  ;;  %v4472_v36 = vld [vmem:[%s5010_s3 + $0x1a8] sm:$0x1] }
 0x15f   : > { %v2365_v17 = vsel %vm261_vm1, %v2363_v63, %v8754_v50  ;;  %v2318_v48 = vmul.f32 %v4495_v3, %v5021_v29  ;;  %v2294_v19 = vadd.f32 %v2284_v11, %v2260_v34  ;;  %v2251_v55 = vrot.slane %v2237_v9, 1  ;;  %v4484_v3 = vld [vmem:[%s5010_s3 + $0x1d8] sm:$0x1] }
 0x160   : > { %v2172_v5 = vsel %vm226_vm0, %v2166_v7, %v2171_v38  ;;  %v2285_v61 = vrot.slane %v2271_v56, 2  ;;  %v2206_v63 = vsel %vm261_vm1, %v2200_v21, %v2205_v0  ;;  %v2352_v50 = vmul.f32 %v4499_v6, %v5029_v33  ;;  %v4488_v21 = vld [vmem:[%s5010_s3 + $0x1d8] sm:$0x3] }
 0x161   : > { %v2181_v32 = vadd.f32 %v2172_v5, %v2147_v44  ;;  %v2332_v60 = vrot.slane %v2318_v48, 1  ;;  %v2307_v4 = vadd.f32 %v2303_v45, %v2294_v19  ;;  %v8941_v11 = vrot.slane %v6860_v37, 1  ;;  %v4496_v48 = vld [vmem:[%s5010_s3 + $0x208] sm:$0x1] }
 0x162   : > { %v8942_v7 = vrot.slane %v6870_v41, 2  ;;  %v2304_v58 = vmul.f32 %v6878_v59, %v5019_v28  ;;  %v2366_v0 = vrot.slane %v2352_v50, 2  ;;  %v2148_v38 = vmul.f32 %v6508_v40, %v5098_v18 }
 0x163   : > { %v2252_v51 = vsel %vm226_vm0, %v8941_v11, %v2251_v55  ;;  %v2215_v44 = vadd.f32 %v2206_v63, %v2181_v32  ;;  %v2158_v45 = vmul.f32 %v4472_v36, %v4991_v13  ;;  %v2341_v9 = vadd.f32 %v2331_v35, %v2307_v4  ;;  %v4500_v4 = vld [vmem:[%s5010_s3 + $0x208] sm:$0x3] }
 0x164   : > { %v2286_v34 = vsel %vm261_vm1, %v8942_v7, %v2285_v61  ;;  %v8943_v37 = vrot.slane %v6887_v49, 1  ;;  %v2192_v41 = vmul.f32 %v4476_v1, %v4995_v15  ;;  %v2238_v6 = vmul.f32 %v4484_v3, %v5012_v24  ;;  %v4509_v3 = vld [vmem:[%s5010_s3 + $0x1b0] sm:$0xfe] }
 0x165   : > { %v2227_v19 = vadd.f32 %v2223_v42, %v2215_v44  ;;  %v2173_v5 = vrot.slane %v2158_v45, 1  ;;  %v2224_v50 = vmul.f32 %v6730_v23, %v5117_v43  ;;  %v2272_v40 = vmul.f32 %v4488_v21, %v5016_v26 }
 0x166   : > { %v2333_v56 = vsel %vm226_vm0, %v8943_v37, %v2332_v60  ;;  %v2375_v35 = vadd.f32 %v2365_v17, %v2341_v9  ;;  %v8944_v49 = vrot.slane %v6896_v39, 2  ;;  %v2207_v1 = vrot.slane %v2192_v41, 2 }
 0x167   : > { %v2253_v61 = vrot.slane %v2238_v6, 1  ;;  %v2261_v36 = vadd.f32 %v2252_v51, %v2227_v19  ;;  %v8945_v32 = vrot.slane %v6912_v2, 1  ;;  %v2287_v63 = vrot.slane %v2272_v40, 2  ;;  %v4513_v2 = vld [vmem:[%s5010_s3 + $0x1b0] sm:$0xfc] }
 0x168   : > { %v2367_v55 = vsel %vm261_vm1, %v8944_v49, %v2366_v0  ;;  %v2319_v60 = vmul.f32 %v4496_v48, %v5023_v30  ;;  %4502 = vst.msk [vmem:[%s5213_s6 + $0x108] sm:$0xff] %vm443_vm2, %v2375_v35  ;;  %v8946_v17 = vrot.slane %v6921_v22, 2  ;;  %v2305_v7 = vmul.f32 %v6952_v52, %v5129_v57  ;;  %v4521_v19 = vld [vmem:[%s5010_s3 + $0x1e0] sm:$0xfe] }
 0x169   : > { %v2174_v42 = vsel %vm226_vm0, %v8945_v32, %v2173_v5  ;;  %v2353_v51 = vmul.f32 %v4500_v4, %v5063_v54  ;;  %v2295_v21 = vadd.f32 %v2286_v34, %v2261_v36  ;;  %v8947_v44 = vrot.slane %v6933_v8, 1  ;;  %v4525_v49 = vld [vmem:[%s5010_s3 + $0x1e0] sm:$0xfc] }
 0x16a   : > { %v2182_v11 = vadd.f32 %v2174_v42, %v2148_v38  ;;  %v2208_v39 = vsel %vm261_vm1, %v8946_v17, %v2207_v1  ;;  %v8948_v45 = vrot.slane %v6944_v46, 2  ;;  %v2334_v22 = vrot.slane %v2319_v60, 1 }
 0x16b   : > { %v2254_v0 = vsel %vm226_vm0, %v8947_v44, %v2253_v61  ;;  %v2387_v37 = vmul.f32 %v6669_v31, %v4986_v10  ;;  %v2395_v41 = vmul.f32 %v4509_v3, %v4989_v12  ;;  %v7060_v6 = vmul.f32 %v6656_v27, %v4989_v12 }
 0x16c   : > { %v2288_v38 = vsel %vm261_vm1, %v8948_v45, %v2287_v63  ;;  %v2216_v9 = vadd.f32 %v2208_v39, %v2182_v11  ;;  %v2308_v34 = vadd.f32 %v2304_v58, %v2295_v21  ;;  %v2368_v8 = vrot.slane %v2353_v51, 2  ;;  %v4537_v21 = vld [vmem:[%s5010_s3 + $0x210] sm:$0xfc] }
 0x16d   : > { %v2429_v48 = vmul.f32 %v4513_v2, %v4993_v14  ;;  %v7065_v46 = vmul.f32 %v6656_v27, %v4993_v14  ;;  %v8949_v40 = vrot.slane %v6961_v62, 1  ;;  %v2407_v4 = vrot.slane %v2395_v41, 1 }
 0x16e   : > { %v2228_v5 = vadd.f32 %v2224_v50, %v2216_v9  ;;  %v2408_v35 = vrot.slane %v7060_v6, 1  ;;  %v2342_v1 = vadd.f32 %v2333_v56, %v2308_v34  ;;  %v2463_v36 = vmul.f32 %v6891_v53, %v4997_v16  ;;  %v4533_v56 = vld [vmem:[%s5010_s3 + $0x210] sm:$0xfe] }
 0x16f   : > { %v2335_v31 = vsel %vm226_vm0, %v8949_v40, %v2334_v22  ;;  %v2441_v58 = vrot.slane %v2429_v48, 2  ;;  %v2442_v61 = vrot.slane %v7065_v46, 2  ;;  %v2475_v50 = vmul.f32 %v4521_v19, %v5002_v20  ;;  %v7100_v22 = vld [vmem:[%s5010_s3 + $0x220] sm:$0xff]  ;;  %v7113_v48 = vld [vmem:[%s5010_s3 + $0x210] sm:$0xff]  ;;  %v4514_v40 = vld [vmem:[%s5010_s3 + $0x1b8] sm:$0xfc] }
 0x170   : > { %v2262_v32 = vadd.f32 %v2254_v0, %v2228_v5  ;;  %v2409_v62 = vsel %vm226_vm0, %v2407_v4, %v2408_v35  ;;  %v7082_v42 = vmul.f32 %v6878_v59, %v5002_v20  ;;  %v2376_v63 = vadd.f32 %v2367_v55, %v2342_v1 }
 0x171   : > { %v2421_v60 = vadd.f32 %v2409_v62, %v2387_v37  ;;  %v2443_v3 = vsel %vm261_vm1, %v2441_v58, %v2442_v61  ;;  %v2509_v11 = vmul.f32 %v4525_v49, %v5014_v25  ;;  %v2487_v39 = vrot.slane %v2475_v50, 1 }
 0x172   : > { %v2296_v17 = vadd.f32 %v2288_v38, %v2262_v32  ;;  %v8763_v51 = vrot.slane %v7082_v42, 1  ;;  %v7092_v2 = vmul.f32 %v6878_v59, %v5014_v25  ;;  %4503 = vst [vmem:[%s5213_s6 + $0x110] sm:$0xff] %v2376_v63  ;;  %v8950_v55 = vrot.slane %v6974_v47, 2  ;;  %v4510_v47 = vld [vmem:[%s5010_s3 + $0x1b8] sm:$0xfe] }
 0x173   : > { %v2455_v0 = vadd.f32 %v2443_v3, %v2421_v60  ;;  %v2521_v45 = vrot.slane %v2509_v11, 2  ;;  %v2556_v38 = vmul.f32 %v4533_v56, %v5021_v29  ;;  %v7109_v34 = vmul.f32 %v7100_v22, %v5021_v29  ;;  %v4522_v56 = vld [vmem:[%s5010_s3 + $0x1e8] sm:$0xfe] }
 0x174   : > { %v2369_v44 = vsel %vm261_vm1, %v8950_v55, %v2368_v8  ;;  %v2309_v9 = vadd.f32 %v2305_v7, %v2296_v17  ;;  %v2489_v37 = vsel %vm226_vm0, %v2487_v39, %v8763_v51  ;;  %v8761_v41 = vrot.slane %v7092_v2, 2  ;;  %v4526_v17 = vld [vmem:[%s5010_s3 + $0x1e8] sm:$0xfc] }
 0x175   : > { %v2467_v8 = vadd.f32 %v2463_v36, %v2455_v0  ;;  %v2568_v19 = vrot.slane %v2556_v38, 1  ;;  %v2590_v5 = vmul.f32 %v4537_v21, %v5029_v33  ;;  %v7118_v7 = vmul.f32 %v7100_v22, %v5029_v33 }
 0x176   : > { %v2343_v4 = vadd.f32 %v2335_v31, %v2309_v9  ;;  %v2523_v49 = vsel %vm261_vm1, %v2521_v45, %v8761_v41  ;;  %v2544_v1 = vmul.f32 %v7113_v48, %v5019_v28  ;;  %v8760_v58 = vrot.slane %v7109_v34, 1  ;;  %v8951_v31 = vld [vmem:[#allocation5_spill] sm:$0xff] }
 0x177   : > { %v2501_v36 = vadd.f32 %v2489_v37, %v2467_v8  ;;  %v2602_v32 = vrot.slane %v2590_v5, 2  ;;  %v8759_v62 = vrot.slane %v7118_v7, 2  ;;  %v2396_v50 = vmul.f32 %v4510_v47, %v4991_v13  ;;  %v4534_v5 = vld [vmem:[%s5010_s3 + $0x218] sm:$0xfe] }
 0x178   : > { %v2377_v63 = vadd.f32 %v2369_v44, %v2343_v4  ;;  %v2388_v60 = vmul.f32 %v8951_v31, %v5098_v18  ;;  %v7134_v3 = vmul.f32 %v6730_v23, %v4991_v13  ;;  %v2430_v11 = vmul.f32 %v4514_v40, %v4995_v15  ;;  %v8952_v4 = vld [vmem:[#allocation6_spill] sm:$0xff] }
 0x179   : > { %v2535_v39 = vadd.f32 %v2523_v49, %v2501_v36  ;;  %v2570_v21 = vsel %vm226_vm0, %v2568_v19, %v8760_v58  ;;  %v2410_v55 = vrot.slane %v2396_v50, 1  ;;  %v7143_v44 = vmul.f32 %v6730_v23, %v4995_v15 }
 0x17a   : > { %4504 = vst.msk [vmem:[%s5213_s6 + $0x118] sm:$0xff] %vm443_vm2, %v2377_v63  ;;  %v2604_v0 = vsel %vm261_vm1, %v2602_v32, %v8759_v62  ;;  %v8758_v45 = vrot.slane %v7134_v3, 1  ;;  %v2444_v38 = vrot.slane %v2430_v11, 2  ;;  %v2476_v9 = vmul.f32 %v4522_v56, %v5012_v24  ;;  %v4538_v32 = vld [vmem:[%s5010_s3 + $0x218] sm:$0xfc]  ;;  %v7174_v11 = vld [vmem:[%s5010_s3 + $0x228] sm:$0xff] }
 0x17b   : > { %v2548_v37 = vadd.f32 %v2544_v1, %v2535_v39  ;;  %v8757_v47 = vrot.slane %v7143_v44, 2  ;;  %v7155_v8 = vmul.f32 %v6952_v52, %v5012_v24  ;;  %v2510_v19 = vmul.f32 %v4526_v17, %v5016_v26 }
 0x17c   : > { %v2412_v40 = vsel %vm226_vm0, %v2410_v55, %v8758_v45  ;;  %v2464_v49 = vmul.f32 %v8952_v4, %v5117_v43  ;;  %v2490_v36 = vrot.slane %v2476_v9, 1  ;;  %v7166_v1 = vmul.f32 %v6952_v52, %v5016_v26  ;;  %v7178_v55 = vld [vmem:[%s5010_s3 + $0x218] sm:$0xff] }
 0x17d   : > { %v2582_v50 = vadd.f32 %v2570_v21, %v2548_v37  ;;  %v2422_v56 = vadd.f32 %v2412_v40, %v2388_v60  ;;  %v2446_v63 = vsel %vm261_vm1, %v2444_v38, %v8757_v47  ;;  %v8762_v31 = vrot.slane %v7155_v8, 1  ;;  %8953 = vst [vmem:[#allocation5_spill] sm:$0xff] %v7178_v55  ;;  %v4511_v21 = vld [vmem:[%s5010_s3 + $0x1d0] sm:$0x1] }
 0x17e   : > { %v2524_v17 = vrot.slane %v2510_v19, 2  ;;  %v8765_v39 = vrot.slane %v7166_v1, 2  ;;  %v2557_v9 = vmul.f32 %v4534_v5, %v5023_v30  ;;  %v7183_v60 = vmul.f32 %v7174_v11, %v5023_v30  ;;  %v4515_v47 = vld [vmem:[%s5010_s3 + $0x1d0] sm:$0x3] }
 0x17f   : > { %v2616_v38 = vadd.f32 %v2604_v0, %v2582_v50  ;;  %v2456_v37 = vadd.f32 %v2446_v63, %v2422_v56  ;;  %v2545_v40 = vmul.f32 %v7178_v55, %v5129_v57  ;;  %v2591_v19 = vmul.f32 %v4538_v32, %v5063_v54  ;;  %v4523_v0 = vld [vmem:[%s5010_s3 + $0x200] sm:$0x1]  ;;  %v4516_v55 = vld [vmem:[%s5010_s3 + $0x1d8] sm:$0x3] }
 0x180   : > { %v2492_v45 = vsel %vm226_vm0, %v2490_v36, %v8762_v31  ;;  %v2571_v62 = vrot.slane %v2557_v9, 1  ;;  %v8764_v5 = vrot.slane %v7183_v60, 1  ;;  %v7196_v58 = vmul.f32 %v7174_v11, %v5063_v54  ;;  %v4527_v50 = vld [vmem:[%s5010_s3 + $0x200] sm:$0x3]  ;;  %v4535_v36 = vld [vmem:[%s5010_s3 + $0x230] sm:$0x1] }
 0x181   : > { %4541 = vst [vmem:[%s5213_s6 + $0x120] sm:$0xff] %v2616_v38  ;;  %v2468_v56 = vadd.f32 %v2464_v49, %v2456_v37  ;;  %v2526_v32 = vsel %vm261_vm1, %v2524_v17, %v8765_v39  ;;  %v2605_v63 = vrot.slane %v2591_v19, 2  ;;  %v2399_v41 = vmul.f32 %v4511_v21, %v4989_v12  ;;  %v4539_v19 = vld [vmem:[%s5010_s3 + $0x230] sm:$0x3] }
 0x182   : > { %v2573_v9 = vsel %vm226_vm0, %v2571_v62, %v8764_v5  ;;  %v8766_v31 = vrot.slane %v7196_v58, 2  ;;  %v2389_v51 = vmul.f32 %v6656_v27, %v4986_v10  ;;  %v2433_v49 = vmul.f32 %v4515_v47, %v4993_v14 }
 0x183   : > { %v2502_v38 = vadd.f32 %v2492_v45, %v2468_v56  ;;  %v2413_v37 = vrot.slane %v2399_v41, 1  ;;  %v2479_v17 = vmul.f32 %v4523_v0, %v5002_v20  ;;  %v2513_v21 = vmul.f32 %v4527_v50, %v5014_v25  ;;  %v4512_v50 = vld [vmem:[%s5010_s3 + $0x1d8] sm:$0x1] }
 0x184   : > { %v2607_v62 = vsel %vm261_vm1, %v2605_v63, %v8766_v31  ;;  %v2447_v5 = vrot.slane %v2433_v49, 2  ;;  %v2465_v39 = vmul.f32 %v6878_v59, %v4997_v16  ;;  %v2560_v27 = vmul.f32 %v4535_v36, %v5021_v29  ;;  %v4524_v36 = vld [vmem:[%s5010_s3 + $0x208] sm:$0x1] }
 0x185   : > { %v2536_v45 = vadd.f32 %v2526_v32, %v2502_v38  ;;  %v2414_v41 = vsel %vm226_vm0, %v2408_v35, %v2413_v37  ;;  %v2493_v47 = vrot.slane %v2479_v17, 1  ;;  %v2527_v0 = vrot.slane %v2513_v21, 2 }
 0x186   : > { %v2423_v56 = vadd.f32 %v2414_v41, %v2389_v51  ;;  %v2448_v63 = vsel %vm261_vm1, %v2442_v61, %v2447_v5  ;;  %v2574_v49 = vrot.slane %v2560_v27, 1  ;;  %v2594_v31 = vmul.f32 %v4539_v19, %v5029_v33  ;;  %v4528_v61 = vld [vmem:[%s5010_s3 + $0x208] sm:$0x3]  ;;  %v4536_v27 = vld [vmem:[%s5010_s3 + $0x238] sm:$0x1] }
 0x187   : > { %v2549_v4 = vadd.f32 %v2545_v40, %v2536_v45  ;;  %v8954_v32 = vrot.slane %v7082_v42, 1  ;;  %v8955_v35 = vrot.slane %v7092_v2, 2  ;;  %v2546_v46 = vmul.f32 %v7100_v22, %v5019_v28 }
 0x188   : > { %v2457_v51 = vadd.f32 %v2448_v63, %v2423_v56  ;;  %v2608_v5 = vrot.slane %v2594_v31, 2  ;;  %v2390_v37 = vmul.f32 %v6730_v23, %v5098_v18  ;;  %v2400_v40 = vmul.f32 %v4512_v50, %v4991_v13 }
 0x189   : > { %v2494_v6 = vsel %vm226_vm0, %v8954_v32, %v2493_v47  ;;  %v2528_v38 = vsel %vm261_vm1, %v8955_v35, %v2527_v0  ;;  %v2583_v17 = vadd.f32 %v2573_v9, %v2549_v4  ;;  %v8956_v42 = vrot.slane %v7109_v34, 1  ;;  %v4540_v4 = vld [vmem:[%s5010_s3 + $0x238] sm:$0x3] }
 0x18a   : > { %v2434_v2 = vmul.f32 %v4516_v55, %v4995_v15  ;;  %v2480_v19 = vmul.f32 %v4524_v36, %v5012_v24  ;;  %v2469_v45 = vadd.f32 %v2465_v39, %v2457_v51  ;;  %v2415_v41 = vrot.slane %v2400_v40, 1  ;;  %v4549_v36 = vld [vmem:[%s5010_s3 + $0x1e0] sm:$0xfe] }
 0x18b   : > { %v2575_v21 = vsel %vm226_vm0, %v8956_v42, %v2574_v49  ;;  %v2466_v31 = vmul.f32 %v6952_v52, %v5117_v43  ;;  %v2514_v23 = vmul.f32 %v4528_v61, %v5016_v26  ;;  %v2617_v9 = vadd.f32 %v2607_v62, %v2583_v17 }
 0x18c   : > { %v8957_v34 = vrot.slane %v7118_v7, 2  ;;  %v2449_v55 = vrot.slane %v2434_v2, 2  ;;  %v2495_v0 = vrot.slane %v2480_v19, 1  ;;  %v2503_v50 = vadd.f32 %v2494_v6, %v2469_v45  ;;  %v4561_v45 = vld [vmem:[%s5010_s3 + $0x210] sm:$0xfe] }
 0x18d   : > { %v8958_v56 = vrot.slane %v7134_v3, 1  ;;  %v2529_v63 = vrot.slane %v2514_v23, 2  ;;  %v2561_v49 = vmul.f32 %v4536_v27, %v5023_v30  ;;  %4542 = vst.msk [vmem:[%s5213_s6 + $0x128] sm:$0xff] %vm443_vm2, %v2617_v9  ;;  %v8959_v62 = vrot.slane %v7143_v44, 2  ;;  %v4553_v3 = vld [vmem:[%s5010_s3 + $0x1e0] sm:$0xfc] }
 0x18e   : > { %v2609_v47 = vsel %vm261_vm1, %v8957_v34, %v2608_v5  ;;  %v2547_v35 = vmul.f32 %v7174_v11, %v5129_v57  ;;  %v2595_v6 = vmul.f32 %v4540_v4, %v5063_v54  ;;  %v2537_v61 = vadd.f32 %v2528_v38, %v2503_v50  ;;  %v4565_v34 = vld [vmem:[%s5010_s3 + $0x210] sm:$0xfc] }
 0x18f   : > { %v2416_v39 = vsel %vm226_vm0, %v8958_v56, %v2415_v41  ;;  %v2450_v7 = vsel %vm261_vm1, %v8959_v62, %v2449_v55  ;;  %v8960_v51 = vrot.slane %v7155_v8, 1  ;;  %v8961_v40 = vrot.slane %v7166_v1, 2 }
 0x190   : > { %v2424_v32 = vadd.f32 %v2416_v39, %v2390_v37  ;;  %v2576_v44 = vrot.slane %v2561_v49, 1  ;;  %v2629_v42 = vmul.f32 %v6891_v53, %v4986_v10  ;;  %v2637_v2 = vmul.f32 %v4549_v36, %v4989_v12 }
 0x191   : > { %v2496_v5 = vsel %vm226_vm0, %v8960_v51, %v2495_v0  ;;  %v2530_v37 = vsel %vm261_vm1, %v8961_v40, %v2529_v63  ;;  %v7282_v19 = vmul.f32 %v6878_v59, %v4989_v12  ;;  %v2550_v38 = vadd.f32 %v2546_v46, %v2537_v61  ;;  %v4577_v61 = vld [vmem:[%s5010_s3 + $0x240] sm:$0xfc] }
 0x192   : > { %v2458_v17 = vadd.f32 %v2450_v7, %v2424_v32  ;;  %v2610_v8 = vrot.slane %v2595_v6, 2  ;;  %v2671_v27 = vmul.f32 %v4553_v3, %v4993_v14  ;;  %v7287_v1 = vmul.f32 %v6878_v59, %v4993_v14 }
 0x193   : > { %v8962_v23 = vrot.slane %v7183_v60, 1  ;;  %v2649_v4 = vrot.slane %v2637_v2, 1  ;;  %v2650_v9 = vrot.slane %v7282_v19, 1  ;;  %v2584_v55 = vadd.f32 %v2575_v21, %v2550_v38  ;;  %v4573_v21 = vld [vmem:[%s5010_s3 + $0x240] sm:$0xfe] }
 0x194   : > { %v2470_v41 = vadd.f32 %v2466_v31, %v2458_v17  ;;  %v2683_v46 = vrot.slane %v2671_v27, 2  ;;  %v2684_v0 = vrot.slane %v7287_v1, 2  ;;  %v2705_v50 = vmul.f32 %v7113_v48, %v4997_v16  ;;  %v7335_v27 = vld [vmem:[%s5010_s3 + $0x240] sm:$0xff] }
 0x195   : > { %v2577_v53 = vsel %vm226_vm0, %v8962_v23, %v2576_v44  ;;  %v2651_v60 = vsel %vm226_vm0, %v2649_v4, %v2650_v9  ;;  %v2717_v31 = vmul.f32 %v4561_v45, %v5002_v20  ;;  %v7304_v39 = vmul.f32 %v7100_v22, %v5002_v20  ;;  %v7322_v44 = vld [vmem:[%s5010_s3 + $0x250] sm:$0xff]  ;;  %v4554_v23 = vld [vmem:[%s5010_s3 + $0x1e8] sm:$0xfc] }
 0x196   : > { %v2504_v56 = vadd.f32 %v2496_v5, %v2470_v41  ;;  %v2618_v63 = vadd.f32 %v2609_v47, %v2584_v55  ;;  %v2663_v49 = vadd.f32 %v2651_v60, %v2629_v42  ;;  %v2685_v36 = vsel %vm261_vm1, %v2683_v46, %v2684_v0 }
 0x197   : > { %v2751_v32 = vmul.f32 %v4565_v34, %v5014_v25  ;;  %v2729_v7 = vrot.slane %v2717_v31, 1  ;;  %v8775_v6 = vrot.slane %v7304_v39, 1  ;;  %v7314_v3 = vmul.f32 %v7100_v22, %v5014_v25 }
 0x198   : > { %v2538_v62 = vadd.f32 %v2530_v37, %v2504_v56  ;;  %4543 = vst [vmem:[%s5213_s6 + $0x130] sm:$0xff] %v2618_v63  ;;  %v8963_v47 = vrot.slane %v7196_v58, 2  ;;  %v2697_v5 = vadd.f32 %v2685_v36, %v2663_v49  ;;  %v2798_v37 = vmul.f32 %v4573_v21, %v5021_v29  ;;  %v4550_v58 = vld [vmem:[%s5010_s3 + $0x1e8] sm:$0xfe]  ;;  %v4562_v21 = vld [vmem:[%s5010_s3 + $0x218] sm:$0xfe] }
 0x199   : > { %v2763_v40 = vrot.slane %v2751_v32, 2  ;;  %v2731_v42 = vsel %vm226_vm0, %v2729_v7, %v8775_v6  ;;  %v8773_v2 = vrot.slane %v7314_v3, 2  ;;  %v7331_v38 = vmul.f32 %v7322_v44, %v5021_v29 }
 0x19a   : > { %v2611_v51 = vsel %vm261_vm1, %v8963_v47, %v2610_v8  ;;  %v2551_v17 = vadd.f32 %v2547_v35, %v2538_v62  ;;  %v2709_v8 = vadd.f32 %v2705_v50, %v2697_v5  ;;  %v2810_v45 = vrot.slane %v2798_v37, 1  ;;  %v4566_v62 = vld [vmem:[%s5010_s3 + $0x218] sm:$0xfc] }
 0x19b   : > { %v2832_v41 = vmul.f32 %v4577_v61, %v5029_v33  ;;  %v7340_v35 = vmul.f32 %v7322_v44, %v5029_v33  ;;  %v2765_v34 = vsel %vm261_vm1, %v2763_v40, %v8773_v2  ;;  %v2786_v55 = vmul.f32 %v7335_v27, %v5019_v28 }
 0x19c   : > { %v2585_v4 = vadd.f32 %v2577_v53, %v2551_v17  ;;  %v8772_v46 = vrot.slane %v7331_v38, 1  ;;  %v2743_v50 = vadd.f32 %v2731_v42, %v2709_v8  ;;  %v2638_v31 = vmul.f32 %v4550_v58, %v4991_v13  ;;  %v8964_v53 = vld [vmem:[#allocation6_spill] sm:$0xff] }
 0x19d   : > { %v2844_v56 = vrot.slane %v2832_v41, 2  ;;  %v8771_v60 = vrot.slane %v7340_v35, 2  ;;  %v2630_v49 = vmul.f32 %v8964_v53, %v5098_v18  ;;  %v7356_v36 = vmul.f32 %v6952_v52, %v4991_v13  ;;  %v4574_v41 = vld [vmem:[%s5010_s3 + $0x248] sm:$0xfe] }
 0x19e   : > { %v2619_v63 = vadd.f32 %v2611_v51, %v2585_v4  ;;  %v2672_v32 = vmul.f32 %v4554_v23, %v4995_v15  ;;  %v2777_v7 = vadd.f32 %v2765_v34, %v2743_v50  ;;  %v2812_v61 = vsel %vm226_vm0, %v2810_v45, %v8772_v46  ;;  %v8965_v4 = vld [vmem:[#allocation5_spill] sm:$0xff] }
 0x19f   : > { %v2652_v47 = vrot.slane %v2638_v31, 1  ;;  %v7365_v51 = vmul.f32 %v6952_v52, %v4995_v15  ;;  %v2846_v5 = vsel %vm261_vm1, %v2844_v56, %v8771_v60  ;;  %v8770_v40 = vrot.slane %v7356_v36, 1  ;;  %v4578_v56 = vld [vmem:[%s5010_s3 + $0x248] sm:$0xfc] }
 0x1a0   : > { %4544 = vst.msk [vmem:[%s5213_s6 + $0x138] sm:$0xff] %vm443_vm2, %v2619_v63  ;;  %v2686_v37 = vrot.slane %v2672_v32, 2  ;;  %v2718_v17 = vmul.f32 %v4562_v21, %v5012_v24  ;;  %v2790_v42 = vadd.f32 %v2786_v55, %v2777_v7  ;;  %v7377_v8 = vmul.f32 %v7174_v11, %v5012_v24  ;;  %v7396_v32 = vld [vmem:[%s5010_s3 + $0x258] sm:$0xff] }
 0x1a1   : > { %v8769_v58 = vrot.slane %v7365_v51, 2  ;;  %v2752_v45 = vmul.f32 %v4566_v62, %v5016_v26  ;;  %v2654_v23 = vsel %vm226_vm0, %v2652_v47, %v8770_v40  ;;  %v2706_v34 = vmul.f32 %v8965_v4, %v5117_v43  ;;  %v7400_v47 = vld [vmem:[%s5010_s3 + $0x248] sm:$0xff] }
 0x1a2   : > { %v2732_v50 = vrot.slane %v2718_v17, 1  ;;  %v7388_v55 = vmul.f32 %v7174_v11, %v5016_v26  ;;  %v2824_v31 = vadd.f32 %v2812_v61, %v2790_v42  ;;  %v2664_v21 = vadd.f32 %v2654_v23, %v2630_v49  ;;  %8966 = vst [vmem:[#allocation6_spill] sm:$0xff] %v7400_v47  ;;  %v4551_v61 = vld [vmem:[%s5010_s3 + $0x200] sm:$0x1] }
 0x1a3   : > { %v2688_v63 = vsel %vm261_vm1, %v2686_v37, %v8769_v58  ;;  %v8774_v53 = vrot.slane %v7377_v8, 1  ;;  %v2766_v62 = vrot.slane %v2752_v45, 2  ;;  %v2799_v17 = vmul.f32 %v4574_v41, %v5023_v30  ;;  %v4555_v58 = vld [vmem:[%s5010_s3 + $0x200] sm:$0x3] }
 0x1a4   : > { %v8777_v7 = vrot.slane %v7388_v55, 2  ;;  %v7405_v49 = vmul.f32 %v7396_v32, %v5023_v30  ;;  %v2858_v37 = vadd.f32 %v2846_v5, %v2824_v31  ;;  %v2698_v42 = vadd.f32 %v2688_v63, %v2664_v21  ;;  %v4563_v5 = vld [vmem:[%s5010_s3 + $0x230] sm:$0x1] }
 0x1a5   : > { %v2787_v23 = vmul.f32 %v7400_v47, %v5129_v57  ;;  %v2833_v45 = vmul.f32 %v4578_v56, %v5063_v54  ;;  %v2734_v40 = vsel %vm226_vm0, %v2732_v50, %v8774_v53  ;;  %v2813_v60 = vrot.slane %v2799_v17, 1  ;;  %v4567_v31 = vld [vmem:[%s5010_s3 + $0x230] sm:$0x3]  ;;  %v4575_v50 = vld [vmem:[%s5010_s3 + $0x260] sm:$0x1] }
 0x1a6   : > { %v8776_v41 = vrot.slane %v7405_v49, 1  ;;  %v7418_v46 = vmul.f32 %v7396_v32, %v5063_v54  ;;  %4581 = vst [vmem:[%s5213_s6 + $0x140] sm:$0xff] %v2858_v37  ;;  %v2710_v21 = vadd.f32 %v2706_v34, %v2698_v42  ;;  %v2768_v56 = vsel %vm261_vm1, %v2766_v62, %v8777_v7  ;;  %v4556_v47 = vld [vmem:[%s5010_s3 + $0x208] sm:$0x3] }
 0x1a7   : > { %v2847_v63 = vrot.slane %v2833_v45, 2  ;;  %v2641_v2 = vmul.f32 %v4551_v61, %v4989_v12  ;;  %v2631_v6 = vmul.f32 %v6878_v59, %v4986_v10  ;;  %v2675_v34 = vmul.f32 %v4555_v58, %v4993_v14  ;;  %v4579_v45 = vld [vmem:[%s5010_s3 + $0x260] sm:$0x3] }
 0x1a8   : > { %v2815_v17 = vsel %vm226_vm0, %v2813_v60, %v8776_v41  ;;  %v8778_v53 = vrot.slane %v7418_v46, 2  ;;  %v2744_v37 = vadd.f32 %v2734_v40, %v2710_v21  ;;  %v2721_v62 = vmul.f32 %v4563_v5, %v5002_v20 }
 0x1a9   : > { %v2655_v42 = vrot.slane %v2641_v2, 1  ;;  %v2755_v61 = vmul.f32 %v4567_v31, %v5014_v25  ;;  %v2689_v41 = vrot.slane %v2675_v34, 2  ;;  %v2707_v7 = vmul.f32 %v7100_v22, %v4997_v16  ;;  %v4552_v31 = vld [vmem:[%s5010_s3 + $0x208] sm:$0x1] }
 0x1aa   : > { %v2849_v60 = vsel %vm261_vm1, %v2847_v63, %v8778_v53  ;;  %v2802_v59 = vmul.f32 %v4575_v50, %v5021_v29  ;;  %v2778_v40 = vadd.f32 %v2768_v56, %v2744_v37  ;;  %v2735_v58 = vrot.slane %v2721_v62, 1  ;;  %v4564_v50 = vld [vmem:[%s5010_s3 + $0x238] sm:$0x1] }
 0x1ab   : > { %v2656_v2 = vsel %vm226_vm0, %v2650_v9, %v2655_v42  ;;  %v2769_v5 = vrot.slane %v2755_v61, 2  ;;  %v2690_v63 = vsel %vm261_vm1, %v2684_v0, %v2689_v41  ;;  %v2836_v53 = vmul.f32 %v4579_v45, %v5029_v33  ;;  %v4568_v0 = vld [vmem:[%s5010_s3 + $0x238] sm:$0x3] }
 0x1ac   : > { %v2665_v21 = vadd.f32 %v2656_v2, %v2631_v6  ;;  %v2816_v34 = vrot.slane %v2802_v59, 1  ;;  %v2791_v4 = vadd.f32 %v2787_v23, %v2778_v40  ;;  %v8967_v56 = vrot.slane %v7304_v39, 1  ;;  %v4576_v59 = vld [vmem:[%s5010_s3 + $0x268] sm:$0x1] }
 0x1ad   : > { %v8968_v9 = vrot.slane %v7314_v3, 2  ;;  %v2788_v1 = vmul.f32 %v7322_v44, %v5019_v28  ;;  %v2850_v41 = vrot.slane %v2836_v53, 2  ;;  %v2632_v42 = vmul.f32 %v6952_v52, %v5098_v18 }
 0x1ae   : > { %v2736_v19 = vsel %vm226_vm0, %v8967_v56, %v2735_v58  ;;  %v2699_v6 = vadd.f32 %v2690_v63, %v2665_v21  ;;  %v2642_v23 = vmul.f32 %v4552_v31, %v4991_v13  ;;  %v2825_v62 = vadd.f32 %v2815_v17, %v2791_v4  ;;  %v4580_v4 = vld [vmem:[%s5010_s3 + $0x268] sm:$0x3] }
 0x1af   : > { %v2770_v37 = vsel %vm261_vm1, %v8968_v9, %v2769_v5  ;;  %v8969_v39 = vrot.slane %v7331_v38, 1  ;;  %v2676_v3 = vmul.f32 %v4556_v47, %v4995_v15  ;;  %v2722_v45 = vmul.f32 %v4564_v50, %v5012_v24  ;;  %v4589_v50 = vld [vmem:[%s5010_s3 + $0x210] sm:$0xfe] }
 0x1b0   : > { %v2711_v40 = vadd.f32 %v2707_v7, %v2699_v6  ;;  %v2657_v2 = vrot.slane %v2642_v23, 1  ;;  %v2708_v53 = vmul.f32 %v7174_v11, %v5117_v43  ;;  %v2756_v52 = vmul.f32 %v4568_v0, %v5016_v26 }
 0x1b1   : > { %v2817_v61 = vsel %vm226_vm0, %v8969_v39, %v2816_v34  ;;  %v2859_v17 = vadd.f32 %v2849_v60, %v2825_v62  ;;  %v8970_v38 = vrot.slane %v7340_v35, 2  ;;  %v2691_v47 = vrot.slane %v2676_v3, 2 }
 0x1b2   : > { %v2737_v5 = vrot.slane %v2722_v45, 1  ;;  %v2745_v31 = vadd.f32 %v2736_v19, %v2711_v40  ;;  %v8971_v21 = vrot.slane %v7356_v36, 1  ;;  %v2771_v63 = vrot.slane %v2756_v52, 2  ;;  %v4593_v36 = vld [vmem:[%s5010_s3 + $0x210] sm:$0xfc] }
 0x1b3   : > { %v2851_v58 = vsel %vm261_vm1, %v8970_v38, %v2850_v41  ;;  %v2803_v34 = vmul.f32 %v4576_v59, %v5023_v30  ;;  %4582 = vst.msk [vmem:[%s5213_s6 + $0x148] sm:$0xff] %vm443_vm2, %v2859_v17  ;;  %v8972_v60 = vrot.slane %v7365_v51, 2  ;;  %v2789_v9 = vmul.f32 %v7396_v32, %v5129_v57  ;;  %v4601_v40 = vld [vmem:[%s5010_s3 + $0x240] sm:$0xfe] }
 0x1b4   : > { %v2658_v7 = vsel %vm226_vm0, %v8971_v21, %v2657_v2  ;;  %v2837_v19 = vmul.f32 %v4580_v4, %v5063_v54  ;;  %v2779_v0 = vadd.f32 %v2770_v37, %v2745_v31  ;;  %v8973_v6 = vrot.slane %v7377_v8, 1  ;;  %v4605_v38 = vld [vmem:[%s5010_s3 + $0x240] sm:$0xfc] }
 0x1b5   : > { %v2666_v56 = vadd.f32 %v2658_v7, %v2632_v42  ;;  %v2692_v35 = vsel %vm261_vm1, %v8972_v60, %v2691_v47  ;;  %v8974_v23 = vrot.slane %v7388_v55, 2  ;;  %v2818_v51 = vrot.slane %v2803_v34, 1 }
 0x1b6   : > { %v2738_v41 = vsel %vm226_vm0, %v8973_v6, %v2737_v5  ;;  %v2871_v39 = vmul.f32 %v7113_v48, %v4986_v10  ;;  %v2879_v3 = vmul.f32 %v4589_v50, %v4989_v12  ;;  %v7504_v45 = vmul.f32 %v7100_v22, %v4989_v12 }
 0x1b7   : > { %v2772_v42 = vsel %vm261_vm1, %v8974_v23, %v2771_v63  ;;  %v2700_v62 = vadd.f32 %v2692_v35, %v2666_v56  ;;  %v2792_v37 = vadd.f32 %v2788_v1, %v2779_v0  ;;  %v2852_v8 = vrot.slane %v2837_v19, 2  ;;  %v4617_v0 = vld [vmem:[%s5010_s3 + $0x270] sm:$0xfc] }
 0x1b8   : > { %v2913_v59 = vmul.f32 %v4593_v36, %v4993_v14  ;;  %v7509_v55 = vmul.f32 %v7100_v22, %v4993_v14  ;;  %v8975_v52 = vrot.slane %v7405_v49, 1  ;;  %v2891_v4 = vrot.slane %v2879_v3, 1 }
 0x1b9   : > { %v2712_v2 = vadd.f32 %v2708_v53, %v2700_v62  ;;  %v2892_v17 = vrot.slane %v7504_v45, 1  ;;  %v2826_v47 = vadd.f32 %v2817_v61, %v2792_v37  ;;  %v2947_v31 = vmul.f32 %v7335_v27, %v4997_v16  ;;  %v4613_v61 = vld [vmem:[%s5010_s3 + $0x270] sm:$0xfe] }
 0x1ba   : > { %v2819_v48 = vsel %vm226_vm0, %v8975_v52, %v2818_v51  ;;  %v2925_v1 = vrot.slane %v2913_v59, 2  ;;  %v2926_v5 = vrot.slane %v7509_v55, 2  ;;  %v2959_v53 = vmul.f32 %v4601_v40, %v5002_v20  ;;  %v7544_v51 = vld [vmem:[%s5010_s3 + $0x280] sm:$0xff]  ;;  %v7557_v59 = vld [vmem:[%s5010_s3 + $0x270] sm:$0xff]  ;;  %v4594_v52 = vld [vmem:[%s5010_s3 + $0x218] sm:$0xfc] }
 0x1bb   : > { %v2746_v21 = vadd.f32 %v2738_v41, %v2712_v2  ;;  %v2893_v49 = vsel %vm226_vm0, %v2891_v4, %v2892_v17  ;;  %v7526_v7 = vmul.f32 %v7322_v44, %v5002_v20  ;;  %v2860_v63 = vadd.f32 %v2851_v58, %v2826_v47 }
 0x1bc   : > { %v2905_v34 = vadd.f32 %v2893_v49, %v2871_v39  ;;  %v2927_v50 = vsel %vm261_vm1, %v2925_v1, %v2926_v5  ;;  %v2993_v56 = vmul.f32 %v4605_v38, %v5014_v25  ;;  %v2971_v35 = vrot.slane %v2959_v53, 1 }
 0x1bd   : > { %v2780_v60 = vadd.f32 %v2772_v42, %v2746_v21  ;;  %v8787_v19 = vrot.slane %v7526_v7, 1  ;;  %v7536_v36 = vmul.f32 %v7322_v44, %v5014_v25  ;;  %4583 = vst [vmem:[%s5213_s6 + $0x150] sm:$0xff] %v2860_v63  ;;  %v8976_v58 = vrot.slane %v7418_v46, 2  ;;  %v4590_v46 = vld [vmem:[%s5010_s3 + $0x218] sm:$0xfe] }
 0x1be   : > { %v2939_v41 = vadd.f32 %v2927_v50, %v2905_v34  ;;  %v3005_v23 = vrot.slane %v2993_v56, 2  ;;  %v3040_v42 = vmul.f32 %v4613_v61, %v5021_v29  ;;  %v7553_v37 = vmul.f32 %v7544_v51, %v5021_v29  ;;  %v4602_v61 = vld [vmem:[%s5010_s3 + $0x248] sm:$0xfe] }
 0x1bf   : > { %v2853_v6 = vsel %vm261_vm1, %v8976_v58, %v2852_v8  ;;  %v2793_v62 = vadd.f32 %v2789_v9, %v2780_v60  ;;  %v2973_v39 = vsel %vm226_vm0, %v2971_v35, %v8787_v19  ;;  %v8785_v3 = vrot.slane %v7536_v36, 2  ;;  %v4606_v60 = vld [vmem:[%s5010_s3 + $0x248] sm:$0xfc] }
 0x1c0   : > { %v2951_v8 = vadd.f32 %v2947_v31, %v2939_v41  ;;  %v3052_v40 = vrot.slane %v3040_v42, 1  ;;  %v3074_v2 = vmul.f32 %v4617_v0, %v5029_v33  ;;  %v7562_v9 = vmul.f32 %v7544_v51, %v5029_v33 }
 0x1c1   : > { %v2827_v4 = vadd.f32 %v2819_v48, %v2793_v62  ;;  %v3007_v38 = vsel %vm261_vm1, %v3005_v23, %v8785_v3  ;;  %v3028_v47 = vmul.f32 %v7557_v59, %v5019_v28  ;;  %v8784_v1 = vrot.slane %v7553_v37, 1  ;;  %v8977_v48 = vld [vmem:[#allocation5_spill] sm:$0xff] }
 0x1c2   : > { %v2985_v31 = vadd.f32 %v2973_v39, %v2951_v8  ;;  %v3086_v21 = vrot.slane %v3074_v2, 2  ;;  %v8783_v49 = vrot.slane %v7562_v9, 2  ;;  %v2880_v53 = vmul.f32 %v4590_v46, %v4991_v13  ;;  %v4614_v2 = vld [vmem:[%s5010_s3 + $0x278] sm:$0xfe] }
 0x1c3   : > { %v2861_v63 = vadd.f32 %v2853_v6, %v2827_v4  ;;  %v2872_v34 = vmul.f32 %v8977_v48, %v5098_v18  ;;  %v7578_v50 = vmul.f32 %v7174_v11, %v4991_v13  ;;  %v2914_v56 = vmul.f32 %v4594_v52, %v4995_v15  ;;  %v8978_v4 = vld [vmem:[#allocation6_spill] sm:$0xff] }
 0x1c4   : > { %v3019_v35 = vadd.f32 %v3007_v38, %v2985_v31  ;;  %v3054_v0 = vsel %vm226_vm0, %v3052_v40, %v8784_v1  ;;  %v2894_v58 = vrot.slane %v2880_v53, 1  ;;  %v7587_v6 = vmul.f32 %v7174_v11, %v4995_v15 }
 0x1c5   : > { %4584 = vst.msk [vmem:[%s5213_s6 + $0x158] sm:$0xff] %vm443_vm2, %v2861_v63  ;;  %v3088_v41 = vsel %vm261_vm1, %v3086_v21, %v8783_v49  ;;  %v8782_v23 = vrot.slane %v7578_v50, 1  ;;  %v2928_v42 = vrot.slane %v2914_v56, 2  ;;  %v2960_v62 = vmul.f32 %v4602_v61, %v5012_v24  ;;  %v4618_v21 = vld [vmem:[%s5010_s3 + $0x278] sm:$0xfc]  ;;  %v7618_v56 = vld [vmem:[%s5010_s3 + $0x288] sm:$0xff] }
 0x1c6   : > { %v3032_v39 = vadd.f32 %v3028_v47, %v3019_v35  ;;  %v8781_v46 = vrot.slane %v7587_v6, 2  ;;  %v7599_v8 = vmul.f32 %v7396_v32, %v5012_v24  ;;  %v2994_v40 = vmul.f32 %v4606_v60, %v5016_v26 }
 0x1c7   : > { %v2896_v52 = vsel %vm226_vm0, %v2894_v58, %v8782_v23  ;;  %v2948_v38 = vmul.f32 %v8978_v4, %v5117_v43  ;;  %v2974_v31 = vrot.slane %v2960_v62, 1  ;;  %v7610_v47 = vmul.f32 %v7396_v32, %v5016_v26  ;;  %v7622_v58 = vld [vmem:[%s5010_s3 + $0x278] sm:$0xff] }
 0x1c8   : > { %v3066_v53 = vadd.f32 %v3054_v0, %v3032_v39  ;;  %v2906_v61 = vadd.f32 %v2896_v52, %v2872_v34  ;;  %v2930_v63 = vsel %vm261_vm1, %v2928_v42, %v8781_v46  ;;  %v8786_v48 = vrot.slane %v7599_v8, 1  ;;  %8979 = vst [vmem:[#allocation5_spill] sm:$0xff] %v7622_v58  ;;  %v4591_v0 = vld [vmem:[%s5010_s3 + $0x230] sm:$0x1] }
 0x1c9   : > { %v3008_v60 = vrot.slane %v2994_v40, 2  ;;  %v8789_v35 = vrot.slane %v7610_v47, 2  ;;  %v3041_v62 = vmul.f32 %v4614_v2, %v5023_v30  ;;  %v7627_v34 = vmul.f32 %v7618_v56, %v5023_v30  ;;  %v4595_v46 = vld [vmem:[%s5010_s3 + $0x230] sm:$0x3] }
 0x1ca   : > { %v3100_v42 = vadd.f32 %v3088_v41, %v3066_v53  ;;  %v2940_v39 = vadd.f32 %v2930_v63, %v2906_v61  ;;  %v3029_v52 = vmul.f32 %v7622_v58, %v5129_v57  ;;  %v3075_v40 = vmul.f32 %v4618_v21, %v5063_v54  ;;  %v4603_v41 = vld [vmem:[%s5010_s3 + $0x260] sm:$0x1]  ;;  %v4596_v58 = vld [vmem:[%s5010_s3 + $0x238] sm:$0x3] }
 0x1cb   : > { %v2976_v23 = vsel %vm226_vm0, %v2974_v31, %v8786_v48  ;;  %v3055_v49 = vrot.slane %v3041_v62, 1  ;;  %v8788_v2 = vrot.slane %v7627_v34, 1  ;;  %v7640_v1 = vmul.f32 %v7618_v56, %v5063_v54  ;;  %v4607_v53 = vld [vmem:[%s5010_s3 + $0x260] sm:$0x3]  ;;  %v4615_v31 = vld [vmem:[%s5010_s3 + $0x290] sm:$0x1] }
 0x1cc   : > { %4621 = vst [vmem:[%s5213_s6 + $0x160] sm:$0xff] %v3100_v42  ;;  %v2952_v61 = vadd.f32 %v2948_v38, %v2940_v39  ;;  %v3010_v21 = vsel %vm261_vm1, %v3008_v60, %v8789_v35  ;;  %v3089_v63 = vrot.slane %v3075_v40, 2  ;;  %v2883_v3 = vmul.f32 %v4591_v0, %v4989_v12  ;;  %v4619_v40 = vld [vmem:[%s5010_s3 + $0x290] sm:$0x3] }
 0x1cd   : > { %v3057_v62 = vsel %vm226_vm0, %v3055_v49, %v8788_v2  ;;  %v8790_v48 = vrot.slane %v7640_v1, 2  ;;  %v2873_v19 = vmul.f32 %v7100_v22, %v4986_v10  ;;  %v2917_v38 = vmul.f32 %v4595_v46, %v4993_v14 }
 0x1ce   : > { %v2986_v42 = vadd.f32 %v2976_v23, %v2952_v61  ;;  %v2897_v39 = vrot.slane %v2883_v3, 1  ;;  %v2963_v60 = vmul.f32 %v4603_v41, %v5002_v20  ;;  %v2997_v0 = vmul.f32 %v4607_v53, %v5014_v25  ;;  %v4592_v53 = vld [vmem:[%s5010_s3 + $0x238] sm:$0x1] }
 0x1cf   : > { %v3091_v49 = vsel %vm261_vm1, %v3089_v63, %v8790_v48  ;;  %v2931_v2 = vrot.slane %v2917_v38, 2  ;;  %v2949_v35 = vmul.f32 %v7322_v44, %v4997_v16  ;;  %v3044_v22 = vmul.f32 %v4615_v31, %v5021_v29  ;;  %v4604_v31 = vld [vmem:[%s5010_s3 + $0x268] sm:$0x1] }
 0x1d0   : > { %v3020_v23 = vadd.f32 %v3010_v21, %v2986_v42  ;;  %v2898_v3 = vsel %vm226_vm0, %v2892_v17, %v2897_v39  ;;  %v2977_v46 = vrot.slane %v2963_v60, 1  ;;  %v3011_v41 = vrot.slane %v2997_v0, 2 }
 0x1d1   : > { %v2907_v61 = vadd.f32 %v2898_v3, %v2873_v19  ;;  %v2932_v63 = vsel %vm261_vm1, %v2926_v5, %v2931_v2  ;;  %v3058_v38 = vrot.slane %v3044_v22, 1  ;;  %v3078_v48 = vmul.f32 %v4619_v40, %v5029_v33  ;;  %v4608_v5 = vld [vmem:[%s5010_s3 + $0x268] sm:$0x3]  ;;  %v4616_v22 = vld [vmem:[%s5010_s3 + $0x298] sm:$0x1] }
 0x1d2   : > { %v3033_v4 = vadd.f32 %v3029_v52, %v3020_v23  ;;  %v8980_v21 = vrot.slane %v7526_v7, 1  ;;  %v8981_v17 = vrot.slane %v7536_v36, 2  ;;  %v3030_v55 = vmul.f32 %v7544_v51, %v5019_v28 }
 0x1d3   : > { %v2941_v19 = vadd.f32 %v2932_v63, %v2907_v61  ;;  %v3092_v2 = vrot.slane %v3078_v48, 2  ;;  %v2874_v39 = vmul.f32 %v7174_v11, %v5098_v18  ;;  %v2884_v52 = vmul.f32 %v4592_v53, %v4991_v13 }
 0x1d4   : > { %v2978_v45 = vsel %vm226_vm0, %v8980_v21, %v2977_v46  ;;  %v3012_v42 = vsel %vm261_vm1, %v8981_v17, %v3011_v41  ;;  %v3067_v60 = vadd.f32 %v3057_v62, %v3033_v4  ;;  %v8982_v7 = vrot.slane %v7553_v37, 1  ;;  %v4620_v4 = vld [vmem:[%s5010_s3 + $0x298] sm:$0x3] }
 0x1d5   : > { %v2918_v36 = vmul.f32 %v4596_v58, %v4995_v15  ;;  %v2964_v40 = vmul.f32 %v4604_v31, %v5012_v24  ;;  %v2953_v23 = vadd.f32 %v2949_v35, %v2941_v19  ;;  %v2899_v3 = vrot.slane %v2884_v52, 1  ;;  %v4629_v31 = vld [vmem:[%s5010_s3 + $0x240] sm:$0xfe] }
 0x1d6   : > { %v3059_v0 = vsel %vm226_vm0, %v8982_v7, %v3058_v38  ;;  %v2950_v48 = vmul.f32 %v7396_v32, %v5117_v43  ;;  %v2998_v11 = vmul.f32 %v4608_v5, %v5016_v26  ;;  %v3101_v62 = vadd.f32 %v3091_v49, %v3067_v60 }
 0x1d7   : > { %v8983_v37 = vrot.slane %v7562_v9, 2  ;;  %v2933_v58 = vrot.slane %v2918_v36, 2  ;;  %v2979_v41 = vrot.slane %v2964_v40, 1  ;;  %v2987_v53 = vadd.f32 %v2978_v45, %v2953_v23  ;;  %v4641_v23 = vld [vmem:[%s5010_s3 + $0x270] sm:$0xfe] }
 0x1d8   : > { %v8984_v61 = vrot.slane %v7578_v50, 1  ;;  %v3013_v63 = vrot.slane %v2998_v11, 2  ;;  %v3045_v38 = vmul.f32 %v4616_v22, %v5023_v30  ;;  %4622 = vst.msk [vmem:[%s5213_s6 + $0x168] sm:$0xff] %vm443_vm2, %v3101_v62  ;;  %v8985_v49 = vrot.slane %v7587_v6, 2  ;;  %v4633_v50 = vld [vmem:[%s5010_s3 + $0x240] sm:$0xfc] }
 0x1d9   : > { %v3093_v46 = vsel %vm261_vm1, %v8983_v37, %v3092_v2  ;;  %v3031_v17 = vmul.f32 %v7618_v56, %v5129_v57  ;;  %v3079_v45 = vmul.f32 %v4620_v4, %v5063_v54  ;;  %v3021_v5 = vadd.f32 %v3012_v42, %v2987_v53  ;;  %v4645_v37 = vld [vmem:[%s5010_s3 + $0x270] sm:$0xfc] }
 0x1da   : > { %v2900_v35 = vsel %vm226_vm0, %v8984_v61, %v2899_v3  ;;  %v2934_v9 = vsel %vm261_vm1, %v8985_v49, %v2933_v58  ;;  %v8986_v19 = vrot.slane %v7599_v8, 1  ;;  %v8987_v52 = vrot.slane %v7610_v47, 2 }
 0x1db   : > { %v2908_v21 = vadd.f32 %v2900_v35, %v2874_v39  ;;  %v3060_v6 = vrot.slane %v3045_v38, 1  ;;  %v3113_v7 = vmul.f32 %v7335_v27, %v4986_v10  ;;  %v3121_v36 = vmul.f32 %v4629_v31, %v4989_v12 }
 0x1dc   : > { %v2980_v2 = vsel %vm226_vm0, %v8986_v19, %v2979_v41  ;;  %v3014_v39 = vsel %vm261_vm1, %v8987_v52, %v3013_v63  ;;  %v7726_v40 = vmul.f32 %v7322_v44, %v4989_v12  ;;  %v3034_v42 = vadd.f32 %v3030_v55, %v3021_v5  ;;  %v4657_v5 = vld [vmem:[%s5010_s3 + $0x2a0] sm:$0xfc] }
 0x1dd   : > { %v2942_v60 = vadd.f32 %v2934_v9, %v2908_v21  ;;  %v3094_v8 = vrot.slane %v3079_v45, 2  ;;  %v3155_v22 = vmul.f32 %v4633_v50, %v4993_v14  ;;  %v7731_v47 = vmul.f32 %v7322_v44, %v4993_v14 }
 0x1de   : > { %v8988_v11 = vrot.slane %v7627_v34, 1  ;;  %v3133_v4 = vrot.slane %v3121_v36, 1  ;;  %v3134_v62 = vrot.slane %v7726_v40, 1  ;;  %v3068_v58 = vadd.f32 %v3059_v0, %v3034_v42  ;;  %v4653_v0 = vld [vmem:[%s5010_s3 + $0x2a0] sm:$0xfe] }
 0x1df   : > { %v2954_v3 = vadd.f32 %v2950_v48, %v2942_v60  ;;  %v3167_v55 = vrot.slane %v3155_v22, 2  ;;  %v3168_v41 = vrot.slane %v7731_v47, 2  ;;  %v3189_v53 = vmul.f32 %v7557_v59, %v4997_v16  ;;  %v7779_v22 = vld [vmem:[%s5010_s3 + $0x2a0] sm:$0xff] }
 0x1e0   : > { %v3061_v27 = vsel %vm226_vm0, %v8988_v11, %v3060_v6  ;;  %v3135_v34 = vsel %vm226_vm0, %v3133_v4, %v3134_v62  ;;  %v3201_v48 = vmul.f32 %v4641_v23, %v5002_v20  ;;  %v7748_v35 = vmul.f32 %v7544_v51, %v5002_v20  ;;  %v7766_v6 = vld [vmem:[%s5010_s3 + $0x2b0] sm:$0xff]  ;;  %v4634_v11 = vld [vmem:[%s5010_s3 + $0x248] sm:$0xfc] }
 0x1e1   : > { %v2988_v61 = vadd.f32 %v2980_v2, %v2954_v3  ;;  %v3102_v63 = vadd.f32 %v3093_v46, %v3068_v58  ;;  %v3147_v38 = vadd.f32 %v3135_v34, %v3113_v7  ;;  %v3169_v31 = vsel %vm261_vm1, %v3167_v55, %v3168_v41 }
 0x1e2   : > { %v3235_v21 = vmul.f32 %v4645_v37, %v5014_v25  ;;  %v3213_v9 = vrot.slane %v3201_v48, 1  ;;  %v8799_v45 = vrot.slane %v7748_v35, 1  ;;  %v7758_v50 = vmul.f32 %v7544_v51, %v5014_v25 }
 0x1e3   : > { %v3022_v49 = vadd.f32 %v3014_v39, %v2988_v61  ;;  %4623 = vst [vmem:[%s5213_s6 + $0x170] sm:$0xff] %v3102_v63  ;;  %v8989_v46 = vrot.slane %v7640_v1, 2  ;;  %v3181_v2 = vadd.f32 %v3169_v31, %v3147_v38  ;;  %v3282_v39 = vmul.f32 %v4653_v0, %v5021_v29  ;;  %v4630_v1 = vld [vmem:[%s5010_s3 + $0x248] sm:$0xfe]  ;;  %v4642_v0 = vld [vmem:[%s5010_s3 + $0x278] sm:$0xfe] }
 0x1e4   : > { %v3247_v52 = vrot.slane %v3235_v21, 2  ;;  %v3215_v7 = vsel %vm226_vm0, %v3213_v9, %v8799_v45  ;;  %v8797_v36 = vrot.slane %v7758_v50, 2  ;;  %v7775_v42 = vmul.f32 %v7766_v6, %v5021_v29 }
 0x1e5   : > { %v3095_v19 = vsel %vm261_vm1, %v8989_v46, %v3094_v8  ;;  %v3035_v60 = vadd.f32 %v3031_v17, %v3022_v49  ;;  %v3193_v8 = vadd.f32 %v3189_v53, %v3181_v2  ;;  %v3294_v23 = vrot.slane %v3282_v39, 1  ;;  %v4646_v49 = vld [vmem:[%s5010_s3 + $0x278] sm:$0xfc] }
 0x1e6   : > { %v3316_v3 = vmul.f32 %v4657_v5, %v5029_v33  ;;  %v7784_v17 = vmul.f32 %v7766_v6, %v5029_v33  ;;  %v3249_v37 = vsel %vm261_vm1, %v3247_v52, %v8797_v36  ;;  %v3270_v58 = vmul.f32 %v7779_v22, %v5019_v28 }
 0x1e7   : > { %v3069_v4 = vadd.f32 %v3061_v27, %v3035_v60  ;;  %v8796_v55 = vrot.slane %v7775_v42, 1  ;;  %v3227_v53 = vadd.f32 %v3215_v7, %v3193_v8  ;;  %v3122_v48 = vmul.f32 %v4630_v1, %v4991_v13  ;;  %v8990_v27 = vld [vmem:[#allocation6_spill] sm:$0xff] }
 0x1e8   : > { %v3328_v61 = vrot.slane %v3316_v3, 2  ;;  %v8795_v34 = vrot.slane %v7784_v17, 2  ;;  %v3114_v38 = vmul.f32 %v8990_v27, %v5098_v18  ;;  %v7800_v31 = vmul.f32 %v7396_v32, %v4991_v13  ;;  %v4654_v3 = vld [vmem:[%s5010_s3 + $0x2a8] sm:$0xfe] }
 0x1e9   : > { %v3103_v63 = vadd.f32 %v3095_v19, %v3069_v4  ;;  %v3156_v21 = vmul.f32 %v4634_v11, %v4995_v15  ;;  %v3261_v9 = vadd.f32 %v3249_v37, %v3227_v53  ;;  %v3296_v5 = vsel %vm226_vm0, %v3294_v23, %v8796_v55  ;;  %v8991_v4 = vld [vmem:[#allocation5_spill] sm:$0xff] }
 0x1ea   : > { %v3136_v46 = vrot.slane %v3122_v48, 1  ;;  %v7809_v19 = vmul.f32 %v7396_v32, %v4995_v15  ;;  %v3330_v2 = vsel %vm261_vm1, %v3328_v61, %v8795_v34  ;;  %v8794_v52 = vrot.slane %v7800_v31, 1  ;;  %v4658_v61 = vld [vmem:[%s5010_s3 + $0x2a8] sm:$0xfc] }
 0x1eb   : > { %4624 = vst.msk [vmem:[%s5213_s6 + $0x178] sm:$0xff] %vm443_vm2, %v3103_v63  ;;  %v3170_v39 = vrot.slane %v3156_v21, 2  ;;  %v3202_v60 = vmul.f32 %v4642_v0, %v5012_v24  ;;  %v3274_v7 = vadd.f32 %v3270_v58, %v3261_v9  ;;  %v7821_v8 = vmul.f32 %v7618_v56, %v5012_v24  ;;  %v7840_v21 = vld [vmem:[%s5010_s3 + $0x2b8] sm:$0xff] }
 0x1ec   : > { %v8793_v1 = vrot.slane %v7809_v19, 2  ;;  %v3236_v23 = vmul.f32 %v4646_v49, %v5016_v26  ;;  %v3138_v11 = vsel %vm226_vm0, %v3136_v46, %v8794_v52  ;;  %v3190_v37 = vmul.f32 %v8991_v4, %v5117_v43  ;;  %v7844_v46 = vld [vmem:[%s5010_s3 + $0x2a8] sm:$0xff] }
 0x1ed   : > { %v3216_v53 = vrot.slane %v3202_v60, 1  ;;  %v7832_v58 = vmul.f32 %v7618_v56, %v5016_v26  ;;  %v3308_v48 = vadd.f32 %v3296_v5, %v3274_v7  ;;  %v3148_v0 = vadd.f32 %v3138_v11, %v3114_v38  ;;  %8992 = vst [vmem:[#allocation6_spill] sm:$0xff] %v7844_v46  ;;  %v4631_v5 = vld [vmem:[%s5010_s3 + $0x260] sm:$0x1] }
 0x1ee   : > { %v3172_v63 = vsel %vm261_vm1, %v3170_v39, %v8793_v1  ;;  %v8798_v27 = vrot.slane %v7821_v8, 1  ;;  %v3250_v49 = vrot.slane %v3236_v23, 2  ;;  %v3283_v60 = vmul.f32 %v4654_v3, %v5023_v30  ;;  %v4635_v1 = vld [vmem:[%s5010_s3 + $0x260] sm:$0x3] }
 0x1ef   : > { %v8801_v9 = vrot.slane %v7832_v58, 2  ;;  %v7849_v38 = vmul.f32 %v7840_v21, %v5023_v30  ;;  %v3342_v39 = vadd.f32 %v3330_v2, %v3308_v48  ;;  %v3182_v7 = vadd.f32 %v3172_v63, %v3148_v0  ;;  %v4643_v2 = vld [vmem:[%s5010_s3 + $0x290] sm:$0x1] }
 0x1f0   : > { %v3271_v11 = vmul.f32 %v7844_v46, %v5129_v57  ;;  %v3317_v23 = vmul.f32 %v4658_v61, %v5063_v54  ;;  %v3218_v52 = vsel %vm226_vm0, %v3216_v53, %v8798_v27  ;;  %v3297_v34 = vrot.slane %v3283_v60, 1  ;;  %v4647_v48 = vld [vmem:[%s5010_s3 + $0x290] sm:$0x3]  ;;  %v4655_v53 = vld [vmem:[%s5010_s3 + $0x2c0] sm:$0x1] }
 0x1f1   : > { %v8800_v3 = vrot.slane %v7849_v38, 1  ;;  %v7862_v55 = vmul.f32 %v7840_v21, %v5063_v54  ;;  %4661 = vst [vmem:[%s5213_s6 + $0x180] sm:$0xff] %v3342_v39  ;;  %v3194_v0 = vadd.f32 %v3190_v37, %v3182_v7  ;;  %v3252_v61 = vsel %vm261_vm1, %v3250_v49, %v8801_v9  ;;  %v4636_v46 = vld [vmem:[%s5010_s3 + $0x268] sm:$0x3] }
 0x1f2   : > { %v3331_v63 = vrot.slane %v3317_v23, 2  ;;  %v3125_v36 = vmul.f32 %v4631_v5, %v4989_v12  ;;  %v3115_v45 = vmul.f32 %v7322_v44, %v4986_v10  ;;  %v3159_v37 = vmul.f32 %v4635_v1, %v4993_v14  ;;  %v4659_v23 = vld [vmem:[%s5010_s3 + $0x2c0] sm:$0x3] }
 0x1f3   : > { %v3299_v60 = vsel %vm226_vm0, %v3297_v34, %v8800_v3  ;;  %v8802_v27 = vrot.slane %v7862_v55, 2  ;;  %v3228_v39 = vadd.f32 %v3218_v52, %v3194_v0  ;;  %v3205_v49 = vmul.f32 %v4643_v2, %v5002_v20 }
 0x1f4   : > { %v3139_v7 = vrot.slane %v3125_v36, 1  ;;  %v3239_v5 = vmul.f32 %v4647_v48, %v5014_v25  ;;  %v3173_v3 = vrot.slane %v3159_v37, 2  ;;  %v3191_v9 = vmul.f32 %v7544_v51, %v4997_v16  ;;  %v4632_v48 = vld [vmem:[%s5010_s3 + $0x268] sm:$0x1] }
 0x1f5   : > { %v3333_v34 = vsel %vm261_vm1, %v3331_v63, %v8802_v27  ;;  %v3286_v44 = vmul.f32 %v4655_v53, %v5021_v29  ;;  %v3262_v52 = vadd.f32 %v3252_v61, %v3228_v39  ;;  %v3219_v1 = vrot.slane %v3205_v49, 1  ;;  %v4644_v53 = vld [vmem:[%s5010_s3 + $0x298] sm:$0x1] }
 0x1f6   : > { %v3140_v36 = vsel %vm226_vm0, %v3134_v62, %v3139_v7  ;;  %v3253_v2 = vrot.slane %v3239_v5, 2  ;;  %v3174_v63 = vsel %vm261_vm1, %v3168_v41, %v3173_v3  ;;  %v3320_v27 = vmul.f32 %v4659_v23, %v5029_v33  ;;  %v4648_v41 = vld [vmem:[%s5010_s3 + $0x298] sm:$0x3] }
 0x1f7   : > { %v3149_v0 = vadd.f32 %v3140_v36, %v3115_v45  ;;  %v3300_v37 = vrot.slane %v3286_v44, 1  ;;  %v3275_v4 = vadd.f32 %v3271_v11, %v3262_v52  ;;  %v8993_v61 = vrot.slane %v7748_v35, 1  ;;  %v4656_v44 = vld [vmem:[%s5010_s3 + $0x2c8] sm:$0x1] }
 0x1f8   : > { %v8994_v62 = vrot.slane %v7758_v50, 2  ;;  %v3272_v47 = vmul.f32 %v7766_v6, %v5019_v28  ;;  %v3334_v3 = vrot.slane %v3320_v27, 2  ;;  %v3116_v7 = vmul.f32 %v7396_v32, %v5098_v18 }
 0x1f9   : > { %v3220_v40 = vsel %vm226_vm0, %v8993_v61, %v3219_v1  ;;  %v3183_v45 = vadd.f32 %v3174_v63, %v3149_v0  ;;  %v3126_v11 = vmul.f32 %v4632_v48, %v4991_v13  ;;  %v3309_v49 = vadd.f32 %v3299_v60, %v3275_v4  ;;  %v4660_v4 = vld [vmem:[%s5010_s3 + $0x2c8] sm:$0x3] }
 0x1fa   : > { %v3254_v39 = vsel %vm261_vm1, %v8994_v62, %v3253_v2  ;;  %v8995_v35 = vrot.slane %v7775_v42, 1  ;;  %v3160_v50 = vmul.f32 %v4636_v46, %v4995_v15  ;;  %v3206_v23 = vmul.f32 %v4644_v53, %v5012_v24  ;;  %v4669_v53 = vld [vmem:[%s5010_s3 + $0x270] sm:$0xfe] }
 0x1fb   : > { %v3195_v52 = vadd.f32 %v3191_v9, %v3183_v45  ;;  %v3141_v36 = vrot.slane %v3126_v11, 1  ;;  %v3192_v27 = vmul.f32 %v7618_v56, %v5117_v43  ;;  %v3240_v32 = vmul.f32 %v4648_v41, %v5016_v26 }
 0x1fc   : > { %v3301_v5 = vsel %vm226_vm0, %v8995_v35, %v3300_v37  ;;  %v3343_v60 = vadd.f32 %v3333_v34, %v3309_v49  ;;  %v8996_v42 = vrot.slane %v7784_v17, 2  ;;  %v3175_v46 = vrot.slane %v3160_v50, 2 }
 0x1fd   : > { %v3221_v2 = vrot.slane %v3206_v23, 1  ;;  %v3229_v48 = vadd.f32 %v3220_v40, %v3195_v52  ;;  %v8997_v0 = vrot.slane %v7800_v31, 1  ;;  %v3255_v63 = vrot.slane %v3240_v32, 2  ;;  %v4673_v31 = vld [vmem:[%s5010_s3 + $0x270] sm:$0xfc] }
 0x1fe   : > { %v3335_v1 = vsel %vm261_vm1, %v8996_v42, %v3334_v3  ;;  %v3287_v37 = vmul.f32 %v4656_v44, %v5023_v30  ;;  %4662 = vst.msk [vmem:[%s5213_s6 + $0x188] sm:$0xff] %vm443_vm2, %v3343_v60  ;;  %v8998_v34 = vrot.slane %v7809_v19, 2  ;;  %v3273_v62 = vmul.f32 %v7840_v21, %v5129_v57  ;;  %v4681_v52 = vld [vmem:[%s5010_s3 + $0x2a0] sm:$0xfe] }
 0x1ff   : > { %v3142_v9 = vsel %vm226_vm0, %v8997_v0, %v3141_v36  ;;  %v3321_v40 = vmul.f32 %v4660_v4, %v5063_v54  ;;  %v3263_v41 = vadd.f32 %v3254_v39, %v3229_v48  ;;  %v8999_v45 = vrot.slane %v7821_v8, 1  ;;  %v4685_v42 = vld [vmem:[%s5010_s3 + $0x2a0] sm:$0xfc] }
 0x200   : > { %v3150_v61 = vadd.f32 %v3142_v9, %v3116_v7  ;;  %v3176_v17 = vsel %vm261_vm1, %v8998_v34, %v3175_v46  ;;  %v9000_v11 = vrot.slane %v7832_v58, 2  ;;  %v3302_v19 = vrot.slane %v3287_v37, 1 }
 0x201   : > { %v3222_v3 = vsel %vm226_vm0, %v8999_v45, %v3221_v2  ;;  %v3355_v35 = vmul.f32 %v7557_v59, %v4986_v10  ;;  %v3363_v50 = vmul.f32 %v4669_v53, %v4989_v12  ;;  %v7948_v23 = vmul.f32 %v7544_v51, %v4989_v12 }
 0x202   : > { %v3256_v7 = vsel %vm261_vm1, %v9000_v11, %v3255_v63  ;;  %v3184_v49 = vadd.f32 %v3176_v17, %v3150_v61  ;;  %v3276_v39 = vadd.f32 %v3272_v47, %v3263_v41  ;;  %v3336_v8 = vrot.slane %v3321_v40, 2  ;;  %v4697_v41 = vld [vmem:[%s5010_s3 + $0x2d0] sm:$0xfc] }
 0x203   : > { %v3397_v44 = vmul.f32 %v4673_v31, %v4993_v14  ;;  %v7953_v58 = vmul.f32 %v7544_v51, %v4993_v14  ;;  %v9001_v32 = vrot.slane %v7849_v38, 1  ;;  %v3375_v4 = vrot.slane %v3363_v50, 1 }
 0x204   : > { %v3196_v36 = vadd.f32 %v3192_v27, %v3184_v49  ;;  %v3376_v60 = vrot.slane %v7948_v23, 1  ;;  %v3310_v46 = vadd.f32 %v3301_v5, %v3276_v39  ;;  %v3431_v48 = vmul.f32 %v7779_v22, %v4997_v16  ;;  %v4693_v5 = vld [vmem:[%s5010_s3 + $0x2d0] sm:$0xfe] }
 0x205   : > { %v3303_v59 = vsel %vm226_vm0, %v9001_v32, %v3302_v19  ;;  %v3409_v47 = vrot.slane %v3397_v44, 2  ;;  %v3410_v2 = vrot.slane %v7953_v58, 2  ;;  %v3443_v27 = vmul.f32 %v4681_v52, %v5002_v20  ;;  %v7988_v19 = vld [vmem:[%s5010_s3 + $0x2e0] sm:$0xff]  ;;  %v8001_v44 = vld [vmem:[%s5010_s3 + $0x2d0] sm:$0xff]  ;;  %v4674_v32 = vld [vmem:[%s5010_s3 + $0x278] sm:$0xfc] }
 0x206   : > { %v3230_v0 = vadd.f32 %v3222_v3, %v3196_v36  ;;  %v3377_v38 = vsel %vm226_vm0, %v3375_v4, %v3376_v60  ;;  %v7970_v9 = vmul.f32 %v7766_v6, %v5002_v20  ;;  %v3344_v63 = vadd.f32 %v3335_v1, %v3310_v46 }
 0x207   : > { %v3389_v37 = vadd.f32 %v3377_v38, %v3355_v35  ;;  %v3411_v53 = vsel %vm261_vm1, %v3409_v47, %v3410_v2  ;;  %v3477_v61 = vmul.f32 %v4685_v42, %v5014_v25  ;;  %v3455_v17 = vrot.slane %v3443_v27, 1 }
 0x208   : > { %v3264_v34 = vadd.f32 %v3256_v7, %v3230_v0  ;;  %v8811_v40 = vrot.slane %v7970_v9, 1  ;;  %v7980_v31 = vmul.f32 %v7766_v6, %v5014_v25  ;;  %4663 = vst [vmem:[%s5213_s6 + $0x190] sm:$0xff] %v3344_v63  ;;  %v9002_v1 = vrot.slane %v7862_v55, 2  ;;  %v4670_v55 = vld [vmem:[%s5010_s3 + $0x278] sm:$0xfe] }
 0x209   : > { %v3423_v3 = vadd.f32 %v3411_v53, %v3389_v37  ;;  %v3489_v11 = vrot.slane %v3477_v61, 2  ;;  %v3524_v7 = vmul.f32 %v4693_v5, %v5021_v29  ;;  %v7997_v39 = vmul.f32 %v7988_v19, %v5021_v29  ;;  %v4682_v5 = vld [vmem:[%s5010_s3 + $0x2a8] sm:$0xfe] }
 0x20a   : > { %v3337_v45 = vsel %vm261_vm1, %v9002_v1, %v3336_v8  ;;  %v3277_v49 = vadd.f32 %v3273_v62, %v3264_v34  ;;  %v3457_v35 = vsel %vm226_vm0, %v3455_v17, %v8811_v40  ;;  %v8809_v50 = vrot.slane %v7980_v31, 2  ;;  %v4686_v34 = vld [vmem:[%s5010_s3 + $0x2a8] sm:$0xfc] }
 0x20b   : > { %v3435_v8 = vadd.f32 %v3431_v48, %v3423_v3  ;;  %v3536_v52 = vrot.slane %v3524_v7, 1  ;;  %v3558_v36 = vmul.f32 %v4697_v41, %v5029_v33  ;;  %v8006_v62 = vmul.f32 %v7988_v19, %v5029_v33 }
 0x20c   : > { %v3311_v4 = vadd.f32 %v3303_v59, %v3277_v49  ;;  %v3491_v42 = vsel %vm261_vm1, %v3489_v11, %v8809_v50  ;;  %v3512_v46 = vmul.f32 %v8001_v44, %v5019_v28  ;;  %v8808_v47 = vrot.slane %v7997_v39, 1  ;;  %v9003_v59 = vld [vmem:[#allocation5_spill] sm:$0xff] }
 0x20d   : > { %v3469_v48 = vadd.f32 %v3457_v35, %v3435_v8  ;;  %v3570_v0 = vrot.slane %v3558_v36, 2  ;;  %v8807_v38 = vrot.slane %v8006_v62, 2  ;;  %v3364_v27 = vmul.f32 %v4670_v55, %v4991_v13  ;;  %v4694_v36 = vld [vmem:[%s5010_s3 + $0x2d8] sm:$0xfe] }
 0x20e   : > { %v3345_v63 = vadd.f32 %v3337_v45, %v3311_v4  ;;  %v3356_v37 = vmul.f32 %v9003_v59, %v5098_v18  ;;  %v8022_v53 = vmul.f32 %v7618_v56, %v4991_v13  ;;  %v3398_v61 = vmul.f32 %v4674_v32, %v4995_v15  ;;  %v9004_v4 = vld [vmem:[#allocation6_spill] sm:$0xff] }
 0x20f   : > { %v3503_v17 = vadd.f32 %v3491_v42, %v3469_v48  ;;  %v3538_v41 = vsel %vm226_vm0, %v3536_v52, %v8808_v47  ;;  %v3378_v1 = vrot.slane %v3364_v27, 1  ;;  %v8031_v45 = vmul.f32 %v7618_v56, %v4995_v15 }
 0x210   : > { %4664 = vst.msk [vmem:[%s5213_s6 + $0x198] sm:$0xff] %vm443_vm2, %v3345_v63  ;;  %v3572_v3 = vsel %vm261_vm1, %v3570_v0, %v8807_v38  ;;  %v8806_v11 = vrot.slane %v8022_v53, 1  ;;  %v3412_v7 = vrot.slane %v3398_v61, 2  ;;  %v3444_v49 = vmul.f32 %v4682_v5, %v5012_v24  ;;  %v4698_v0 = vld [vmem:[%s5010_s3 + $0x2d8] sm:$0xfc]  ;;  %v8062_v61 = vld [vmem:[%s5010_s3 + $0x2e8] sm:$0xff] }
 0x211   : > { %v3516_v35 = vadd.f32 %v3512_v46, %v3503_v17  ;;  %v8805_v55 = vrot.slane %v8031_v45, 2  ;;  %v8043_v8 = vmul.f32 %v7840_v21, %v5012_v24  ;;  %v3478_v52 = vmul.f32 %v4686_v34, %v5016_v26 }
 0x212   : > { %v3380_v32 = vsel %vm226_vm0, %v3378_v1, %v8806_v11  ;;  %v3432_v42 = vmul.f32 %v9004_v4, %v5117_v43  ;;  %v3458_v48 = vrot.slane %v3444_v49, 1  ;;  %v8054_v46 = vmul.f32 %v7840_v21, %v5016_v26  ;;  %v8066_v1 = vld [vmem:[%s5010_s3 + $0x2d8] sm:$0xff] }
 0x213   : > { %v3550_v27 = vadd.f32 %v3538_v41, %v3516_v35  ;;  %v3390_v5 = vadd.f32 %v3380_v32, %v3356_v37  ;;  %v3414_v63 = vsel %vm261_vm1, %v3412_v7, %v8805_v55  ;;  %v8810_v59 = vrot.slane %v8043_v8, 1  ;;  %9005 = vst [vmem:[#allocation5_spill] sm:$0xff] %v8066_v1  ;;  %v4671_v41 = vld [vmem:[%s5010_s3 + $0x290] sm:$0x1] }
 0x214   : > { %v3492_v34 = vrot.slane %v3478_v52, 2  ;;  %v8813_v17 = vrot.slane %v8054_v46, 2  ;;  %v3525_v49 = vmul.f32 %v4694_v36, %v5023_v30  ;;  %v8071_v37 = vmul.f32 %v8062_v61, %v5023_v30  ;;  %v4675_v55 = vld [vmem:[%s5010_s3 + $0x290] sm:$0x3] }
 0x215   : > { %v3584_v7 = vadd.f32 %v3572_v3, %v3550_v27  ;;  %v3424_v35 = vadd.f32 %v3414_v63, %v3390_v5  ;;  %v3513_v32 = vmul.f32 %v8066_v1, %v5129_v57  ;;  %v3559_v52 = vmul.f32 %v4698_v0, %v5063_v54  ;;  %v4683_v3 = vld [vmem:[%s5010_s3 + $0x2c0] sm:$0x1]  ;;  %v4676_v1 = vld [vmem:[%s5010_s3 + $0x298] sm:$0x3] }
 0x216   : > { %v3460_v11 = vsel %vm226_vm0, %v3458_v48, %v8810_v59  ;;  %v3539_v38 = vrot.slane %v3525_v49, 1  ;;  %v8812_v36 = vrot.slane %v8071_v37, 1  ;;  %v8084_v47 = vmul.f32 %v8062_v61, %v5063_v54  ;;  %v4687_v27 = vld [vmem:[%s5010_s3 + $0x2c0] sm:$0x3]  ;;  %v4695_v48 = vld [vmem:[%s5010_s3 + $0x2f0] sm:$0x1] }
 0x217   : > { %4701 = vst [vmem:[%s5213_s6 + $0x1a0] sm:$0xff] %v3584_v7  ;;  %v3436_v5 = vadd.f32 %v3432_v42, %v3424_v35  ;;  %v3494_v0 = vsel %vm261_vm1, %v3492_v34, %v8813_v17  ;;  %v3573_v63 = vrot.slane %v3559_v52, 2  ;;  %v3367_v50 = vmul.f32 %v4671_v41, %v4989_v12  ;;  %v4699_v52 = vld [vmem:[%s5010_s3 + $0x2f0] sm:$0x3] }
 0x218   : > { %v3541_v49 = vsel %vm226_vm0, %v3539_v38, %v8812_v36  ;;  %v8814_v59 = vrot.slane %v8084_v47, 2  ;;  %v3357_v40 = vmul.f32 %v7544_v51, %v4986_v10  ;;  %v3401_v42 = vmul.f32 %v4675_v55, %v4993_v14 }
 0x219   : > { %v3470_v7 = vadd.f32 %v3460_v11, %v3436_v5  ;;  %v3381_v35 = vrot.slane %v3367_v50, 1  ;;  %v3447_v34 = vmul.f32 %v4683_v3, %v5002_v20  ;;  %v3481_v41 = vmul.f32 %v4687_v27, %v5014_v25  ;;  %v4672_v27 = vld [vmem:[%s5010_s3 + $0x298] sm:$0x1] }
 0x21a   : > { %v3575_v38 = vsel %vm261_vm1, %v3573_v63, %v8814_v59  ;;  %v3415_v36 = vrot.slane %v3401_v42, 2  ;;  %v3433_v17 = vmul.f32 %v7766_v6, %v4997_v16  ;;  %v3528_v51 = vmul.f32 %v4695_v48, %v5021_v29  ;;  %v4684_v48 = vld [vmem:[%s5010_s3 + $0x2c8] sm:$0x1] }
 0x21b   : > { %v3504_v11 = vadd.f32 %v3494_v0, %v3470_v7  ;;  %v3382_v50 = vsel %vm226_vm0, %v3376_v60, %v3381_v35  ;;  %v3461_v55 = vrot.slane %v3447_v34, 1  ;;  %v3495_v3 = vrot.slane %v3481_v41, 2 }
 0x21c   : > { %v3391_v5 = vadd.f32 %v3382_v50, %v3357_v40  ;;  %v3416_v63 = vsel %vm261_vm1, %v3410_v2, %v3415_v36  ;;  %v3542_v42 = vrot.slane %v3528_v51, 1  ;;  %v3562_v59 = vmul.f32 %v4699_v52, %v5029_v33  ;;  %v4688_v2 = vld [vmem:[%s5010_s3 + $0x2c8] sm:$0x3]  ;;  %v4696_v51 = vld [vmem:[%s5010_s3 + $0x2f8] sm:$0x1] }
 0x21d   : > { %v3517_v4 = vadd.f32 %v3513_v32, %v3504_v11  ;;  %v9006_v0 = vrot.slane %v7970_v9, 1  ;;  %v9007_v60 = vrot.slane %v7980_v31, 2  ;;  %v3514_v58 = vmul.f32 %v7988_v19, %v5019_v28 }
 0x21e   : > { %v3425_v40 = vadd.f32 %v3416_v63, %v3391_v5  ;;  %v3576_v36 = vrot.slane %v3562_v59, 2  ;;  %v3358_v35 = vmul.f32 %v7618_v56, %v5098_v18  ;;  %v3368_v32 = vmul.f32 %v4672_v27, %v4991_v13 }
 0x21f   : > { %v3462_v23 = vsel %vm226_vm0, %v9006_v0, %v3461_v55  ;;  %v3496_v7 = vsel %vm261_vm1, %v9007_v60, %v3495_v3  ;;  %v3551_v34 = vadd.f32 %v3541_v49, %v3517_v4  ;;  %v9008_v9 = vrot.slane %v7997_v39, 1  ;;  %v4700_v4 = vld [vmem:[%s5010_s3 + $0x2f8] sm:$0x3] }
 0x220   : > { %v3402_v31 = vmul.f32 %v4676_v1, %v4995_v15  ;;  %v3448_v52 = vmul.f32 %v4684_v48, %v5012_v24  ;;  %v3437_v11 = vadd.f32 %v3433_v17, %v3425_v40  ;;  %v3383_v50 = vrot.slane %v3368_v32, 1  ;;  %v4709_v48 = vld [vmem:[%s5010_s3 + $0x2a0] sm:$0xfe] }
 0x221   : > { %v3543_v41 = vsel %vm226_vm0, %v9008_v9, %v3542_v42  ;;  %v3434_v59 = vmul.f32 %v7840_v21, %v5117_v43  ;;  %v3482_v56 = vmul.f32 %v4688_v2, %v5016_v26  ;;  %v3585_v49 = vadd.f32 %v3575_v38, %v3551_v34 }
 0x222   : > { %v9009_v39 = vrot.slane %v8006_v62, 2  ;;  %v3417_v1 = vrot.slane %v3402_v31, 2  ;;  %v3463_v3 = vrot.slane %v3448_v52, 1  ;;  %v3471_v27 = vadd.f32 %v3462_v23, %v3437_v11  ;;  %v4721_v11 = vld [vmem:[%s5010_s3 + $0x2d0] sm:$0xfe] }
 0x223   : > { %v9010_v5 = vrot.slane %v8022_v53, 1  ;;  %v3497_v63 = vrot.slane %v3482_v56, 2  ;;  %v3529_v42 = vmul.f32 %v4696_v51, %v5023_v30  ;;  %4702 = vst.msk [vmem:[%s5213_s6 + $0x1a8] sm:$0xff] %vm443_vm2, %v3585_v49  ;;  %v9011_v38 = vrot.slane %v8031_v45, 2  ;;  %v4713_v53 = vld [vmem:[%s5010_s3 + $0x2a0] sm:$0xfc] }
 0x224   : > { %v3577_v55 = vsel %vm261_vm1, %v9009_v39, %v3576_v36  ;;  %v3515_v60 = vmul.f32 %v8062_v61, %v5129_v57  ;;  %v3563_v23 = vmul.f32 %v4700_v4, %v5063_v54  ;;  %v3505_v2 = vadd.f32 %v3496_v7, %v3471_v27  ;;  %v4725_v39 = vld [vmem:[%s5010_s3 + $0x2d0] sm:$0xfc] }
 0x225   : > { %v3384_v17 = vsel %vm226_vm0, %v9010_v5, %v3383_v50  ;;  %v3418_v62 = vsel %vm261_vm1, %v9011_v38, %v3417_v1  ;;  %v9012_v40 = vrot.slane %v8043_v8, 1  ;;  %v9013_v32 = vrot.slane %v8054_v46, 2 }
 0x226   : > { %v3392_v0 = vadd.f32 %v3384_v17, %v3358_v35  ;;  %v3544_v45 = vrot.slane %v3529_v42, 1  ;;  %v3597_v9 = vmul.f32 %v7779_v22, %v4986_v10  ;;  %v3605_v31 = vmul.f32 %v4709_v48, %v4989_v12 }
 0x227   : > { %v3464_v36 = vsel %vm226_vm0, %v9012_v40, %v3463_v3  ;;  %v3498_v35 = vsel %vm261_vm1, %v9013_v32, %v3497_v63  ;;  %v8170_v52 = vmul.f32 %v7766_v6, %v4989_v12  ;;  %v3518_v7 = vadd.f32 %v3514_v58, %v3505_v2  ;;  %v4737_v2 = vld [vmem:[%s5010_s3 + $0x300] sm:$0xfc] }
 0x228   : > { %v3426_v34 = vadd.f32 %v3418_v62, %v3392_v0  ;;  %v3578_v8 = vrot.slane %v3563_v23, 2  ;;  %v3639_v51 = vmul.f32 %v4713_v53, %v4993_v14  ;;  %v8175_v46 = vmul.f32 %v7766_v6, %v4993_v14 }
 0x229   : > { %v9014_v56 = vrot.slane %v8071_v37, 1  ;;  %v3617_v4 = vrot.slane %v3605_v31, 1  ;;  %v3618_v49 = vrot.slane %v8170_v52, 1  ;;  %v3552_v1 = vadd.f32 %v3543_v41, %v3518_v7  ;;  %v4733_v41 = vld [vmem:[%s5010_s3 + $0x300] sm:$0xfe] }
 0x22a   : > { %v3438_v50 = vadd.f32 %v3434_v59, %v3426_v34  ;;  %v3651_v58 = vrot.slane %v3639_v51, 2  ;;  %v3652_v3 = vrot.slane %v8175_v46, 2  ;;  %v3673_v27 = vmul.f32 %v8001_v44, %v4997_v16  ;;  %v8223_v51 = vld [vmem:[%s5010_s3 + $0x300] sm:$0xff] }
 0x22b   : > { %v3545_v22 = vsel %vm226_vm0, %v9014_v56, %v3544_v45  ;;  %v3619_v37 = vsel %vm226_vm0, %v3617_v4, %v3618_v49  ;;  %v3685_v59 = vmul.f32 %v4721_v11, %v5002_v20  ;;  %v8192_v17 = vmul.f32 %v7988_v19, %v5002_v20  ;;  %v8210_v45 = vld [vmem:[%s5010_s3 + $0x310] sm:$0xff]  ;;  %v4714_v56 = vld [vmem:[%s5010_s3 + $0x2a8] sm:$0xfc] }
 0x22c   : > { %v3472_v5 = vadd.f32 %v3464_v36, %v3438_v50  ;;  %v3586_v63 = vadd.f32 %v3577_v55, %v3552_v1  ;;  %v3631_v42 = vadd.f32 %v3619_v37, %v3597_v9  ;;  %v3653_v48 = vsel %vm261_vm1, %v3651_v58, %v3652_v3 }
 0x22d   : > { %v3719_v0 = vmul.f32 %v4725_v39, %v5014_v25  ;;  %v3697_v62 = vrot.slane %v3685_v59, 1  ;;  %v8823_v23 = vrot.slane %v8192_v17, 1  ;;  %v8202_v53 = vmul.f32 %v7988_v19, %v5014_v25 }
 0x22e   : > { %v3506_v38 = vadd.f32 %v3498_v35, %v3472_v5  ;;  %4703 = vst [vmem:[%s5213_s6 + $0x1b0] sm:$0xff] %v3586_v63  ;;  %v9015_v55 = vrot.slane %v8084_v47, 2  ;;  %v3665_v36 = vadd.f32 %v3653_v48, %v3631_v42  ;;  %v3766_v35 = vmul.f32 %v4733_v41, %v5021_v29  ;;  %v4710_v47 = vld [vmem:[%s5010_s3 + $0x2a8] sm:$0xfe]  ;;  %v4722_v41 = vld [vmem:[%s5010_s3 + $0x2d8] sm:$0xfe] }
 0x22f   : > { %v3731_v32 = vrot.slane %v3719_v0, 2  ;;  %v3699_v9 = vsel %vm226_vm0, %v3697_v62, %v8823_v23  ;;  %v8821_v31 = vrot.slane %v8202_v53, 2  ;;  %v8219_v7 = vmul.f32 %v8210_v45, %v5021_v29 }
 0x230   : > { %v3579_v40 = vsel %vm261_vm1, %v9015_v55, %v3578_v8  ;;  %v3519_v34 = vadd.f32 %v3515_v60, %v3506_v38  ;;  %v3677_v8 = vadd.f32 %v3673_v27, %v3665_v36  ;;  %v3778_v11 = vrot.slane %v3766_v35, 1  ;;  %v4726_v38 = vld [vmem:[%s5010_s3 + $0x2d8] sm:$0xfc] }
 0x231   : > { %v3800_v50 = vmul.f32 %v4737_v2, %v5029_v33  ;;  %v8228_v60 = vmul.f32 %v8210_v45, %v5029_v33  ;;  %v3733_v39 = vsel %vm261_vm1, %v3731_v32, %v8821_v31  ;;  %v3754_v1 = vmul.f32 %v8223_v51, %v5019_v28 }
 0x232   : > { %v3553_v4 = vadd.f32 %v3545_v22, %v3519_v34  ;;  %v8820_v58 = vrot.slane %v8219_v7, 1  ;;  %v3711_v27 = vadd.f32 %v3699_v9, %v3677_v8  ;;  %v3606_v59 = vmul.f32 %v4710_v47, %v4991_v13  ;;  %v9016_v22 = vld [vmem:[#allocation6_spill] sm:$0xff] }
 0x233   : > { %v3812_v5 = vrot.slane %v3800_v50, 2  ;;  %v8819_v37 = vrot.slane %v8228_v60, 2  ;;  %v3598_v42 = vmul.f32 %v9016_v22, %v5098_v18  ;;  %v8244_v48 = vmul.f32 %v7840_v21, %v4991_v13  ;;  %v4734_v50 = vld [vmem:[%s5010_s3 + $0x308] sm:$0xfe] }
 0x234   : > { %v3587_v63 = vadd.f32 %v3579_v40, %v3553_v4  ;;  %v3640_v0 = vmul.f32 %v4714_v56, %v4995_v15  ;;  %v3745_v62 = vadd.f32 %v3733_v39, %v3711_v27  ;;  %v3780_v2 = vsel %vm226_vm0, %v3778_v11, %v8820_v58  ;;  %v9017_v4 = vld [vmem:[#allocation5_spill] sm:$0xff] }
 0x235   : > { %v3620_v55 = vrot.slane %v3606_v59, 1  ;;  %v8253_v40 = vmul.f32 %v7840_v21, %v4995_v15  ;;  %v3814_v36 = vsel %vm261_vm1, %v3812_v5, %v8819_v37  ;;  %v8818_v32 = vrot.slane %v8244_v48, 1  ;;  %v4738_v5 = vld [vmem:[%s5010_s3 + $0x308] sm:$0xfc] }
 0x236   : > { %4704 = vst.msk [vmem:[%s5213_s6 + $0x1b8] sm:$0xff] %vm443_vm2, %v3587_v63  ;;  %v3654_v35 = vrot.slane %v3640_v0, 2  ;;  %v3686_v34 = vmul.f32 %v4722_v41, %v5012_v24  ;;  %v3758_v9 = vadd.f32 %v3754_v1, %v3745_v62  ;;  %v8265_v8 = vmul.f32 %v8062_v61, %v5012_v24  ;;  %v8284_v0 = vld [vmem:[%s5010_s3 + $0x318] sm:$0xff] }
 0x237   : > { %v8817_v47 = vrot.slane %v8253_v40, 2  ;;  %v3720_v11 = vmul.f32 %v4726_v38, %v5016_v26  ;;  %v3622_v56 = vsel %vm226_vm0, %v3620_v55, %v8818_v32  ;;  %v3674_v39 = vmul.f32 %v9017_v4, %v5117_v43  ;;  %v8288_v55 = vld [vmem:[%s5010_s3 + $0x308] sm:$0xff] }
 0x238   : > { %v3700_v27 = vrot.slane %v3686_v34, 1  ;;  %v8276_v1 = vmul.f32 %v8062_v61, %v5016_v26  ;;  %v3792_v59 = vadd.f32 %v3780_v2, %v3758_v9  ;;  %v3632_v41 = vadd.f32 %v3622_v56, %v3598_v42  ;;  %9018 = vst [vmem:[#allocation6_spill] sm:$0xff] %v8288_v55  ;;  %v4711_v2 = vld [vmem:[%s5010_s3 + $0x2c0] sm:$0x1] }
 0x239   : > { %v3656_v63 = vsel %vm261_vm1, %v3654_v35, %v8817_v47  ;;  %v8822_v22 = vrot.slane %v8265_v8, 1  ;;  %v3734_v38 = vrot.slane %v3720_v11, 2  ;;  %v3767_v34 = vmul.f32 %v4734_v50, %v5023_v30  ;;  %v4715_v47 = vld [vmem:[%s5010_s3 + $0x2c0] sm:$0x3] }
 0x23a   : > { %v8825_v62 = vrot.slane %v8276_v1, 2  ;;  %v8293_v42 = vmul.f32 %v8284_v0, %v5023_v30  ;;  %v3826_v35 = vadd.f32 %v3814_v36, %v3792_v59  ;;  %v3666_v9 = vadd.f32 %v3656_v63, %v3632_v41  ;;  %v4723_v36 = vld [vmem:[%s5010_s3 + $0x2f0] sm:$0x1] }
 0x23b   : > { %v3755_v56 = vmul.f32 %v8288_v55, %v5129_v57  ;;  %v3801_v11 = vmul.f32 %v4738_v5, %v5063_v54  ;;  %v3702_v32 = vsel %vm226_vm0, %v3700_v27, %v8822_v22  ;;  %v3781_v37 = vrot.slane %v3767_v34, 1  ;;  %v4727_v59 = vld [vmem:[%s5010_s3 + $0x2f0] sm:$0x3]  ;;  %v4735_v27 = vld [vmem:[%s5010_s3 + $0x320] sm:$0x1] }
 0x23c   : > { %v8824_v50 = vrot.slane %v8293_v42, 1  ;;  %v8306_v58 = vmul.f32 %v8284_v0, %v5063_v54  ;;  %4741 = vst [vmem:[%s5213_s6 + $0x1c0] sm:$0xff] %v3826_v35  ;;  %v3678_v41 = vadd.f32 %v3674_v39, %v3666_v9  ;;  %v3736_v5 = vsel %vm261_vm1, %v3734_v38, %v8825_v62  ;;  %v4716_v55 = vld [vmem:[%s5010_s3 + $0x2c8] sm:$0x3] }
 0x23d   : > { %v3815_v63 = vrot.slane %v3801_v11, 2  ;;  %v3609_v31 = vmul.f32 %v4711_v2, %v4989_v12  ;;  %v3599_v23 = vmul.f32 %v7766_v6, %v4986_v10  ;;  %v3643_v39 = vmul.f32 %v4715_v47, %v4993_v14  ;;  %v4739_v11 = vld [vmem:[%s5010_s3 + $0x320] sm:$0x3] }
 0x23e   : > { %v3783_v34 = vsel %vm226_vm0, %v3781_v37, %v8824_v50  ;;  %v8826_v22 = vrot.slane %v8306_v58, 2  ;;  %v3712_v35 = vadd.f32 %v3702_v32, %v3678_v41  ;;  %v3689_v38 = vmul.f32 %v4723_v36, %v5002_v20 }
 0x23f   : > { %v3623_v9 = vrot.slane %v3609_v31, 1  ;;  %v3723_v2 = vmul.f32 %v4727_v59, %v5014_v25  ;;  %v3657_v50 = vrot.slane %v3643_v39, 2  ;;  %v3675_v62 = vmul.f32 %v7988_v19, %v4997_v16  ;;  %v4712_v59 = vld [vmem:[%s5010_s3 + $0x2c8] sm:$0x1] }
 0x240   : > { %v3817_v37 = vsel %vm261_vm1, %v3815_v63, %v8826_v22  ;;  %v3770_v6 = vmul.f32 %v4735_v27, %v5021_v29  ;;  %v3746_v32 = vadd.f32 %v3736_v5, %v3712_v35  ;;  %v3703_v47 = vrot.slane %v3689_v38, 1  ;;  %v4724_v27 = vld [vmem:[%s5010_s3 + $0x2f8] sm:$0x1] }
 0x241   : > { %v3624_v31 = vsel %vm226_vm0, %v3618_v49, %v3623_v9  ;;  %v3737_v36 = vrot.slane %v3723_v2, 2  ;;  %v3658_v63 = vsel %vm261_vm1, %v3652_v3, %v3657_v50  ;;  %v3804_v22 = vmul.f32 %v4739_v11, %v5029_v33  ;;  %v4728_v3 = vld [vmem:[%s5010_s3 + $0x2f8] sm:$0x3] }
 0x242   : > { %v3633_v41 = vadd.f32 %v3624_v31, %v3599_v23  ;;  %v3784_v39 = vrot.slane %v3770_v6, 1  ;;  %v3759_v4 = vadd.f32 %v3755_v56, %v3746_v32  ;;  %v9019_v5 = vrot.slane %v8192_v17, 1  ;;  %v4736_v6 = vld [vmem:[%s5010_s3 + $0x328] sm:$0x1] }
 0x243   : > { %v9020_v49 = vrot.slane %v8202_v53, 2  ;;  %v3756_v46 = vmul.f32 %v8210_v45, %v5019_v28  ;;  %v3818_v50 = vrot.slane %v3804_v22, 2  ;;  %v3600_v9 = vmul.f32 %v7840_v21, %v5098_v18 }
 0x244   : > { %v3704_v52 = vsel %vm226_vm0, %v9019_v5, %v3703_v47  ;;  %v3667_v23 = vadd.f32 %v3658_v63, %v3633_v41  ;;  %v3610_v56 = vmul.f32 %v4712_v59, %v4991_v13  ;;  %v3793_v38 = vadd.f32 %v3783_v34, %v3759_v4  ;;  %v4740_v4 = vld [vmem:[%s5010_s3 + $0x328] sm:$0x3] }
 0x245   : > { %v3738_v35 = vsel %vm261_vm1, %v9020_v49, %v3737_v36  ;;  %v9021_v17 = vrot.slane %v8219_v7, 1  ;;  %v3644_v53 = vmul.f32 %v4716_v55, %v4995_v15  ;;  %v3690_v11 = vmul.f32 %v4724_v27, %v5012_v24  ;;  %v4749_v27 = vld [vmem:[%s5010_s3 + $0x2d0] sm:$0xfe] }
 0x246   : > { %v3679_v32 = vadd.f32 %v3675_v62, %v3667_v23  ;;  %v3625_v31 = vrot.slane %v3610_v56, 1  ;;  %v3676_v22 = vmul.f32 %v8062_v61, %v5117_v43  ;;  %v3724_v21 = vmul.f32 %v4728_v3, %v5016_v26 }
 0x247   : > { %v3785_v2 = vsel %vm226_vm0, %v9021_v17, %v3784_v39  ;;  %v3827_v34 = vadd.f32 %v3817_v37, %v3793_v38  ;;  %v9022_v7 = vrot.slane %v8228_v60, 2  ;;  %v3659_v55 = vrot.slane %v3644_v53, 2 }
 0x248   : > { %v3705_v36 = vrot.slane %v3690_v11, 1  ;;  %v3713_v59 = vadd.f32 %v3704_v52, %v3679_v32  ;;  %v9023_v41 = vrot.slane %v8244_v48, 1  ;;  %v3739_v63 = vrot.slane %v3724_v21, 2  ;;  %v4753_v48 = vld [vmem:[%s5010_s3 + $0x2d0] sm:$0xfc] }
 0x249   : > { %v3819_v47 = vsel %vm261_vm1, %v9022_v7, %v3818_v50  ;;  %v3771_v39 = vmul.f32 %v4736_v6, %v5023_v30  ;;  %4742 = vst.msk [vmem:[%s5213_s6 + $0x1c8] sm:$0xff] %vm443_vm2, %v3827_v34  ;;  %v9024_v37 = vrot.slane %v8253_v40, 2  ;;  %v3757_v49 = vmul.f32 %v8284_v0, %v5129_v57  ;;  %v4761_v32 = vld [vmem:[%s5010_s3 + $0x300] sm:$0xfe] }
 0x24a   : > { %v3626_v62 = vsel %vm226_vm0, %v9023_v41, %v3625_v31  ;;  %v3805_v52 = vmul.f32 %v4740_v4, %v5063_v54  ;;  %v3747_v3 = vadd.f32 %v3738_v35, %v3713_v59  ;;  %v9025_v23 = vrot.slane %v8265_v8, 1  ;;  %v4765_v7 = vld [vmem:[%s5010_s3 + $0x300] sm:$0xfc] }
 0x24b   : > { %v3634_v5 = vadd.f32 %v3626_v62, %v3600_v9  ;;  %v3660_v60 = vsel %vm261_vm1, %v9024_v37, %v3659_v55  ;;  %v9026_v56 = vrot.slane %v8276_v1, 2  ;;  %v3786_v40 = vrot.slane %v3771_v39, 1 }
 0x24c   : > { %v3706_v50 = vsel %vm226_vm0, %v9025_v23, %v3705_v36  ;;  %v3839_v17 = vmul.f32 %v8001_v44, %v4986_v10  ;;  %v3847_v53 = vmul.f32 %v4749_v27, %v4989_v12  ;;  %v8392_v11 = vmul.f32 %v7988_v19, %v4989_v12 }
 0x24d   : > { %v3740_v9 = vsel %vm261_vm1, %v9026_v56, %v3739_v63  ;;  %v3668_v38 = vadd.f32 %v3660_v60, %v3634_v5  ;;  %v3760_v35 = vadd.f32 %v3756_v46, %v3747_v3  ;;  %v3820_v8 = vrot.slane %v3805_v52, 2  ;;  %v8422_v5 = vld [vmem:[%s5010_s3 + $0x340] sm:$0xff]  ;;  %v4777_v3 = vld [vmem:[%s5010_s3 + $0x330] sm:$0xfc] }
 0x24e   : > { %v3881_v6 = vmul.f32 %v4753_v48, %v4993_v14  ;;  %v8397_v1 = vmul.f32 %v7988_v19, %v4993_v14  ;;  %v9027_v21 = vrot.slane %v8293_v42, 1  ;;  %v3859_v4 = vrot.slane %v3847_v53, 1 }
 0x24f   : > { %v3680_v31 = vadd.f32 %v3676_v22, %v3668_v38  ;;  %v3860_v34 = vrot.slane %v8392_v11, 1  ;;  %v3794_v46 = vadd.f32 %v3785_v2, %v3760_v35  ;;  %v3915_v59 = vmul.f32 %v8223_v51, %v4997_v16  ;;  %v4773_v2 = vld [vmem:[%s5010_s3 + $0x330] sm:$0xfe] }
 0x250   : > { %v3787_v44 = vsel %vm226_vm0, %v9027_v21, %v3786_v40  ;;  %v3893_v55 = vrot.slane %v3881_v6, 2  ;;  %v3894_v36 = vrot.slane %v8397_v1, 2  ;;  %v3927_v22 = vmul.f32 %v4761_v32, %v5002_v20  ;;  %v4769_v40 = vld [vmem:[%s5010_s3 + $0x330] sm:$0xff] }
 0x251   : > { %v3714_v41 = vadd.f32 %v3706_v50, %v3680_v31  ;;  %v3861_v42 = vsel %vm226_vm0, %v3859_v4, %v3860_v34  ;;  %v8414_v62 = vmul.f32 %v8210_v45, %v5002_v20  ;;  %v3828_v63 = vadd.f32 %v3819_v47, %v3794_v46  ;;  %v4754_v31 = vld [vmem:[%s5010_s3 + $0x2d8] sm:$0xfc] }
 0x252   : > { %v3873_v39 = vadd.f32 %v3861_v42, %v3839_v17  ;;  %v3895_v51 = vsel %vm261_vm1, %v3893_v55, %v3894_v36  ;;  %v3961_v27 = vmul.f32 %v4765_v7, %v5014_v25  ;;  %v3939_v60 = vrot.slane %v3927_v22, 1  ;;  %v4762_v22 = vld [vmem:[%s5010_s3 + $0x308] sm:$0xfe] }
 0x253   : > { %v3748_v37 = vadd.f32 %v3740_v9, %v3714_v41  ;;  %v3940_v52 = vrot.slane %v8414_v62, 1  ;;  %v8427_v48 = vmul.f32 %v8210_v45, %v5014_v25  ;;  %4743 = vst [vmem:[%s5213_s6 + $0x1d0] sm:$0xff] %v3828_v63  ;;  %v9028_v47 = vrot.slane %v8306_v58, 2  ;;  %v4750_v58 = vld [vmem:[%s5010_s3 + $0x2d8] sm:$0xfe]  ;;  %v9029_v63 = vld [vmem:[#allocation5_spill] sm:$0xff] }
 0x254   : > { %v3907_v50 = vadd.f32 %v3895_v51, %v3873_v39  ;;  %v3973_v56 = vrot.slane %v3961_v27, 2  ;;  %v4008_v38 = vmul.f32 %v4773_v2, %v5021_v29  ;;  %v8442_v35 = vmul.f32 %v8422_v5, %v5021_v29  ;;  %v4766_v27 = vld [vmem:[%s5010_s3 + $0x308] sm:$0xfc] }
 0x255   : > { %v3821_v23 = vsel %vm261_vm1, %v9028_v47, %v3820_v8  ;;  %v3761_v9 = vadd.f32 %v3757_v49, %v3748_v37  ;;  %v3941_v17 = vsel %vm226_vm0, %v3939_v60, %v3940_v52  ;;  %v3974_v53 = vrot.slane %v8427_v48, 2 }
 0x256   : > { %v3919_v6 = vadd.f32 %v3915_v59, %v3907_v50  ;;  %v4020_v8 = vrot.slane %v4008_v38, 1  ;;  %v4042_v32 = vmul.f32 %v4777_v3, %v5029_v33  ;;  %v8448_v49 = vmul.f32 %v8422_v5, %v5029_v33 }
 0x257   : > { %v3795_v21 = vadd.f32 %v3787_v44, %v3761_v9  ;;  %v3975_v4 = vsel %vm261_vm1, %v3973_v56, %v3974_v53  ;;  %v3996_v7 = vmul.f32 %v4769_v40, %v5019_v28  ;;  %v8831_v46 = vrot.slane %v8442_v35, 1 }
 0x258   : > { %v3953_v55 = vadd.f32 %v3941_v17, %v3919_v6  ;;  %v4054_v59 = vrot.slane %v4042_v32, 2  ;;  %v8828_v41 = vrot.slane %v8448_v49, 2  ;;  %v3848_v42 = vmul.f32 %v4750_v58, %v4991_v13  ;;  %v8488_v6 = vld [vmem:[%s5010_s3 + $0x348] sm:$0xff] }
 0x259   : > { %v3829_v2 = vadd.f32 %v3821_v23, %v3795_v21  ;;  %v3840_v44 = vmul.f32 %v9029_v63, %v5098_v18  ;;  %v8463_v39 = vmul.f32 %v8062_v61, %v4991_v13  ;;  %v3882_v51 = vmul.f32 %v4754_v31, %v4995_v15  ;;  %v9030_v31 = vld [vmem:[#allocation6_spill] sm:$0xff]  ;;  %v4770_v63 = vld [vmem:[%s5010_s3 + $0x338] sm:$0xff] }
 0x25a   : > { %v3987_v37 = vadd.f32 %v3975_v4, %v3953_v55  ;;  %v4022_v60 = vsel %vm226_vm0, %v4020_v8, %v8831_v46  ;;  %v3862_v3 = vrot.slane %v3848_v42, 1  ;;  %v8472_v47 = vmul.f32 %v8062_v61, %v4995_v15  ;;  %v4774_v8 = vld [vmem:[%s5010_s3 + $0x338] sm:$0xfe]  ;;  %v4775_v46 = vld [vmem:[%s5010_s3 + $0x350] sm:$0x1] }
 0x25b   : > { %4744 = vst.msk [vmem:[%s5213_s6 + $0x1d8] sm:$0xff] %vm443_vm2, %v3829_v2  ;;  %v4056_v23 = vsel %vm261_vm1, %v4054_v59, %v8828_v41  ;;  %v3863_v50 = vrot.slane %v8463_v39, 1  ;;  %v3896_v56 = vrot.slane %v3882_v51, 2  ;;  %v3928_v40 = vmul.f32 %v4762_v22, %v5012_v24  ;;  %v4778_v55 = vld [vmem:[%s5010_s3 + $0x338] sm:$0xfc] }
 0x25c   : > { %v4000_v38 = vadd.f32 %v3996_v7, %v3987_v37  ;;  %v3897_v9 = vrot.slane %v8472_v47, 2  ;;  %v8484_v17 = vmul.f32 %v8284_v0, %v5012_v24  ;;  %v3962_v58 = vmul.f32 %v4766_v27, %v5016_v26  ;;  %v4763_v41 = vld [vmem:[%s5010_s3 + $0x320] sm:$0x1] }
 0x25d   : > { %v3864_v32 = vsel %vm226_vm0, %v3862_v3, %v3863_v50  ;;  %v3916_v21 = vmul.f32 %v9030_v31, %v5117_v43  ;;  %v3942_v4 = vrot.slane %v3928_v40, 1  ;;  %v8498_v7 = vmul.f32 %v8284_v0, %v5016_v26 }
 0x25e   : > { %v4034_v59 = vadd.f32 %v4022_v60, %v4000_v38  ;;  %v3874_v42 = vadd.f32 %v3864_v32, %v3840_v44  ;;  %v3898_v22 = vsel %vm261_vm1, %v3896_v56, %v3897_v9  ;;  %v8830_v2 = vrot.slane %v8484_v17, 1  ;;  %v4751_v44 = vld [vmem:[%s5010_s3 + $0x2f0] sm:$0x1] }
 0x25f   : > { %v3976_v51 = vrot.slane %v3962_v58, 2  ;;  %v8829_v27 = vrot.slane %v8498_v7, 2  ;;  %v4009_v37 = vmul.f32 %v4774_v8, %v5023_v30  ;;  %v8510_v3 = vmul.f32 %v8488_v6, %v5023_v30  ;;  %v4755_v38 = vld [vmem:[%s5010_s3 + $0x2f0] sm:$0x3] }
 0x260   : > { %v4068_v60 = vadd.f32 %v4056_v23, %v4034_v59  ;;  %v3908_v40 = vadd.f32 %v3898_v22, %v3874_v42  ;;  %v4043_v56 = vmul.f32 %v4778_v55, %v5063_v54  ;;  %v3944_v32 = vsel %vm226_vm0, %v3942_v4, %v8830_v2  ;;  %v4767_v23 = vld [vmem:[%s5010_s3 + $0x320] sm:$0x3] }
 0x261   : > { %v3978_v58 = vsel %vm261_vm1, %v3976_v51, %v8829_v27  ;;  %v3997_v8 = vmul.f32 %v4770_v63, %v5129_v57  ;;  %v8524_v31 = vmul.f32 %v8488_v6, %v5063_v54  ;;  %v4023_v59 = vrot.slane %v4009_v37, 1 }
 0x262   : > { %4781 = vst [vmem:[%s5213_s6 + $0x1e0] sm:$0xff] %v4068_v60  ;;  %v3920_v55 = vadd.f32 %v3916_v21, %v3908_v40  ;;  %v4024_v42 = vrot.slane %v8510_v3, 1  ;;  %v3851_v4 = vmul.f32 %v4751_v44, %v4989_v12  ;;  %v4057_v22 = vrot.slane %v4043_v56, 2 }
 0x263   : > { %v4058_v51 = vrot.slane %v8524_v31, 2  ;;  %v3841_v63 = vmul.f32 %v7988_v19, %v4986_v10  ;;  %v3885_v27 = vmul.f32 %v4755_v38, %v4993_v14  ;;  %v3931_v21 = vmul.f32 %v4763_v41, %v5002_v20  ;;  %v4779_v10 = vld [vmem:[%s5010_s3 + $0x350] sm:$0x3]  ;;  %v4752_v19 = vld [vmem:[%s5010_s3 + $0x2f8] sm:$0x1] }
 0x264   : > { %v3954_v2 = vadd.f32 %v3944_v32, %v3920_v55  ;;  %v3865_v60 = vrot.slane %v3851_v4, 1  ;;  %v3965_v37 = vmul.f32 %v4767_v23, %v5014_v25  ;;  %v4025_v14 = vsel %vm226_vm0, %v4023_v59, %v4024_v42  ;;  %v4756_v41 = vld [vmem:[%s5010_s3 + $0x2f8] sm:$0x3] }
 0x265   : > { %v3899_v40 = vrot.slane %v3885_v27, 2  ;;  %v3945_v56 = vrot.slane %v3931_v21, 1  ;;  %v3917_v25 = vmul.f32 %v8210_v45, %v4997_v16  ;;  %v4012_v32 = vmul.f32 %v4775_v46, %v5021_v29 }
 0x266   : > { %v3988_v12 = vadd.f32 %v3978_v58, %v3954_v2  ;;  %v3866_v44 = vsel %vm226_vm0, %v3860_v34, %v3865_v60  ;;  %v4764_v2 = vld [vmem:[%s5010_s3 + $0x328] sm:$0x1]  ;;  %v4059_v34 = vsel %vm261_vm1, %v4057_v22, %v4058_v51  ;;  %v3979_v27 = vrot.slane %v3965_v37, 2  ;;  %v4776_v22 = vld [vmem:[%s5010_s3 + $0x358] sm:$0x1] }
 0x267   : > { %v3875_v38 = vadd.f32 %v3866_v44, %v3841_v63  ;;  %v3900_v20 = vsel %vm261_vm1, %v3894_v36, %v3899_v40  ;;  %v4768_v58 = vld [vmem:[%s5010_s3 + $0x328] sm:$0x3]  ;;  %v3946_v1 = vsel %vm226_vm0, %v3940_v52, %v3945_v56  ;;  %v4046_v36 = vmul.f32 %v4779_v10, %v5029_v33  ;;  %v4780_v60 = vld [vmem:[%s5010_s3 + $0x358] sm:$0x3] }
 0x268   : > { %v4001_v11 = vadd.f32 %v3997_v8, %v3988_v12  ;;  %v3852_v16 = vmul.f32 %v4752_v19, %v4991_v13  ;;  %v3842_v8 = vmul.f32 %v8062_v61, %v5098_v18  ;;  %v3886_v55 = vmul.f32 %v4756_v41, %v4995_v15 }
 0x269   : > { %v3909_v23 = vadd.f32 %v3900_v20, %v3875_v38  ;;  %v3932_v29 = vmul.f32 %v4764_v2, %v5012_v24  ;;  %v3966_v62 = vmul.f32 %v4768_v58, %v5016_v26  ;;  %v3980_v33 = vsel %vm261_vm1, %v3974_v53, %v3979_v27 }
 0x26a   : > { %v4035_v45 = vadd.f32 %v4025_v14, %v4001_v11  ;;  %v3867_v59 = vrot.slane %v3852_v16, 1  ;;  %v4026_v13 = vrot.slane %v4012_v32, 1  ;;  %v3901_v52 = vrot.slane %v3886_v55, 2 }
 0x26b   : > { %v3921_v46 = vadd.f32 %v3917_v25, %v3909_v23  ;;  %v3998_v18 = vmul.f32 %v8422_v5, %v5019_v28  ;;  %v3947_v24 = vrot.slane %v3932_v29, 1  ;;  %v4060_v26 = vrot.slane %v4046_v36, 2 }
 0x26c   : > { %v4069_v4 = vadd.f32 %v4059_v34, %v4035_v45  ;;  %v3868_v15 = vsel %vm226_vm0, %v3863_v50, %v3867_v59  ;;  %v3902_v48 = vsel %vm261_vm1, %v3897_v9, %v3901_v52  ;;  %v3918_v53 = vmul.f32 %v8284_v0, %v5117_v43 }
 0x26d   : > { %v3955_v63 = vadd.f32 %v3946_v1, %v3921_v46  ;;  %v3876_v61 = vadd.f32 %v3868_v15, %v3842_v8  ;;  %v3981_v28 = vrot.slane %v3966_v62, 2  ;;  %v4013_v5 = vmul.f32 %v4776_v22, %v5023_v30 }
 0x26e   : > { %4782 = vst.msk [vmem:[%s5213_s6 + $0x1e8] sm:$0xff] %vm443_vm2, %v4069_v4  ;;  %v9031_v39 = vrot.slane %v8442_v35, 1  ;;  %v9032_v12 = vrot.slane %v8484_v17, 1  ;;  %v4047_v9 = vmul.f32 %v4780_v60, %v5063_v54  ;;  %v9033_v43 = vrot.slane %v8448_v49, 2 }
 0x26f   : > { %v3989_v21 = vadd.f32 %v3980_v33, %v3955_v63  ;;  %v3910_v37 = vadd.f32 %v3902_v48, %v3876_v61  ;;  %v9034_v35 = vrot.slane %v8498_v7, 2  ;;  %v4028_v10 = vrot.slane %v4013_v5, 1 }
 0x270   : > { %v4027_v50 = vsel %vm226_vm0, %v9031_v39, %v4026_v13  ;;  %v3948_v47 = vsel %vm226_vm0, %v9032_v12, %v3947_v24  ;;  %v4061_v0 = vsel %vm261_vm1, %v9033_v43, %v4060_v26  ;;  %v3999_v17 = vmul.f32 %v8488_v6, %v5129_v57 }
 0x271   : > { %v4002_v40 = vadd.f32 %v3998_v18, %v3989_v21  ;;  %v3922_v44 = vadd.f32 %v3918_v53, %v3910_v37  ;;  %v3982_v56 = vsel %vm261_vm1, %v9034_v35, %v3981_v28  ;;  %v4062_v14 = vrot.slane %v4047_v9, 2 }
 0x272   : > { %v4029_v7 = vsel %vm226_vm0, %v4024_v42, %v4028_v10 }
 0x273   : > { %v4036_v30 = vadd.f32 %v4027_v50, %v4002_v40  ;;  %v3956_v19 = vadd.f32 %v3948_v47, %v3922_v44  ;;  %v4063_v57 = vsel %vm261_vm1, %v4058_v51, %v4062_v14 }
 0x275   : > { %v4070_v54 = vadd.f32 %v4061_v0, %v4036_v30  ;;  %v3990_v49 = vadd.f32 %v3982_v56, %v3956_v19 }
 0x277   : > { %4783 = vst [vmem:[%s5213_s6 + $0x1f0] sm:$0xff] %v4070_v54  ;;  %v4003_v38 = vadd.f32 %v3999_v17, %v3990_v49 }
 0x279   : > { %v4037_v6 = vadd.f32 %v4029_v7, %v4003_v38 }
 0x27b   : > { %v4071_v20 = vadd.f32 %v4063_v57, %v4037_v6 }
 0x27d   : > { %4784 = vst.msk [vmem:[%s5213_s6 + $0x1f8] sm:$0xff] %vm443_vm2, %v4071_v20 }
 0x27e   : > { %4860 = shalt.err (!%p4857_p3)
}
 0x27f   : > { %s4897_s29 = smov 256   ;;  %s4898_s30 = smov 16  }
 0x280   : > { %4792 = dma.vmem_to_hbm [thread:$0]  (%p4952_p5), %s4091_s13, 8192, %s4093_s17, %s4078_s21, %s4897_s29, %s4897_s29, %s4898_s30  }
 0x281 PF: > { %p4798_p4 = scmp.ge.s32.totalorder %s4895_s12, 2  ;;  %s4107_s3 = sand.u32 1, %s4883_s9  }
 0x282   : > { %s4108_s4 = scalar_lea.sflag [#allocation3], %s4107_s3 }
 0x283   : > { %p4795_p7 = pnand %p4798_p4, %p4956_p6 }
 0x285   : > { %p4796_p8 = pneg %p4795_p7 }
 0x287   : > { %4878 = dma.done.wait (%p4796_p8), %s4108_s4, 8192  }
 0x288   : > { %4880 = vsyncadd (%p4796_p8), %s4108_s4, 4294959104  ;;  %p12_p9 = scmp.ge.s32.totalorder %s4939_s15, 4   ;;  %s9035_s9 = smov %s4887_s10 }
 0x289   : > { %s9036_s10 = smov %s4891_s11  ;;  %s9037_s11 = smov %s4950_s18 }
 0x28a   : > { %s9038_s12 = smov %s4939_s15  ;;  %14 = sbr.rel (!%p12_p9) target bundleno = 3 (0x3), region = 95 }
 0x28f   :  { %4114 = vsyncpa [#allocation3], 1 }
 0x290   :  { %4116 = vsyncpa [#allocation3 + $0x1], 1 }

</bundles_post_ra>
